<compile_context>
chip_gen: v5e
topology: v5e:2x2
jax: 0.10.0
libtpu: 0.0.40
codegen_flags: <defaults>
</compile_context>

<pallas_src>
import functools
import math

import jax
import jax.numpy as jnp
from jax import lax
from jax.experimental import pallas as pl
from jax.experimental.pallas import tpu as pltpu

EPS = 1e-5                      # PyTorch GroupNorm default eps
_VMEM_LIMIT = 32 * 1024 * 1024  # explicit scoped-VMEM cap (raises v5e's 16MiB default)


def _cparams():
    return pltpu.CompilerParams(dimension_semantics=("parallel",),
                                vmem_limit_bytes=_VMEM_LIMIT)


def _shared(shape):
    """BlockSpec for a grid-invariant (weight-like) input: one full block."""
    return pl.BlockSpec(shape, lambda n, _nd=len(shape): (0,) * _nd)


# --------------------------------------------------------------------------
# In-kernel math helpers (lane-dense [C, M] layout)
# --------------------------------------------------------------------------

def _erf(x):
    # Abramowitz–Stegun 7.1.26; reciprocal routed to the EUP (approx).
    a1, a2, a3, a4, a5 = 0.254829592, -0.284496736, 1.421413741, -1.453152027, 1.061405429
    p = 0.3275911
    ax = jnp.abs(x)
    t = pl.reciprocal(1.0 + p * ax, approx=True)
    poly = ((((a5 * t + a4) * t + a3) * t + a2) * t + a1) * t
    y = 1.0 - poly * jnp.exp(-ax * ax)
    return jnp.where(x >= 0.0, y, -y)


def _gelu(x):
    return 0.5 * x * (1.0 + _erf(x * (1.0 / math.sqrt(2.0))))


def _norm_mlp_cm(h, g_ref, bt_ref, w2_ref, b2_ref, w3_ref, b3_ref):
    """GroupNorm(groups=C) + 1x1 conv + GELU + 1x1 conv on a [C, M] tile.

    One-pass stats (sum / sum-of-squares); matmuls keep M on the lane axis.
    """
    M = h.shape[1]
    inv_m = 1.0 / M
    s1 = jnp.sum(h, axis=1, keepdims=True)            # [C, 1]
    s2 = jnp.sum(h * h, axis=1, keepdims=True)        # [C, 1]
    mean = s1 * inv_m
    var = jnp.maximum(s2 * inv_m - mean * mean, 0.0)   # biased var, clamped
    hn = (h - mean) * lax.rsqrt(var + EPS)
    hn = hn * g_ref[...] + bt_ref[...]
    z = jnp.dot(w2_ref[...], hn, preferred_element_type=jnp.float32) + b2_ref[...]
    z = _gelu(z)
    z = jnp.dot(w3_ref[...], z, preferred_element_type=jnp.float32) + b3_ref[...]
    return z


# --------------------------------------------------------------------------
# Pallas kernels
# --------------------------------------------------------------------------

def mednext_block_kernel(xvf_ref, cm_ref, dww_ref, dwb_ref, g_ref, bt_ref,
                         w2_ref, b2_ref, w3_ref, b3_ref, o_ref, *, K, H, W):
    """Fused MedNeXtBlock (stride-1): depthwise KxK + GroupNorm + 1x1 + GELU +
    1x1 + residual, all in lane-dense [C, M] layout.

    xvf: [1, C, Lp]  vertically-padded, spatially-flattened, flat-padded input
                     (lane count Lp is a multiple of 128).  The same tensor is
                     used for every conv tap (pure lane roll) and the residual.
    cm : [K, 1, M]   precomputed 0/1 f32 column masks for the horizontal edges.
    """
    C = o_ref.shape[1]
    M = H * W
    p = K // 2
    Lp = xvf_ref.shape[2]

    xv = xvf_ref[0]                      # [C, Lp] — single aligned load

    acc = jnp.zeros((C, M), jnp.float32)
    for dx in range(K):
        cmask = None if dx == p else cm_ref[dx]        # [1, M] 0/1 mask
        for dy in range(K):
            start = dy * W + dx          # flat offset of this tap
            shift = (Lp - start) % Lp
            shifted = pltpu.roll(xv, shift=shift, axis=1) if shift else xv
            sl = shifted[:, :M]          # [C, M]; roll wraparound lands >= M
            if cmask is not None:
                sl = sl * cmask
            acc = acc + sl * dww_ref[dy * K + dx]      # [C, 1] lane-broadcast
    acc = acc + dwb_ref[...]

    z = _norm_mlp_cm(acc, g_ref, bt_ref, w2_ref, b2_ref, w3_ref, b3_ref)

    # Residual == interior of the same halo'd tensor (no second DMA).
    r0 = p * W + p
    rshift = (Lp - r0) % Lp
    res = (pltpu.roll(xv, shift=rshift, axis=1) if rshift else xv)[:, :M]
    o_ref[0] = (z + res).astype(o_ref.dtype)


def down_block_kernel(y_ref, xs_ref, g_ref, bt_ref, w2_ref, b2_ref,
                      w3_ref, b3_ref, rw_ref, rb_ref, o_ref):
    """Down block tail: GroupNorm+MLP on the strided depthwise output, plus the
    fused 1x1 stride-2 residual conv (matmul on the subsampled input)."""
    z = _norm_mlp_cm(y_ref[0], g_ref, bt_ref, w2_ref, b2_ref, w3_ref, b3_ref)
    r = jnp.dot(rw_ref[...], xs_ref[0], preferred_element_type=jnp.float32) + rb_ref[...]
    o_ref[0] = (z + r).astype(o_ref.dtype)


def up_block_kernel(y_ref, r_ref, g_ref, bt_ref, w2_ref, b2_ref,
                    w3_ref, b3_ref, o_ref):
    """Up block tail: GroupNorm+MLP on the transposed depthwise output + residual."""
    z = _norm_mlp_cm(y_ref[0], g_ref, bt_ref, w2_ref, b2_ref, w3_ref, b3_ref)
    o_ref[0] = (z + r_ref[0]).astype(o_ref.dtype)


# --------------------------------------------------------------------------
# pallas_call wrappers
# --------------------------------------------------------------------------

def mednext_block(x, prm, K):
    """Fused MedNeXtBlock (res_block=True, out_channels == in_channels). x: NCHW."""
    N, C, H, W = x.shape
    assert prm['w3'].shape[0] == C, "MedNeXtBlock residual needs out_channels == in_channels"
    p = K // 2
    M = H * W
    Ce = prm['w2'].shape[0]
    Mv = (H + 2 * p) * W
    Lp = ((Mv + 2 * p + 127) // 128) * 128     # lane-aligned halo'd length

    # Vertical pad -> flatten spatial -> flat pad (so every KxK tap is a pure
    # lane shift and the residual is the interior slice of the same tensor).
    xv = jnp.pad(x, ((0, 0), (0, 0), (p, p), (0, 0))).reshape(N, C, Mv)
    xvf = jnp.pad(xv, ((0, 0), (0, 0), (p, Lp - Mv - p)))

    # 0/1 column masks: for tap offset dx, input column j + dx - p must be in
    # range [0, W). Precomputed once; the kernel just multiplies (edge taps).
    col = jnp.arange(M, dtype=jnp.int32) % W                               # [M]
    cmask = jnp.stack(
        [((col >= (p - dx)) & (col <= (W - 1 + p - dx))).astype(jnp.float32)
         for dx in range(K)], axis=0)[:, None, :]                          # [K, 1, M]

    dw_w = jnp.transpose(prm['dw_w'].reshape(C, K * K), (1, 0))[:, :, None]  # [K*K, C, 1]

    out = pl.pallas_call(
        functools.partial(mednext_block_kernel, K=K, H=H, W=W),
        out_shape=jax.ShapeDtypeStruct((N, C, M), jnp.float32),
        grid=(N,),
        in_specs=[
            pl.BlockSpec((1, C, Lp), lambda n: (n, 0, 0)),
            _shared((K, 1, M)),
            _shared((K * K, C, 1)),
            _shared((C, 1)),
            _shared((C, 1)),
            _shared((C, 1)),
            _shared((Ce, C)),
            _shared((Ce, 1)),
            _shared((C, Ce)),
            _shared((C, 1)),
        ],
        out_specs=pl.BlockSpec((1, C, M), lambda n: (n, 0, 0)),
        compiler_params=_cparams(),
    )(xvf, cmask, dw_w, prm['dw_b'], prm['gamma'], prm['beta'],
      prm['w2'], prm['b2'], prm['w3'], prm['b3'])
    return out.reshape(N, C, H, W)


# ----- thin XLA glue for the strided / transposed depthwise convs (resampling)

def depthwise_conv_s2(x, w, b, K):
    """Depthwise KxK conv, stride 2, padding K//2, groups=C (NCHW). w:[C,K,K], b:[C]."""
    N, C, H, W = x.shape
    p = K // 2
    Ho = (H + 2 * p - K) // 2 + 1
    Wo = (W + 2 * p - K) // 2 + 1
    xp = jnp.pad(x, ((0, 0), (0, 0), (p, p), (p, p)))
    acc = jnp.zeros((N, C, Ho, Wo), jnp.float32)
    for dy in range(K):
        for dx in range(K):
            acc = acc + (xp[:, :, dy:dy + 2 * Ho:2, dx:dx + 2 * Wo:2]
                         * w[:, dy, dx][None, :, None, None])
    return acc + b[None, :, None, None]


def depthwise_convT_s2(x, w, b, K):
    """Depthwise ConvTranspose KxK, stride 2, padding K//2, groups=C (NCHW):
    zero-stuff + flipped-kernel conv. Output spatial (2H-1, 2W-1)."""
    N, C, H, W = x.shape
    p = K // 2
    Hd, Wd = 2 * H - 1, 2 * W - 1
    xd = jnp.zeros((N, C, Hd, Wd), x.dtype).at[:, :, ::2, ::2].set(x)
    pp = K - 1 - p
    xp = jnp.pad(xd, ((0, 0), (0, 0), (pp, pp), (pp, pp)))
    wf = w[:, ::-1, ::-1]
    acc = jnp.zeros((N, C, Hd, Wd), jnp.float32)
    for dy in range(K):
        for dx in range(K):
            acc = acc + xp[:, :, dy:dy + Hd, dx:dx + Wd] * wf[:, dy, dx][None, :, None, None]
    return acc + b[None, :, None, None]


def res_convT_s2(x, w, b):
    """ConvTranspose(Cin->Cout, kernel 1, stride 2) in NCHW. w:[Cout,Cin], b:[Cout]."""
    N, Cin, H, W = x.shape
    Cout = w.shape[0]
    pw = jnp.einsum('oc,nchw->nohw', w, x)
    Ho, Wo = 2 * H - 1, 2 * W - 1
    out = jnp.broadcast_to(b[None, :, None, None], (N, Cout, Ho, Wo))
    return out.at[:, :, ::2, ::2].add(pw)


def mednext_down_block(x, prm, K):
    # TODO(synk): fold the stride-2 depthwise conv (polyphase form) into the
    # Pallas kernel to remove this XLA-side resampling round trip.
    N, C, H, W = x.shape
    y = depthwise_conv_s2(x, prm['dw_w'], prm['dw_b'][:, 0], K)      # [N, C, Ho, Wo]
    Ho, Wo = y.shape[2], y.shape[3]
    Mo = Ho * Wo
    xs = x[:, :, ::2, ::2].reshape(N, C, Mo)                         # residual source
    yf = y.reshape(N, C, Mo)
    Cout = prm['res_w'].shape[0]
    Ce = prm['w2'].shape[0]
    out = pl.pallas_call(
        down_block_kernel,
        out_shape=jax.ShapeDtypeStruct((N, Cout, Mo), jnp.float32),
        grid=(N,),
        in_specs=[
            pl.BlockSpec((1, C, Mo), lambda n: (n, 0, 0)),
            pl.BlockSpec((1, C, Mo), lambda n: (n, 0, 0)),
            _shared((C, 1)), _shared((C, 1)),
            _shared((Ce, C)), _shared((Ce, 1)),
            _shared((Cout, Ce)), _shared((Cout, 1)),
            _shared((Cout, C)), _shared((Cout, 1)),
        ],
        out_specs=pl.BlockSpec((1, Cout, Mo), lambda n: (n, 0, 0)),
        compiler_params=_cparams(),
    )(yf, xs, prm['gamma'], prm['beta'], prm['w2'], prm['b2'],
      prm['w3'], prm['b3'], prm['res_w'], prm['res_b'])
    return out.reshape(N, Cout, Ho, Wo)


def mednext_up_block(x, prm, K):
    # TODO(synk): fold the transposed depthwise conv and the 1x1 stride-2
    # residual ConvT (polyphase form) into the Pallas kernel to avoid the
    # zero-stuffed XLA intermediates.
    N, C, H, W = x.shape
    Cout = prm['res_w'].shape[0]
    Ce = prm['w2'].shape[0]
    y = depthwise_convT_s2(x, prm['dw_w'], prm['dw_b'][:, 0], K)     # [N, C, 2H-1, 2W-1]
    r = res_convT_s2(x, prm['res_w'], prm['res_b'][:, 0])            # [N, Cout, 2H-1, 2W-1]
    Ho, Wo = 2 * H - 1, 2 * W - 1
    Mo = Ho * Wo
    yf = y.reshape(N, C, Mo)
    rf = r.reshape(N, Cout, Mo)
    s = pl.pallas_call(
        up_block_kernel,
        out_shape=jax.ShapeDtypeStruct((N, Cout, Mo), jnp.float32),
        grid=(N,),
        in_specs=[
            pl.BlockSpec((1, C, Mo), lambda n: (n, 0, 0)),
            pl.BlockSpec((1, Cout, Mo), lambda n: (n, 0, 0)),
            _shared((C, 1)), _shared((C, 1)),
            _shared((Ce, C)), _shared((Ce, 1)),
            _shared((Cout, Ce)), _shared((Cout, 1)),
        ],
        out_specs=pl.BlockSpec((1, Cout, Mo), lambda n: (n, 0, 0)),
        compiler_params=_cparams(),
    )(yf, rf, prm['gamma'], prm['beta'], prm['w2'], prm['b2'], prm['w3'], prm['b3'])
    s = s.reshape(N, Cout, Ho, Wo)
    # F.pad(s, (1,0,1,0)) in NCHW: left pad W by 1, top pad H by 1.
    return jnp.pad(s, ((0, 0), (0, 0), (1, 0), (1, 0)))


# --------------------------------------------------------------------------
# Full model forward (inference path: encode + decode)
# --------------------------------------------------------------------------

def mednext_forward(params, x_nchw, K):
    x = x_nchw.astype(jnp.float32)
    # Stem / output head are tiny 1x1 convs (Cin=4 / Cout=3): plain XLA einsum
    # (Pallas per-step overhead + 3-wide masked stores would dominate).
    x = jnp.einsum('oc,nchw->nohw', params['stem_w'], x) + params['stem_b'][None, :, None, None]
    skips = []
    for enc_p, down_p in zip(params['enc'], params['down']):
        s = x
        for bp in enc_p:
            s = mednext_block(s, bp, K)
        skips.append(s)
        x = mednext_down_block(s, down_p, K)
    for bp in params['bottleneck']:
        x = mednext_block(x, bp, K)
    for up_p, dec_p in zip(params['up'], params['dec']):
        x = mednext_up_block(x, up_p, K) + skips.pop()
        for bp in dec_p:
            x = mednext_block(x, bp, K)
    x = jnp.einsum('oc,nchw->nohw', params['out_w'], x) + params['out_b'][None, :, None, None]
    return x


# --------------------------------------------------------------------------
# Deterministic parameter init (shapes follow the PyTorch module __init__)
# --------------------------------------------------------------------------

def _init_block(key, C, Cout, r, K):
    ks = jax.random.split(key, 6)
    Ce = C * r
    return {
        'dw_w': jax.random.normal(ks[0], (C, K, K), jnp.float32) * 0.1,
        'dw_b': jax.random.normal(ks[1], (C, 1), jnp.float32) * 0.01,
        'gamma': jnp.ones((C, 1), jnp.float32),        # GroupNorm default init
        'beta': jnp.zeros((C, 1), jnp.float32),
        'w2': jax.random.normal(ks[2], (Ce, C), jnp.float32) * 0.1,
        'b2': jax.random.normal(ks[3], (Ce, 1), jnp.float32) * 0.01,
        'w3': jax.random.normal(ks[4], (Cout, Ce), jnp.float32) * 0.1,
        'b3': jax.random.normal(ks[5], (Cout, 1), jnp.float32) * 0.01,
    }


def init_mednext_params(key, in_channels, out_channels, filters,
                        num_blocks, expand_ratio, K):
    depth = len(num_blocks) // 2
    keys = iter(jax.random.split(key, 256))
    p = {}
    p['stem_w'] = jax.random.normal(next(keys), (filters, in_channels), jnp.float32) * 0.1
    p['stem_b'] = jax.random.normal(next(keys), (filters,), jnp.float32) * 0.01
    p['enc'], p['down'] = [], []
    for i in range(depth):
        C = filters * 2 ** i
        p['enc'].append([_init_block(next(keys), C, C, expand_ratio[i], K)
                         for _ in range(num_blocks[i])])
        d = _init_block(next(keys), C, 2 * C, expand_ratio[i + 1], K)
        d['res_w'] = jax.random.normal(next(keys), (2 * C, C), jnp.float32) * 0.1
        d['res_b'] = jax.random.normal(next(keys), (2 * C, 1), jnp.float32) * 0.01
        p['down'].append(d)
    Cb = filters * 2 ** depth
    p['bottleneck'] = [_init_block(next(keys), Cb, Cb, expand_ratio[depth], K)
                       for _ in range(num_blocks[depth])]
    p['up'], p['dec'] = [], []
    for i in reversed(range(depth)):
        idx = len(expand_ratio) - 1 - i
        C = filters * 2 ** (i + 1)
        u = _init_block(next(keys), C, C // 2, expand_ratio[idx], K)
        u['res_w'] = jax.random.normal(next(keys), (C // 2, C), jnp.float32) * 0.1
        u['res_b'] = jax.random.normal(next(keys), (C // 2, 1), jnp.float32) * 0.01
        p['up'].append(u)
        p['dec'].append([_init_block(next(keys), C // 2, C // 2, expand_ratio[idx], K)
                         for _ in range(num_blocks[idx])])
    p['out_w'] = jax.random.normal(next(keys), (out_channels, filters), jnp.float32) * 0.1
    p['out_b'] = jax.random.normal(next(keys), (out_channels,), jnp.float32) * 0.01
    return p


if __name__ == "__main__":
    key = jax.random.PRNGKey(0)
    kp, kx = jax.random.split(key)

    # MedNeXt(spatial_dims=2, in_channels=4, out_channels=3, kernel_size=3,
    #         filters=8, num_blocks=(1,1,1), expand_ratio=2, res_block=True)
    in_ch, out_ch, filters, K = 4, 3, 8, 3
    num_blocks = (1, 1, 1)
    expand_ratio = (2, 2, 2)

    params = init_mednext_params(kp, in_ch, out_ch, filters, num_blocks, expand_ratio, K)
    x = jax.random.normal(kx, (2, in_ch, 16, 16), jnp.float32)   # NCHW input

    fwd = jax.jit(functools.partial(mednext_forward, K=K))
    y = fwd(params, x)
    jax.block_until_ready(y)
    assert y.shape == (2, out_ch, 16, 16), y.shape
    assert bool(jnp.all(jnp.isfinite(y)))
    print("KERNEL_OK")
</pallas_src>

<mosaic_0001>
module attributes {stable_mosaic.version = 11 : i64} {
  func.func @mednext_block_kernel(%arg0: i32, %arg1: memref<1x8x384xf32, #tpu.memory_space<vmem>>, %arg2: memref<3x1x256xf32, #tpu.memory_space<vmem>>, %arg3: memref<9x8x1xf32, #tpu.memory_space<vmem>>, %arg4: memref<8x1xf32, #tpu.memory_space<vmem>>, %arg5: memref<8x1xf32, #tpu.memory_space<vmem>>, %arg6: memref<8x1xf32, #tpu.memory_space<vmem>>, %arg7: memref<16x8xf32, #tpu.memory_space<vmem>>, %arg8: memref<16x1xf32, #tpu.memory_space<vmem>>, %arg9: memref<8x16xf32, #tpu.memory_space<vmem>>, %arg10: memref<8x1xf32, #tpu.memory_space<vmem>>, %arg11: memref<1x8x256xf32, #tpu.memory_space<vmem>>) attributes {dimension_semantics = [#tpu.dimension_semantics<parallel>], iteration_bounds = array<i64: 2>, scalar_prefetch = 0 : i64, scratch_operands = 0 : i64, tpu.core_type = #tpu.core_type<tc>, window_params = [{transform_indices = @transform_0, window_bounds = array<i64: 1, 8, 384>}, {pipeline_mode = #tpu.pipeline_mode<synchronous>, transform_indices = @transform_1, window_bounds = array<i64: 3, 1, 256>}, {pipeline_mode = #tpu.pipeline_mode<synchronous>, transform_indices = @transform_2, window_bounds = array<i64: 9, 8, 1>}, {pipeline_mode = #tpu.pipeline_mode<synchronous>, transform_indices = @transform_3, window_bounds = array<i64: 8, 1>}, {pipeline_mode = #tpu.pipeline_mode<synchronous>, transform_indices = @transform_4, window_bounds = array<i64: 8, 1>}, {pipeline_mode = #tpu.pipeline_mode<synchronous>, transform_indices = @transform_5, window_bounds = array<i64: 8, 1>}, {pipeline_mode = #tpu.pipeline_mode<synchronous>, transform_indices = @transform_6, window_bounds = array<i64: 16, 8>}, {pipeline_mode = #tpu.pipeline_mode<synchronous>, transform_indices = @transform_7, window_bounds = array<i64: 16, 1>}, {pipeline_mode = #tpu.pipeline_mode<synchronous>, transform_indices = @transform_8, window_bounds = array<i64: 8, 16>}, {pipeline_mode = #tpu.pipeline_mode<synchronous>, transform_indices = @transform_9, window_bounds = array<i64: 8, 1>}, {transform_indices = @transform_10, window_bounds = array<i64: 1, 8, 256>}]} {
    %c0 = arith.constant 0 : index
    %c0_0 = arith.constant 0 : index
    %c0_1 = arith.constant 0 : index
    %0 = vector.load %arg1[%c0, %c0_0, %c0_1] : memref<1x8x384xf32, #tpu.memory_space<vmem>>, vector<1x8x384xf32>
    %1 = vector.shape_cast %0 : vector<1x8x384xf32> to vector<8x384xf32>
    %cst = arith.constant 0.000000e+00 : f32
    %2 = vector.broadcast %cst : f32 to vector<8x256xf32>
    %c0_2 = arith.constant 0 : index
    %c0_3 = arith.constant 0 : index
    %c0_4 = arith.constant 0 : index
    %3 = vector.load %arg2[%c0_2, %c0_3, %c0_4] : memref<3x1x256xf32, #tpu.memory_space<vmem>>, vector<1x1x256xf32>
    %4 = vector.shape_cast %3 : vector<1x1x256xf32> to vector<1x256xf32>
    %5 = vector.extract_strided_slice %1 {offsets = [0, 0], sizes = [8, 256], strides = [1, 1]} : vector<8x384xf32> to vector<8x256xf32>
    %6 = vector.broadcast %4 : vector<1x256xf32> to vector<8x256xf32>
    %7 = arith.mulf %5, %6 : vector<8x256xf32>
    %c0_5 = arith.constant 0 : index
    %c0_6 = arith.constant 0 : index
    %c0_7 = arith.constant 0 : index
    %8 = vector.load %arg3[%c0_5, %c0_6, %c0_7] : memref<9x8x1xf32, #tpu.memory_space<vmem>>, vector<1x8x1xf32>
    %9 = vector.shape_cast %8 : vector<1x8x1xf32> to vector<8x1xf32>
    %10 = vector.broadcast %9 : vector<8x1xf32> to vector<8x256xf32>
    %11 = arith.mulf %7, %10 : vector<8x256xf32>
    %12 = arith.addf %2, %11 : vector<8x256xf32>
    %c368_i32 = arith.constant 368 : i32
    %13 = tpu.dynamic_rotate %1 by %c368_i32 dim 1 : vector<8x384xf32>, i32 -> vector<8x384xf32>
    %14 = vector.extract_strided_slice %13 {offsets = [0, 0], sizes = [8, 256], strides = [1, 1]} : vector<8x384xf32> to vector<8x256xf32>
    %15 = vector.broadcast %4 : vector<1x256xf32> to vector<8x256xf32>
    %16 = arith.mulf %14, %15 : vector<8x256xf32>
    %c3 = arith.constant 3 : index
    %c0_8 = arith.constant 0 : index
    %c0_9 = arith.constant 0 : index
    %17 = vector.load %arg3[%c3, %c0_8, %c0_9] : memref<9x8x1xf32, #tpu.memory_space<vmem>>, vector<1x8x1xf32>
    %18 = vector.shape_cast %17 : vector<1x8x1xf32> to vector<8x1xf32>
    %19 = vector.broadcast %18 : vector<8x1xf32> to vector<8x256xf32>
    %20 = arith.mulf %16, %19 : vector<8x256xf32>
    %21 = arith.addf %12, %20 : vector<8x256xf32>
    %c352_i32 = arith.constant 352 : i32
    %22 = tpu.dynamic_rotate %1 by %c352_i32 dim 1 : vector<8x384xf32>, i32 -> vector<8x384xf32>
    %23 = vector.extract_strided_slice %22 {offsets = [0, 0], sizes = [8, 256], strides = [1, 1]} : vector<8x384xf32> to vector<8x256xf32>
    %24 = vector.broadcast %4 : vector<1x256xf32> to vector<8x256xf32>
    %25 = arith.mulf %23, %24 : vector<8x256xf32>
    %c6 = arith.constant 6 : index
    %c0_10 = arith.constant 0 : index
    %c0_11 = arith.constant 0 : index
    %26 = vector.load %arg3[%c6, %c0_10, %c0_11] : memref<9x8x1xf32, #tpu.memory_space<vmem>>, vector<1x8x1xf32>
    %27 = vector.shape_cast %26 : vector<1x8x1xf32> to vector<8x1xf32>
    %28 = vector.broadcast %27 : vector<8x1xf32> to vector<8x256xf32>
    %29 = arith.mulf %25, %28 : vector<8x256xf32>
    %30 = arith.addf %21, %29 : vector<8x256xf32>
    %c383_i32 = arith.constant 383 : i32
    %31 = tpu.dynamic_rotate %1 by %c383_i32 dim 1 : vector<8x384xf32>, i32 -> vector<8x384xf32>
    %32 = vector.extract_strided_slice %31 {offsets = [0, 0], sizes = [8, 256], strides = [1, 1]} : vector<8x384xf32> to vector<8x256xf32>
    %c1 = arith.constant 1 : index
    %c0_12 = arith.constant 0 : index
    %c0_13 = arith.constant 0 : index
    %33 = vector.load %arg3[%c1, %c0_12, %c0_13] : memref<9x8x1xf32, #tpu.memory_space<vmem>>, vector<1x8x1xf32>
    %34 = vector.shape_cast %33 : vector<1x8x1xf32> to vector<8x1xf32>
    %35 = vector.broadcast %34 : vector<8x1xf32> to vector<8x256xf32>
    %36 = arith.mulf %32, %35 : vector<8x256xf32>
    %37 = arith.addf %30, %36 : vector<8x256xf32>
    %c367_i32 = arith.constant 367 : i32
    %38 = tpu.dynamic_rotate %1 by %c367_i32 dim 1 : vector<8x384xf32>, i32 -> vector<8x384xf32>
    %39 = vector.extract_strided_slice %38 {offsets = [0, 0], sizes = [8, 256], strides = [1, 1]} : vector<8x384xf32> to vector<8x256xf32>
    %c4 = arith.constant 4 : index
    %c0_14 = arith.constant 0 : index
    %c0_15 = arith.constant 0 : index
    %40 = vector.load %arg3[%c4, %c0_14, %c0_15] : memref<9x8x1xf32, #tpu.memory_space<vmem>>, vector<1x8x1xf32>
    %41 = vector.shape_cast %40 : vector<1x8x1xf32> to vector<8x1xf32>
    %42 = vector.broadcast %41 : vector<8x1xf32> to vector<8x256xf32>
    %43 = arith.mulf %39, %42 : vector<8x256xf32>
    %44 = arith.addf %37, %43 : vector<8x256xf32>
    %c351_i32 = arith.constant 351 : i32
    %45 = tpu.dynamic_rotate %1 by %c351_i32 dim 1 : vector<8x384xf32>, i32 -> vector<8x384xf32>
    %46 = vector.extract_strided_slice %45 {offsets = [0, 0], sizes = [8, 256], strides = [1, 1]} : vector<8x384xf32> to vector<8x256xf32>
    %c7 = arith.constant 7 : index
    %c0_16 = arith.constant 0 : index
    %c0_17 = arith.constant 0 : index
    %47 = vector.load %arg3[%c7, %c0_16, %c0_17] : memref<9x8x1xf32, #tpu.memory_space<vmem>>, vector<1x8x1xf32>
    %48 = vector.shape_cast %47 : vector<1x8x1xf32> to vector<8x1xf32>
    %49 = vector.broadcast %48 : vector<8x1xf32> to vector<8x256xf32>
    %50 = arith.mulf %46, %49 : vector<8x256xf32>
    %51 = arith.addf %44, %50 : vector<8x256xf32>
    %c2 = arith.constant 2 : index
    %c0_18 = arith.constant 0 : index
    %c0_19 = arith.constant 0 : index
    %52 = vector.load %arg2[%c2, %c0_18, %c0_19] : memref<3x1x256xf32, #tpu.memory_space<vmem>>, vector<1x1x256xf32>
    %53 = vector.shape_cast %52 : vector<1x1x256xf32> to vector<1x256xf32>
    %c382_i32 = arith.constant 382 : i32
    %54 = tpu.dynamic_rotate %1 by %c382_i32 dim 1 : vector<8x384xf32>, i32 -> vector<8x384xf32>
    %55 = vector.extract_strided_slice %54 {offsets = [0, 0], sizes = [8, 256], strides = [1, 1]} : vector<8x384xf32> to vector<8x256xf32>
    %56 = vector.broadcast %53 : vector<1x256xf32> to vector<8x256xf32>
    %57 = arith.mulf %55, %56 : vector<8x256xf32>
    %c2_20 = arith.constant 2 : index
    %c0_21 = arith.constant 0 : index
    %c0_22 = arith.constant 0 : index
    %58 = vector.load %arg3[%c2_20, %c0_21, %c0_22] : memref<9x8x1xf32, #tpu.memory_space<vmem>>, vector<1x8x1xf32>
    %59 = vector.shape_cast %58 : vector<1x8x1xf32> to vector<8x1xf32>
    %60 = vector.broadcast %59 : vector<8x1xf32> to vector<8x256xf32>
    %61 = arith.mulf %57, %60 : vector<8x256xf32>
    %62 = arith.addf %51, %61 : vector<8x256xf32>
    %c366_i32 = arith.constant 366 : i32
    %63 = tpu.dynamic_rotate %1 by %c366_i32 dim 1 : vector<8x384xf32>, i32 -> vector<8x384xf32>
    %64 = vector.extract_strided_slice %63 {offsets = [0, 0], sizes = [8, 256], strides = [1, 1]} : vector<8x384xf32> to vector<8x256xf32>
    %65 = vector.broadcast %53 : vector<1x256xf32> to vector<8x256xf32>
    %66 = arith.mulf %64, %65 : vector<8x256xf32>
    %c5 = arith.constant 5 : index
    %c0_23 = arith.constant 0 : index
    %c0_24 = arith.constant 0 : index
    %67 = vector.load %arg3[%c5, %c0_23, %c0_24] : memref<9x8x1xf32, #tpu.memory_space<vmem>>, vector<1x8x1xf32>
    %68 = vector.shape_cast %67 : vector<1x8x1xf32> to vector<8x1xf32>
    %69 = vector.broadcast %68 : vector<8x1xf32> to vector<8x256xf32>
    %70 = arith.mulf %66, %69 : vector<8x256xf32>
    %71 = arith.addf %62, %70 : vector<8x256xf32>
    %c350_i32 = arith.constant 350 : i32
    %72 = tpu.dynamic_rotate %1 by %c350_i32 dim 1 : vector<8x384xf32>, i32 -> vector<8x384xf32>
    %73 = vector.extract_strided_slice %72 {offsets = [0, 0], sizes = [8, 256], strides = [1, 1]} : vector<8x384xf32> to vector<8x256xf32>
    %74 = vector.broadcast %53 : vector<1x256xf32> to vector<8x256xf32>
    %75 = arith.mulf %73, %74 : vector<8x256xf32>
    %c8 = arith.constant 8 : index
    %c0_25 = arith.constant 0 : index
    %c0_26 = arith.constant 0 : index
    %76 = vector.load %arg3[%c8, %c0_25, %c0_26] : memref<9x8x1xf32, #tpu.memory_space<vmem>>, vector<1x8x1xf32>
    %77 = vector.shape_cast %76 : vector<1x8x1xf32> to vector<8x1xf32>
    %78 = vector.broadcast %77 : vector<8x1xf32> to vector<8x256xf32>
    %79 = arith.mulf %75, %78 : vector<8x256xf32>
    %80 = arith.addf %71, %79 : vector<8x256xf32>
    %c0_27 = arith.constant 0 : index
    %c0_28 = arith.constant 0 : index
    %81 = vector.load %arg4[%c0_27, %c0_28] : memref<8x1xf32, #tpu.memory_space<vmem>>, vector<8x1xf32>
    %82 = vector.broadcast %81 : vector<8x1xf32> to vector<8x256xf32>
    %83 = arith.addf %80, %82 : vector<8x256xf32>
    %cst_29 = arith.constant dense<0.000000e+00> : vector<8xf32>
    %84 = vector.multi_reduction <add>, %83, %cst_29 [1] : vector<8x256xf32> to vector<8xf32>
    %85 = vector.shape_cast %84 : vector<8xf32> to vector<8x1xf32>
    %86 = arith.mulf %83, %83 : vector<8x256xf32>
    %cst_30 = arith.constant dense<0.000000e+00> : vector<8xf32>
    %87 = vector.multi_reduction <add>, %86, %cst_30 [1] : vector<8x256xf32> to vector<8xf32>
    %88 = vector.shape_cast %87 : vector<8xf32> to vector<8x1xf32>
    %cst_31 = arith.constant 3.906250e-03 : f32
    %89 = vector.broadcast %cst_31 : f32 to vector<8x1xf32>
    %90 = arith.mulf %85, %89 : vector<8x1xf32>
    %cst_32 = arith.constant 3.906250e-03 : f32
    %91 = vector.broadcast %cst_32 : f32 to vector<8x1xf32>
    %92 = arith.mulf %88, %91 : vector<8x1xf32>
    %93 = arith.mulf %90, %90 : vector<8x1xf32>
    %94 = arith.subf %92, %93 : vector<8x1xf32>
    %cst_33 = arith.constant 0.000000e+00 : f32
    %95 = vector.broadcast %cst_33 : f32 to vector<8x1xf32>
    %96 = arith.maximumf %94, %95 : vector<8x1xf32>
    %97 = vector.broadcast %90 : vector<8x1xf32> to vector<8x256xf32>
    %98 = arith.subf %83, %97 : vector<8x256xf32>
    %cst_34 = arith.constant 9.99999974E-6 : f32
    %99 = vector.broadcast %cst_34 : f32 to vector<8x1xf32>
    %100 = arith.addf %96, %99 : vector<8x1xf32>
    %101 = math.rsqrt %100 : vector<8x1xf32>
    %102 = vector.broadcast %101 : vector<8x1xf32> to vector<8x256xf32>
    %103 = arith.mulf %98, %102 : vector<8x256xf32>
    %c0_35 = arith.constant 0 : index
    %c0_36 = arith.constant 0 : index
    %104 = vector.load %arg5[%c0_35, %c0_36] : memref<8x1xf32, #tpu.memory_space<vmem>>, vector<8x1xf32>
    %105 = vector.broadcast %104 : vector<8x1xf32> to vector<8x256xf32>
    %106 = arith.mulf %103, %105 : vector<8x256xf32>
    %c0_37 = arith.constant 0 : index
    %c0_38 = arith.constant 0 : index
    %107 = vector.load %arg6[%c0_37, %c0_38] : memref<8x1xf32, #tpu.memory_space<vmem>>, vector<8x1xf32>
    %108 = vector.broadcast %107 : vector<8x1xf32> to vector<8x256xf32>
    %109 = arith.addf %106, %108 : vector<8x256xf32>
    %c0_39 = arith.constant 0 : index
    %c0_40 = arith.constant 0 : index
    %110 = vector.load %arg7[%c0_39, %c0_40] : memref<16x8xf32, #tpu.memory_space<vmem>>, vector<16x8xf32>
    %cst_41 = arith.constant dense<0.000000e+00> : vector<16x256xf32>
    %111 = tpu.matmul %110, %109, %cst_41 {dimension_numbers = #tpu.dot_dimension_numbers<[1], [0], [0], [1], [0, 0, 1, 1], [], []>} : vector<16x8xf32>, vector<8x256xf32>, vector<16x256xf32> -> vector<16x256xf32>
    %c0_42 = arith.constant 0 : index
    %c0_43 = arith.constant 0 : index
    %112 = vector.load %arg8[%c0_42, %c0_43] : memref<16x1xf32, #tpu.memory_space<vmem>>, vector<16x1xf32>
    %113 = vector.broadcast %112 : vector<16x1xf32> to vector<16x256xf32>
    %114 = arith.addf %111, %113 : vector<16x256xf32>
    %cst_44 = arith.constant 5.000000e-01 : f32
    %115 = vector.broadcast %cst_44 : f32 to vector<16x256xf32>
    %116 = arith.mulf %115, %114 : vector<16x256xf32>
    %cst_45 = arith.constant 0.707106769 : f32
    %117 = vector.broadcast %cst_45 : f32 to vector<16x256xf32>
    %118 = arith.mulf %114, %117 : vector<16x256xf32>
    %119 = math.absf %118 : vector<16x256xf32>
    %cst_46 = arith.constant 0.327591091 : f32
    %120 = vector.broadcast %cst_46 : f32 to vector<16x256xf32>
    %121 = arith.mulf %120, %119 : vector<16x256xf32>
    %cst_47 = arith.constant 1.000000e+00 : f32
    %122 = vector.broadcast %cst_47 : f32 to vector<16x256xf32>
    %123 = arith.addf %122, %121 : vector<16x256xf32>
    %124 = tpu.reciprocal %123 {approx = true} : vector<16x256xf32> -> vector<16x256xf32>
    %cst_48 = arith.constant 1.06140542 : f32
    %125 = vector.broadcast %cst_48 : f32 to vector<16x256xf32>
    %126 = arith.mulf %125, %124 : vector<16x256xf32>
    %cst_49 = arith.constant -1.45315206 : f32
    %127 = vector.broadcast %cst_49 : f32 to vector<16x256xf32>
    %128 = arith.addf %126, %127 : vector<16x256xf32>
    %129 = arith.mulf %128, %124 : vector<16x256xf32>
    %cst_50 = arith.constant 1.42141378 : f32
    %130 = vector.broadcast %cst_50 : f32 to vector<16x256xf32>
    %131 = arith.addf %129, %130 : vector<16x256xf32>
    %132 = arith.mulf %131, %124 : vector<16x256xf32>
    %cst_51 = arith.constant -0.284496725 : f32
    %133 = vector.broadcast %cst_51 : f32 to vector<16x256xf32>
    %134 = arith.addf %132, %133 : vector<16x256xf32>
    %135 = arith.mulf %134, %124 : vector<16x256xf32>
    %cst_52 = arith.constant 0.254829586 : f32
    %136 = vector.broadcast %cst_52 : f32 to vector<16x256xf32>
    %137 = arith.addf %135, %136 : vector<16x256xf32>
    %138 = arith.mulf %137, %124 : vector<16x256xf32>
    %cst_53 = arith.constant 0.000000e+00 : f32
    %139 = vector.broadcast %cst_53 : f32 to vector<16x256xf32>
    %140 = arith.subf %139, %119 : vector<16x256xf32>
    %141 = arith.mulf %140, %119 : vector<16x256xf32>
    %142 = math.exp %141 : vector<16x256xf32>
    %143 = arith.mulf %138, %142 : vector<16x256xf32>
    %cst_54 = arith.constant 1.000000e+00 : f32
    %144 = vector.broadcast %cst_54 : f32 to vector<16x256xf32>
    %145 = arith.subf %144, %143 : vector<16x256xf32>
    %cst_55 = arith.constant 0.000000e+00 : f32
    %146 = vector.broadcast %cst_55 : f32 to vector<16x256xf32>
    %147 = arith.cmpf oge, %118, %146 : vector<16x256xf32>
    %cst_56 = arith.constant 0.000000e+00 : f32
    %148 = vector.broadcast %cst_56 : f32 to vector<16x256xf32>
    %149 = arith.subf %148, %145 : vector<16x256xf32>
    %150 = arith.select %147, %145, %149 : vector<16x256xi1>, vector<16x256xf32>
    %cst_57 = arith.constant 1.000000e+00 : f32
    %151 = vector.broadcast %cst_57 : f32 to vector<16x256xf32>
    %152 = arith.addf %151, %150 : vector<16x256xf32>
    %153 = arith.mulf %116, %152 : vector<16x256xf32>
    %c0_58 = arith.constant 0 : index
    %c0_59 = arith.constant 0 : index
    %154 = vector.load %arg9[%c0_58, %c0_59] : memref<8x16xf32, #tpu.memory_space<vmem>>, vector<8x16xf32>
    %cst_60 = arith.constant dense<0.000000e+00> : vector<8x256xf32>
    %155 = tpu.matmul %154, %153, %cst_60 {dimension_numbers = #tpu.dot_dimension_numbers<[1], [0], [0], [1], [0, 0, 1, 1], [], []>} : vector<8x16xf32>, vector<16x256xf32>, vector<8x256xf32> -> vector<8x256xf32>
    %c0_61 = arith.constant 0 : index
    %c0_62 = arith.constant 0 : index
    %156 = vector.load %arg10[%c0_61, %c0_62] : memref<8x1xf32, #tpu.memory_space<vmem>>, vector<8x1xf32>
    %157 = vector.broadcast %156 : vector<8x1xf32> to vector<8x256xf32>
    %158 = arith.addf %155, %157 : vector<8x256xf32>
    %c367_i32_63 = arith.constant 367 : i32
    %159 = tpu.dynamic_rotate %1 by %c367_i32_63 dim 1 : vector<8x384xf32>, i32 -> vector<8x384xf32>
    %160 = vector.extract_strided_slice %159 {offsets = [0, 0], sizes = [8, 256], strides = [1, 1]} : vector<8x384xf32> to vector<8x256xf32>
    %161 = arith.addf %158, %160 : vector<8x256xf32>
    %c0_64 = arith.constant 0 : index
    %c0_65 = arith.constant 0 : index
    %c0_66 = arith.constant 0 : index
    %162 = vector.load %arg11[%c0_64, %c0_65, %c0_66] : memref<1x8x256xf32, #tpu.memory_space<vmem>>, vector<1x8x256xf32>
    %163 = vector.shape_cast %162 : vector<1x8x256xf32> to vector<8x256xf32>
    %164 = vector.shape_cast %161 : vector<8x256xf32> to vector<1x8x256xf32>
    tpu.vector_store %arg11[%c0_64, %c0_65, %c0_66], %164 {strides = array<i32>} : memref<1x8x256xf32, #tpu.memory_space<vmem>>, vector<1x8x256xf32>,
    return
  }
  func.func @transform_0(%arg0: i32) -> (i32, i32, i32) {
    %c0_i32 = arith.constant 0 : i32
    %c0_i32_0 = arith.constant 0 : i32
    %c0_i32_1 = arith.constant 0 : i32
    return %arg0, %c0_i32, %c0_i32_0 : i32, i32, i32
  }
  func.func @transform_1(%arg0: i32) -> (i32, i32, i32) {
    %c0_i32 = arith.constant 0 : i32
    %c0_i32_0 = arith.constant 0 : i32
    %c0_i32_1 = arith.constant 0 : i32
    %c0_i32_2 = arith.constant 0 : i32
    return %c0_i32, %c0_i32_0, %c0_i32_1 : i32, i32, i32
  }
  func.func @transform_2(%arg0: i32) -> (i32, i32, i32) {
    %c0_i32 = arith.constant 0 : i32
    %c0_i32_0 = arith.constant 0 : i32
    %c0_i32_1 = arith.constant 0 : i32
    %c0_i32_2 = arith.constant 0 : i32
    return %c0_i32, %c0_i32_0, %c0_i32_1 : i32, i32, i32
  }
  func.func @transform_3(%arg0: i32) -> (i32, i32) {
    %c0_i32 = arith.constant 0 : i32
    %c0_i32_0 = arith.constant 0 : i32
    %c0_i32_1 = arith.constant 0 : i32
    return %c0_i32, %c0_i32_0 : i32, i32
  }
  func.func @transform_4(%arg0: i32) -> (i32, i32) {
    %c0_i32 = arith.constant 0 : i32
    %c0_i32_0 = arith.constant 0 : i32
    %c0_i32_1 = arith.constant 0 : i32
    return %c0_i32, %c0_i32_0 : i32, i32
  }
  func.func @transform_5(%arg0: i32) -> (i32, i32) {
    %c0_i32 = arith.constant 0 : i32
    %c0_i32_0 = arith.constant 0 : i32
    %c0_i32_1 = arith.constant 0 : i32
    return %c0_i32, %c0_i32_0 : i32, i32
  }
  func.func @transform_6(%arg0: i32) -> (i32, i32) {
    %c0_i32 = arith.constant 0 : i32
    %c0_i32_0 = arith.constant 0 : i32
    %c0_i32_1 = arith.constant 0 : i32
    return %c0_i32, %c0_i32_0 : i32, i32
  }
  func.func @transform_7(%arg0: i32) -> (i32, i32) {
    %c0_i32 = arith.constant 0 : i32
    %c0_i32_0 = arith.constant 0 : i32
    %c0_i32_1 = arith.constant 0 : i32
    return %c0_i32, %c0_i32_0 : i32, i32
  }
  func.func @transform_8(%arg0: i32) -> (i32, i32) {
    %c0_i32 = arith.constant 0 : i32
    %c0_i32_0 = arith.constant 0 : i32
    %c0_i32_1 = arith.constant 0 : i32
    return %c0_i32, %c0_i32_0 : i32, i32
  }
  func.func @transform_9(%arg0: i32) -> (i32, i32) {
    %c0_i32 = arith.constant 0 : i32
    %c0_i32_0 = arith.constant 0 : i32
    %c0_i32_1 = arith.constant 0 : i32
    return %c0_i32, %c0_i32_0 : i32, i32
  }
  func.func @transform_10(%arg0: i32) -> (i32, i32, i32) {
    %c0_i32 = arith.constant 0 : i32
    %c0_i32_0 = arith.constant 0 : i32
    %c0_i32_1 = arith.constant 0 : i32
    return %arg0, %c0_i32, %c0_i32_0 : i32, i32, i32
  }
}

module attributes {stable_mosaic.version = 11 : i64} {
  func.func @down_block_kernel(%arg0: i32, %arg1: memref<1x8x64xf32, #tpu.memory_space<vmem>>, %arg2: memref<1x8x64xf32, #tpu.memory_space<vmem>>, %arg3: memref<8x1xf32, #tpu.memory_space<vmem>>, %arg4: memref<8x1xf32, #tpu.memory_space<vmem>>, %arg5: memref<16x8xf32, #tpu.memory_space<vmem>>, %arg6: memref<16x1xf32, #tpu.memory_space<vmem>>, %arg7: memref<16x16xf32, #tpu.memory_space<vmem>>, %arg8: memref<16x1xf32, #tpu.memory_space<vmem>>, %arg9: memref<16x8xf32, #tpu.memory_space<vmem>>, %arg10: memref<16x1xf32, #tpu.memory_space<vmem>>, %arg11: memref<1x16x64xf32, #tpu.memory_space<vmem>>) attributes {dimension_semantics = [#tpu.dimension_semantics<parallel>], iteration_bounds = array<i64: 2>, scalar_prefetch = 0 : i64, scratch_operands = 0 : i64, tpu.core_type = #tpu.core_type<tc>, window_params = [{transform_indices = @transform_0, window_bounds = array<i64: 1, 8, 64>}, {transform_indices = @transform_1, window_bounds = array<i64: 1, 8, 64>}, {pipeline_mode = #tpu.pipeline_mode<synchronous>, transform_indices = @transform_2, window_bounds = array<i64: 8, 1>}, {pipeline_mode = #tpu.pipeline_mode<synchronous>, transform_indices = @transform_3, window_bounds = array<i64: 8, 1>}, {pipeline_mode = #tpu.pipeline_mode<synchronous>, transform_indices = @transform_4, window_bounds = array<i64: 16, 8>}, {pipeline_mode = #tpu.pipeline_mode<synchronous>, transform_indices = @transform_5, window_bounds = array<i64: 16, 1>}, {pipeline_mode = #tpu.pipeline_mode<synchronous>, transform_indices = @transform_6, window_bounds = array<i64: 16, 16>}, {pipeline_mode = #tpu.pipeline_mode<synchronous>, transform_indices = @transform_7, window_bounds = array<i64: 16, 1>}, {pipeline_mode = #tpu.pipeline_mode<synchronous>, transform_indices = @transform_8, window_bounds = array<i64: 16, 8>}, {pipeline_mode = #tpu.pipeline_mode<synchronous>, transform_indices = @transform_9, window_bounds = array<i64: 16, 1>}, {transform_indices = @transform_10, window_bounds = array<i64: 1, 16, 64>}]} {
    %c0 = arith.constant 0 : index
    %c0_0 = arith.constant 0 : index
    %c0_1 = arith.constant 0 : index
    %0 = vector.load %arg1[%c0, %c0_0, %c0_1] : memref<1x8x64xf32, #tpu.memory_space<vmem>>, vector<1x8x64xf32>
    %1 = vector.shape_cast %0 : vector<1x8x64xf32> to vector<8x64xf32>
    %cst = arith.constant dense<0.000000e+00> : vector<8xf32>
    %2 = vector.multi_reduction <add>, %1, %cst [1] : vector<8x64xf32> to vector<8xf32>
    %3 = vector.shape_cast %2 : vector<8xf32> to vector<8x1xf32>
    %4 = arith.mulf %1, %1 : vector<8x64xf32>
    %cst_2 = arith.constant dense<0.000000e+00> : vector<8xf32>
    %5 = vector.multi_reduction <add>, %4, %cst_2 [1] : vector<8x64xf32> to vector<8xf32>
    %6 = vector.shape_cast %5 : vector<8xf32> to vector<8x1xf32>
    %cst_3 = arith.constant 1.562500e-02 : f32
    %7 = vector.broadcast %cst_3 : f32 to vector<8x1xf32>
    %8 = arith.mulf %3, %7 : vector<8x1xf32>
    %cst_4 = arith.constant 1.562500e-02 : f32
    %9 = vector.broadcast %cst_4 : f32 to vector<8x1xf32>
    %10 = arith.mulf %6, %9 : vector<8x1xf32>
    %11 = arith.mulf %8, %8 : vector<8x1xf32>
    %12 = arith.subf %10, %11 : vector<8x1xf32>
    %cst_5 = arith.constant 0.000000e+00 : f32
    %13 = vector.broadcast %cst_5 : f32 to vector<8x1xf32>
    %14 = arith.maximumf %12, %13 : vector<8x1xf32>
    %15 = vector.broadcast %8 : vector<8x1xf32> to vector<8x64xf32>
    %16 = arith.subf %1, %15 : vector<8x64xf32>
    %cst_6 = arith.constant 9.99999974E-6 : f32
    %17 = vector.broadcast %cst_6 : f32 to vector<8x1xf32>
    %18 = arith.addf %14, %17 : vector<8x1xf32>
    %19 = math.rsqrt %18 : vector<8x1xf32>
    %20 = vector.broadcast %19 : vector<8x1xf32> to vector<8x64xf32>
    %21 = arith.mulf %16, %20 : vector<8x64xf32>
    %c0_7 = arith.constant 0 : index
    %c0_8 = arith.constant 0 : index
    %22 = vector.load %arg3[%c0_7, %c0_8] : memref<8x1xf32, #tpu.memory_space<vmem>>, vector<8x1xf32>
    %23 = vector.broadcast %22 : vector<8x1xf32> to vector<8x64xf32>
    %24 = arith.mulf %21, %23 : vector<8x64xf32>
    %c0_9 = arith.constant 0 : index
    %c0_10 = arith.constant 0 : index
    %25 = vector.load %arg4[%c0_9, %c0_10] : memref<8x1xf32, #tpu.memory_space<vmem>>, vector<8x1xf32>
    %26 = vector.broadcast %25 : vector<8x1xf32> to vector<8x64xf32>
    %27 = arith.addf %24, %26 : vector<8x64xf32>
    %c0_11 = arith.constant 0 : index
    %c0_12 = arith.constant 0 : index
    %28 = vector.load %arg5[%c0_11, %c0_12] : memref<16x8xf32, #tpu.memory_space<vmem>>, vector<16x8xf32>
    %cst_13 = arith.constant dense<0.000000e+00> : vector<16x64xf32>
    %29 = tpu.matmul %28, %27, %cst_13 {dimension_numbers = #tpu.dot_dimension_numbers<[1], [0], [0], [1], [0, 0, 1, 1], [], []>} : vector<16x8xf32>, vector<8x64xf32>, vector<16x64xf32> -> vector<16x64xf32>
    %c0_14 = arith.constant 0 : index
    %c0_15 = arith.constant 0 : index
    %30 = vector.load %arg6[%c0_14, %c0_15] : memref<16x1xf32, #tpu.memory_space<vmem>>, vector<16x1xf32>
    %31 = vector.broadcast %30 : vector<16x1xf32> to vector<16x64xf32>
    %32 = arith.addf %29, %31 : vector<16x64xf32>
    %cst_16 = arith.constant 5.000000e-01 : f32
    %33 = vector.broadcast %cst_16 : f32 to vector<16x64xf32>
    %34 = arith.mulf %33, %32 : vector<16x64xf32>
    %cst_17 = arith.constant 0.707106769 : f32
    %35 = vector.broadcast %cst_17 : f32 to vector<16x64xf32>
    %36 = arith.mulf %32, %35 : vector<16x64xf32>
    %37 = math.absf %36 : vector<16x64xf32>
    %cst_18 = arith.constant 0.327591091 : f32
    %38 = vector.broadcast %cst_18 : f32 to vector<16x64xf32>
    %39 = arith.mulf %38, %37 : vector<16x64xf32>
    %cst_19 = arith.constant 1.000000e+00 : f32
    %40 = vector.broadcast %cst_19 : f32 to vector<16x64xf32>
    %41 = arith.addf %40, %39 : vector<16x64xf32>
    %42 = tpu.reciprocal %41 {approx = true} : vector<16x64xf32> -> vector<16x64xf32>
    %cst_20 = arith.constant 1.06140542 : f32
    %43 = vector.broadcast %cst_20 : f32 to vector<16x64xf32>
    %44 = arith.mulf %43, %42 : vector<16x64xf32>
    %cst_21 = arith.constant -1.45315206 : f32
    %45 = vector.broadcast %cst_21 : f32 to vector<16x64xf32>
    %46 = arith.addf %44, %45 : vector<16x64xf32>
    %47 = arith.mulf %46, %42 : vector<16x64xf32>
    %cst_22 = arith.constant 1.42141378 : f32
    %48 = vector.broadcast %cst_22 : f32 to vector<16x64xf32>
    %49 = arith.addf %47, %48 : vector<16x64xf32>
    %50 = arith.mulf %49, %42 : vector<16x64xf32>
    %cst_23 = arith.constant -0.284496725 : f32
    %51 = vector.broadcast %cst_23 : f32 to vector<16x64xf32>
    %52 = arith.addf %50, %51 : vector<16x64xf32>
    %53 = arith.mulf %52, %42 : vector<16x64xf32>
    %cst_24 = arith.constant 0.254829586 : f32
    %54 = vector.broadcast %cst_24 : f32 to vector<16x64xf32>
    %55 = arith.addf %53, %54 : vector<16x64xf32>
    %56 = arith.mulf %55, %42 : vector<16x64xf32>
    %cst_25 = arith.constant 0.000000e+00 : f32
    %57 = vector.broadcast %cst_25 : f32 to vector<16x64xf32>
    %58 = arith.subf %57, %37 : vector<16x64xf32>
    %59 = arith.mulf %58, %37 : vector<16x64xf32>
    %60 = math.exp %59 : vector<16x64xf32>
    %61 = arith.mulf %56, %60 : vector<16x64xf32>
    %cst_26 = arith.constant 1.000000e+00 : f32
    %62 = vector.broadcast %cst_26 : f32 to vector<16x64xf32>
    %63 = arith.subf %62, %61 : vector<16x64xf32>
    %cst_27 = arith.constant 0.000000e+00 : f32
    %64 = vector.broadcast %cst_27 : f32 to vector<16x64xf32>
    %65 = arith.cmpf oge, %36, %64 : vector<16x64xf32>
    %cst_28 = arith.constant 0.000000e+00 : f32
    %66 = vector.broadcast %cst_28 : f32 to vector<16x64xf32>
    %67 = arith.subf %66, %63 : vector<16x64xf32>
    %68 = arith.select %65, %63, %67 : vector<16x64xi1>, vector<16x64xf32>
    %cst_29 = arith.constant 1.000000e+00 : f32
    %69 = vector.broadcast %cst_29 : f32 to vector<16x64xf32>
    %70 = arith.addf %69, %68 : vector<16x64xf32>
    %71 = arith.mulf %34, %70 : vector<16x64xf32>
    %c0_30 = arith.constant 0 : index
    %c0_31 = arith.constant 0 : index
    %72 = vector.load %arg7[%c0_30, %c0_31] : memref<16x16xf32, #tpu.memory_space<vmem>>, vector<16x16xf32>
    %cst_32 = arith.constant dense<0.000000e+00> : vector<16x64xf32>
    %73 = tpu.matmul %72, %71, %cst_32 {dimension_numbers = #tpu.dot_dimension_numbers<[1], [0], [0], [1], [0, 0, 1, 1], [], []>} : vector<16x16xf32>, vector<16x64xf32>, vector<16x64xf32> -> vector<16x64xf32>
    %c0_33 = arith.constant 0 : index
    %c0_34 = arith.constant 0 : index
    %74 = vector.load %arg8[%c0_33, %c0_34] : memref<16x1xf32, #tpu.memory_space<vmem>>, vector<16x1xf32>
    %75 = vector.broadcast %74 : vector<16x1xf32> to vector<16x64xf32>
    %76 = arith.addf %73, %75 : vector<16x64xf32>
    %c0_35 = arith.constant 0 : index
    %c0_36 = arith.constant 0 : index
    %77 = vector.load %arg9[%c0_35, %c0_36] : memref<16x8xf32, #tpu.memory_space<vmem>>, vector<16x8xf32>
    %c0_37 = arith.constant 0 : index
    %c0_38 = arith.constant 0 : index
    %c0_39 = arith.constant 0 : index
    %78 = vector.load %arg2[%c0_37, %c0_38, %c0_39] : memref<1x8x64xf32, #tpu.memory_space<vmem>>, vector<1x8x64xf32>
    %79 = vector.shape_cast %78 : vector<1x8x64xf32> to vector<8x64xf32>
    %cst_40 = arith.constant dense<0.000000e+00> : vector<16x64xf32>
    %80 = tpu.matmul %77, %79, %cst_40 {dimension_numbers = #tpu.dot_dimension_numbers<[1], [0], [0], [1], [0, 0, 1, 1], [], []>} : vector<16x8xf32>, vector<8x64xf32>, vector<16x64xf32> -> vector<16x64xf32>
    %c0_41 = arith.constant 0 : index
    %c0_42 = arith.constant 0 : index
    %81 = vector.load %arg10[%c0_41, %c0_42] : memref<16x1xf32, #tpu.memory_space<vmem>>, vector<16x1xf32>
    %82 = vector.broadcast %81 : vector<16x1xf32> to vector<16x64xf32>
    %83 = arith.addf %80, %82 : vector<16x64xf32>
    %84 = arith.addf %76, %83 : vector<16x64xf32>
    %c0_43 = arith.constant 0 : index
    %c0_44 = arith.constant 0 : index
    %c0_45 = arith.constant 0 : index
    %85 = vector.load %arg11[%c0_43, %c0_44, %c0_45] : memref<1x16x64xf32, #tpu.memory_space<vmem>>, vector<1x16x64xf32>
    %86 = vector.shape_cast %85 : vector<1x16x64xf32> to vector<16x64xf32>
    %87 = vector.shape_cast %84 : vector<16x64xf32> to vector<1x16x64xf32>
    tpu.vector_store %arg11[%c0_43, %c0_44, %c0_45], %87 {strides = array<i32>} : memref<1x16x64xf32, #tpu.memory_space<vmem>>, vector<1x16x64xf32>,
    return
  }
  func.func @transform_0(%arg0: i32) -> (i32, i32, i32) {
    %c0_i32 = arith.constant 0 : i32
    %c0_i32_0 = arith.constant 0 : i32
    %c0_i32_1 = arith.constant 0 : i32
    return %arg0, %c0_i32, %c0_i32_0 : i32, i32, i32
  }
  func.func @transform_1(%arg0: i32) -> (i32, i32, i32) {
    %c0_i32 = arith.constant 0 : i32
    %c0_i32_0 = arith.constant 0 : i32
    %c0_i32_1 = arith.constant 0 : i32
    return %arg0, %c0_i32, %c0_i32_0 : i32, i32, i32
  }
  func.func @transform_2(%arg0: i32) -> (i32, i32) {
    %c0_i32 = arith.constant 0 : i32
    %c0_i32_0 = arith.constant 0 : i32
    %c0_i32_1 = arith.constant 0 : i32
    return %c0_i32, %c0_i32_0 : i32, i32
  }
  func.func @transform_3(%arg0: i32) -> (i32, i32) {
    %c0_i32 = arith.constant 0 : i32
    %c0_i32_0 = arith.constant 0 : i32
    %c0_i32_1 = arith.constant 0 : i32
    return %c0_i32, %c0_i32_0 : i32, i32
  }
  func.func @transform_4(%arg0: i32) -> (i32, i32) {
    %c0_i32 = arith.constant 0 : i32
    %c0_i32_0 = arith.constant 0 : i32
    %c0_i32_1 = arith.constant 0 : i32
    return %c0_i32, %c0_i32_0 : i32, i32
  }
  func.func @transform_5(%arg0: i32) -> (i32, i32) {
    %c0_i32 = arith.constant 0 : i32
    %c0_i32_0 = arith.constant 0 : i32
    %c0_i32_1 = arith.constant 0 : i32
    return %c0_i32, %c0_i32_0 : i32, i32
  }
  func.func @transform_6(%arg0: i32) -> (i32, i32) {
    %c0_i32 = arith.constant 0 : i32
    %c0_i32_0 = arith.constant 0 : i32
    %c0_i32_1 = arith.constant 0 : i32
    return %c0_i32, %c0_i32_0 : i32, i32
  }
  func.func @transform_7(%arg0: i32) -> (i32, i32) {
    %c0_i32 = arith.constant 0 : i32
    %c0_i32_0 = arith.constant 0 : i32
    %c0_i32_1 = arith.constant 0 : i32
    return %c0_i32, %c0_i32_0 : i32, i32
  }
  func.func @transform_8(%arg0: i32) -> (i32, i32) {
    %c0_i32 = arith.constant 0 : i32
    %c0_i32_0 = arith.constant 0 : i32
    %c0_i32_1 = arith.constant 0 : i32
    return %c0_i32, %c0_i32_0 : i32, i32
  }
  func.func @transform_9(%arg0: i32) -> (i32, i32) {
    %c0_i32 = arith.constant 0 : i32
    %c0_i32_0 = arith.constant 0 : i32
    %c0_i32_1 = arith.constant 0 : i32
    return %c0_i32, %c0_i32_0 : i32, i32
  }
  func.func @transform_10(%arg0: i32) -> (i32, i32, i32) {
    %c0_i32 = arith.constant 0 : i32
    %c0_i32_0 = arith.constant 0 : i32
    %c0_i32_1 = arith.constant 0 : i32
    return %arg0, %c0_i32, %c0_i32_0 : i32, i32, i32
  }
}

module attributes {stable_mosaic.version = 11 : i64} {
  func.func @mednext_block_kernel(%arg0: i32, %arg1: memref<1x16x128xf32, #tpu.memory_space<vmem>>, %arg2: memref<3x1x64xf32, #tpu.memory_space<vmem>>, %arg3: memref<9x16x1xf32, #tpu.memory_space<vmem>>, %arg4: memref<16x1xf32, #tpu.memory_space<vmem>>, %arg5: memref<16x1xf32, #tpu.memory_space<vmem>>, %arg6: memref<16x1xf32, #tpu.memory_space<vmem>>, %arg7: memref<32x16xf32, #tpu.memory_space<vmem>>, %arg8: memref<32x1xf32, #tpu.memory_space<vmem>>, %arg9: memref<16x32xf32, #tpu.memory_space<vmem>>, %arg10: memref<16x1xf32, #tpu.memory_space<vmem>>, %arg11: memref<1x16x64xf32, #tpu.memory_space<vmem>>) attributes {dimension_semantics = [#tpu.dimension_semantics<parallel>], iteration_bounds = array<i64: 2>, scalar_prefetch = 0 : i64, scratch_operands = 0 : i64, tpu.core_type = #tpu.core_type<tc>, window_params = [{transform_indices = @transform_0, window_bounds = array<i64: 1, 16, 128>}, {pipeline_mode = #tpu.pipeline_mode<synchronous>, transform_indices = @transform_1, window_bounds = array<i64: 3, 1, 64>}, {pipeline_mode = #tpu.pipeline_mode<synchronous>, transform_indices = @transform_2, window_bounds = array<i64: 9, 16, 1>}, {pipeline_mode = #tpu.pipeline_mode<synchronous>, transform_indices = @transform_3, window_bounds = array<i64: 16, 1>}, {pipeline_mode = #tpu.pipeline_mode<synchronous>, transform_indices = @transform_4, window_bounds = array<i64: 16, 1>}, {pipeline_mode = #tpu.pipeline_mode<synchronous>, transform_indices = @transform_5, window_bounds = array<i64: 16, 1>}, {pipeline_mode = #tpu.pipeline_mode<synchronous>, transform_indices = @transform_6, window_bounds = array<i64: 32, 16>}, {pipeline_mode = #tpu.pipeline_mode<synchronous>, transform_indices = @transform_7, window_bounds = array<i64: 32, 1>}, {pipeline_mode = #tpu.pipeline_mode<synchronous>, transform_indices = @transform_8, window_bounds = array<i64: 16, 32>}, {pipeline_mode = #tpu.pipeline_mode<synchronous>, transform_indices = @transform_9, window_bounds = array<i64: 16, 1>}, {transform_indices = @transform_10, window_bounds = array<i64: 1, 16, 64>}]} {
    %c0 = arith.constant 0 : index
    %c0_0 = arith.constant 0 : index
    %c0_1 = arith.constant 0 : index
    %0 = vector.load %arg1[%c0, %c0_0, %c0_1] : memref<1x16x128xf32, #tpu.memory_space<vmem>>, vector<1x16x128xf32>
    %1 = vector.shape_cast %0 : vector<1x16x128xf32> to vector<16x128xf32>
    %cst = arith.constant 0.000000e+00 : f32
    %2 = vector.broadcast %cst : f32 to vector<16x64xf32>
    %c0_2 = arith.constant 0 : index
    %c0_3 = arith.constant 0 : index
    %c0_4 = arith.constant 0 : index
    %3 = vector.load %arg2[%c0_2, %c0_3, %c0_4] : memref<3x1x64xf32, #tpu.memory_space<vmem>>, vector<1x1x64xf32>
    %4 = vector.shape_cast %3 : vector<1x1x64xf32> to vector<1x64xf32>
    %5 = vector.extract_strided_slice %1 {offsets = [0, 0], sizes = [16, 64], strides = [1, 1]} : vector<16x128xf32> to vector<16x64xf32>
    %6 = vector.broadcast %4 : vector<1x64xf32> to vector<16x64xf32>
    %7 = arith.mulf %5, %6 : vector<16x64xf32>
    %c0_5 = arith.constant 0 : index
    %c0_6 = arith.constant 0 : index
    %c0_7 = arith.constant 0 : index
    %8 = vector.load %arg3[%c0_5, %c0_6, %c0_7] : memref<9x16x1xf32, #tpu.memory_space<vmem>>, vector<1x16x1xf32>
    %9 = vector.shape_cast %8 : vector<1x16x1xf32> to vector<16x1xf32>
    %10 = vector.broadcast %9 : vector<16x1xf32> to vector<16x64xf32>
    %11 = arith.mulf %7, %10 : vector<16x64xf32>
    %12 = arith.addf %2, %11 : vector<16x64xf32>
    %c120_i32 = arith.constant 120 : i32
    %13 = tpu.dynamic_rotate %1 by %c120_i32 dim 1 : vector<16x128xf32>, i32 -> vector<16x128xf32>
    %14 = vector.extract_strided_slice %13 {offsets = [0, 0], sizes = [16, 64], strides = [1, 1]} : vector<16x128xf32> to vector<16x64xf32>
    %15 = vector.broadcast %4 : vector<1x64xf32> to vector<16x64xf32>
    %16 = arith.mulf %14, %15 : vector<16x64xf32>
    %c3 = arith.constant 3 : index
    %c0_8 = arith.constant 0 : index
    %c0_9 = arith.constant 0 : index
    %17 = vector.load %arg3[%c3, %c0_8, %c0_9] : memref<9x16x1xf32, #tpu.memory_space<vmem>>, vector<1x16x1xf32>
    %18 = vector.shape_cast %17 : vector<1x16x1xf32> to vector<16x1xf32>
    %19 = vector.broadcast %18 : vector<16x1xf32> to vector<16x64xf32>
    %20 = arith.mulf %16, %19 : vector<16x64xf32>
    %21 = arith.addf %12, %20 : vector<16x64xf32>
    %c112_i32 = arith.constant 112 : i32
    %22 = tpu.dynamic_rotate %1 by %c112_i32 dim 1 : vector<16x128xf32>, i32 -> vector<16x128xf32>
    %23 = vector.extract_strided_slice %22 {offsets = [0, 0], sizes = [16, 64], strides = [1, 1]} : vector<16x128xf32> to vector<16x64xf32>
    %24 = vector.broadcast %4 : vector<1x64xf32> to vector<16x64xf32>
    %25 = arith.mulf %23, %24 : vector<16x64xf32>
    %c6 = arith.constant 6 : index
    %c0_10 = arith.constant 0 : index
    %c0_11 = arith.constant 0 : index
    %26 = vector.load %arg3[%c6, %c0_10, %c0_11] : memref<9x16x1xf32, #tpu.memory_space<vmem>>, vector<1x16x1xf32>
    %27 = vector.shape_cast %26 : vector<1x16x1xf32> to vector<16x1xf32>
    %28 = vector.broadcast %27 : vector<16x1xf32> to vector<16x64xf32>
    %29 = arith.mulf %25, %28 : vector<16x64xf32>
    %30 = arith.addf %21, %29 : vector<16x64xf32>
    %c127_i32 = arith.constant 127 : i32
    %31 = tpu.dynamic_rotate %1 by %c127_i32 dim 1 : vector<16x128xf32>, i32 -> vector<16x128xf32>
    %32 = vector.extract_strided_slice %31 {offsets = [0, 0], sizes = [16, 64], strides = [1, 1]} : vector<16x128xf32> to vector<16x64xf32>
    %c1 = arith.constant 1 : index
    %c0_12 = arith.constant 0 : index
    %c0_13 = arith.constant 0 : index
    %33 = vector.load %arg3[%c1, %c0_12, %c0_13] : memref<9x16x1xf32, #tpu.memory_space<vmem>>, vector<1x16x1xf32>
    %34 = vector.shape_cast %33 : vector<1x16x1xf32> to vector<16x1xf32>
    %35 = vector.broadcast %34 : vector<16x1xf32> to vector<16x64xf32>
    %36 = arith.mulf %32, %35 : vector<16x64xf32>
    %37 = arith.addf %30, %36 : vector<16x64xf32>
    %c119_i32 = arith.constant 119 : i32
    %38 = tpu.dynamic_rotate %1 by %c119_i32 dim 1 : vector<16x128xf32>, i32 -> vector<16x128xf32>
    %39 = vector.extract_strided_slice %38 {offsets = [0, 0], sizes = [16, 64], strides = [1, 1]} : vector<16x128xf32> to vector<16x64xf32>
    %c4 = arith.constant 4 : index
    %c0_14 = arith.constant 0 : index
    %c0_15 = arith.constant 0 : index
    %40 = vector.load %arg3[%c4, %c0_14, %c0_15] : memref<9x16x1xf32, #tpu.memory_space<vmem>>, vector<1x16x1xf32>
    %41 = vector.shape_cast %40 : vector<1x16x1xf32> to vector<16x1xf32>
    %42 = vector.broadcast %41 : vector<16x1xf32> to vector<16x64xf32>
    %43 = arith.mulf %39, %42 : vector<16x64xf32>
    %44 = arith.addf %37, %43 : vector<16x64xf32>
    %c111_i32 = arith.constant 111 : i32
    %45 = tpu.dynamic_rotate %1 by %c111_i32 dim 1 : vector<16x128xf32>, i32 -> vector<16x128xf32>
    %46 = vector.extract_strided_slice %45 {offsets = [0, 0], sizes = [16, 64], strides = [1, 1]} : vector<16x128xf32> to vector<16x64xf32>
    %c7 = arith.constant 7 : index
    %c0_16 = arith.constant 0 : index
    %c0_17 = arith.constant 0 : index
    %47 = vector.load %arg3[%c7, %c0_16, %c0_17] : memref<9x16x1xf32, #tpu.memory_space<vmem>>, vector<1x16x1xf32>
    %48 = vector.shape_cast %47 : vector<1x16x1xf32> to vector<16x1xf32>
    %49 = vector.broadcast %48 : vector<16x1xf32> to vector<16x64xf32>
    %50 = arith.mulf %46, %49 : vector<16x64xf32>
    %51 = arith.addf %44, %50 : vector<16x64xf32>
    %c2 = arith.constant 2 : index
    %c0_18 = arith.constant 0 : index
    %c0_19 = arith.constant 0 : index
    %52 = vector.load %arg2[%c2, %c0_18, %c0_19] : memref<3x1x64xf32, #tpu.memory_space<vmem>>, vector<1x1x64xf32>
    %53 = vector.shape_cast %52 : vector<1x1x64xf32> to vector<1x64xf32>
    %c126_i32 = arith.constant 126 : i32
    %54 = tpu.dynamic_rotate %1 by %c126_i32 dim 1 : vector<16x128xf32>, i32 -> vector<16x128xf32>
    %55 = vector.extract_strided_slice %54 {offsets = [0, 0], sizes = [16, 64], strides = [1, 1]} : vector<16x128xf32> to vector<16x64xf32>
    %56 = vector.broadcast %53 : vector<1x64xf32> to vector<16x64xf32>
    %57 = arith.mulf %55, %56 : vector<16x64xf32>
    %c2_20 = arith.constant 2 : index
    %c0_21 = arith.constant 0 : index
    %c0_22 = arith.constant 0 : index
    %58 = vector.load %arg3[%c2_20, %c0_21, %c0_22] : memref<9x16x1xf32, #tpu.memory_space<vmem>>, vector<1x16x1xf32>
    %59 = vector.shape_cast %58 : vector<1x16x1xf32> to vector<16x1xf32>
    %60 = vector.broadcast %59 : vector<16x1xf32> to vector<16x64xf32>
    %61 = arith.mulf %57, %60 : vector<16x64xf32>
    %62 = arith.addf %51, %61 : vector<16x64xf32>
    %c118_i32 = arith.constant 118 : i32
    %63 = tpu.dynamic_rotate %1 by %c118_i32 dim 1 : vector<16x128xf32>, i32 -> vector<16x128xf32>
    %64 = vector.extract_strided_slice %63 {offsets = [0, 0], sizes = [16, 64], strides = [1, 1]} : vector<16x128xf32> to vector<16x64xf32>
    %65 = vector.broadcast %53 : vector<1x64xf32> to vector<16x64xf32>
    %66 = arith.mulf %64, %65 : vector<16x64xf32>
    %c5 = arith.constant 5 : index
    %c0_23 = arith.constant 0 : index
    %c0_24 = arith.constant 0 : index
    %67 = vector.load %arg3[%c5, %c0_23, %c0_24] : memref<9x16x1xf32, #tpu.memory_space<vmem>>, vector<1x16x1xf32>
    %68 = vector.shape_cast %67 : vector<1x16x1xf32> to vector<16x1xf32>
    %69 = vector.broadcast %68 : vector<16x1xf32> to vector<16x64xf32>
    %70 = arith.mulf %66, %69 : vector<16x64xf32>
    %71 = arith.addf %62, %70 : vector<16x64xf32>
    %c110_i32 = arith.constant 110 : i32
    %72 = tpu.dynamic_rotate %1 by %c110_i32 dim 1 : vector<16x128xf32>, i32 -> vector<16x128xf32>
    %73 = vector.extract_strided_slice %72 {offsets = [0, 0], sizes = [16, 64], strides = [1, 1]} : vector<16x128xf32> to vector<16x64xf32>
    %74 = vector.broadcast %53 : vector<1x64xf32> to vector<16x64xf32>
    %75 = arith.mulf %73, %74 : vector<16x64xf32>
    %c8 = arith.constant 8 : index
    %c0_25 = arith.constant 0 : index
    %c0_26 = arith.constant 0 : index
    %76 = vector.load %arg3[%c8, %c0_25, %c0_26] : memref<9x16x1xf32, #tpu.memory_space<vmem>>, vector<1x16x1xf32>
    %77 = vector.shape_cast %76 : vector<1x16x1xf32> to vector<16x1xf32>
    %78 = vector.broadcast %77 : vector<16x1xf32> to vector<16x64xf32>
    %79 = arith.mulf %75, %78 : vector<16x64xf32>
    %80 = arith.addf %71, %79 : vector<16x64xf32>
    %c0_27 = arith.constant 0 : index
    %c0_28 = arith.constant 0 : index
    %81 = vector.load %arg4[%c0_27, %c0_28] : memref<16x1xf32, #tpu.memory_space<vmem>>, vector<16x1xf32>
    %82 = vector.broadcast %81 : vector<16x1xf32> to vector<16x64xf32>
    %83 = arith.addf %80, %82 : vector<16x64xf32>
    %cst_29 = arith.constant dense<0.000000e+00> : vector<16xf32>
    %84 = vector.multi_reduction <add>, %83, %cst_29 [1] : vector<16x64xf32> to vector<16xf32>
    %85 = vector.shape_cast %84 : vector<16xf32> to vector<16x1xf32>
    %86 = arith.mulf %83, %83 : vector<16x64xf32>
    %cst_30 = arith.constant dense<0.000000e+00> : vector<16xf32>
    %87 = vector.multi_reduction <add>, %86, %cst_30 [1] : vector<16x64xf32> to vector<16xf32>
    %88 = vector.shape_cast %87 : vector<16xf32> to vector<16x1xf32>
    %cst_31 = arith.constant 1.562500e-02 : f32
    %89 = vector.broadcast %cst_31 : f32 to vector<16x1xf32>
    %90 = arith.mulf %85, %89 : vector<16x1xf32>
    %cst_32 = arith.constant 1.562500e-02 : f32
    %91 = vector.broadcast %cst_32 : f32 to vector<16x1xf32>
    %92 = arith.mulf %88, %91 : vector<16x1xf32>
    %93 = arith.mulf %90, %90 : vector<16x1xf32>
    %94 = arith.subf %92, %93 : vector<16x1xf32>
    %cst_33 = arith.constant 0.000000e+00 : f32
    %95 = vector.broadcast %cst_33 : f32 to vector<16x1xf32>
    %96 = arith.maximumf %94, %95 : vector<16x1xf32>
    %97 = vector.broadcast %90 : vector<16x1xf32> to vector<16x64xf32>
    %98 = arith.subf %83, %97 : vector<16x64xf32>
    %cst_34 = arith.constant 9.99999974E-6 : f32
    %99 = vector.broadcast %cst_34 : f32 to vector<16x1xf32>
    %100 = arith.addf %96, %99 : vector<16x1xf32>
    %101 = math.rsqrt %100 : vector<16x1xf32>
    %102 = vector.broadcast %101 : vector<16x1xf32> to vector<16x64xf32>
    %103 = arith.mulf %98, %102 : vector<16x64xf32>
    %c0_35 = arith.constant 0 : index
    %c0_36 = arith.constant 0 : index
    %104 = vector.load %arg5[%c0_35, %c0_36] : memref<16x1xf32, #tpu.memory_space<vmem>>, vector<16x1xf32>
    %105 = vector.broadcast %104 : vector<16x1xf32> to vector<16x64xf32>
    %106 = arith.mulf %103, %105 : vector<16x64xf32>
    %c0_37 = arith.constant 0 : index
    %c0_38 = arith.constant 0 : index
    %107 = vector.load %arg6[%c0_37, %c0_38] : memref<16x1xf32, #tpu.memory_space<vmem>>, vector<16x1xf32>
    %108 = vector.broadcast %107 : vector<16x1xf32> to vector<16x64xf32>
    %109 = arith.addf %106, %108 : vector<16x64xf32>
    %c0_39 = arith.constant 0 : index
    %c0_40 = arith.constant 0 : index
    %110 = vector.load %arg7[%c0_39, %c0_40] : memref<32x16xf32, #tpu.memory_space<vmem>>, vector<32x16xf32>
    %cst_41 = arith.constant dense<0.000000e+00> : vector<32x64xf32>
    %111 = tpu.matmul %110, %109, %cst_41 {dimension_numbers = #tpu.dot_dimension_numbers<[1], [0], [0], [1], [0, 0, 1, 1], [], []>} : vector<32x16xf32>, vector<16x64xf32>, vector<32x64xf32> -> vector<32x64xf32>
    %c0_42 = arith.constant 0 : index
    %c0_43 = arith.constant 0 : index
    %112 = vector.load %arg8[%c0_42, %c0_43] : memref<32x1xf32, #tpu.memory_space<vmem>>, vector<32x1xf32>
    %113 = vector.broadcast %112 : vector<32x1xf32> to vector<32x64xf32>
    %114 = arith.addf %111, %113 : vector<32x64xf32>
    %cst_44 = arith.constant 5.000000e-01 : f32
    %115 = vector.broadcast %cst_44 : f32 to vector<32x64xf32>
    %116 = arith.mulf %115, %114 : vector<32x64xf32>
    %cst_45 = arith.constant 0.707106769 : f32
    %117 = vector.broadcast %cst_45 : f32 to vector<32x64xf32>
    %118 = arith.mulf %114, %117 : vector<32x64xf32>
    %119 = math.absf %118 : vector<32x64xf32>
    %cst_46 = arith.constant 0.327591091 : f32
    %120 = vector.broadcast %cst_46 : f32 to vector<32x64xf32>
    %121 = arith.mulf %120, %119 : vector<32x64xf32>
    %cst_47 = arith.constant 1.000000e+00 : f32
    %122 = vector.broadcast %cst_47 : f32 to vector<32x64xf32>
    %123 = arith.addf %122, %121 : vector<32x64xf32>
    %124 = tpu.reciprocal %123 {approx = true} : vector<32x64xf32> -> vector<32x64xf32>
    %cst_48 = arith.constant 1.06140542 : f32
    %125 = vector.broadcast %cst_48 : f32 to vector<32x64xf32>
    %126 = arith.mulf %125, %124 : vector<32x64xf32>
    %cst_49 = arith.constant -1.45315206 : f32
    %127 = vector.broadcast %cst_49 : f32 to vector<32x64xf32>
    %128 = arith.addf %126, %127 : vector<32x64xf32>
    %129 = arith.mulf %128, %124 : vector<32x64xf32>
    %cst_50 = arith.constant 1.42141378 : f32
    %130 = vector.broadcast %cst_50 : f32 to vector<32x64xf32>
    %131 = arith.addf %129, %130 : vector<32x64xf32>
    %132 = arith.mulf %131, %124 : vector<32x64xf32>
    %cst_51 = arith.constant -0.284496725 : f32
    %133 = vector.broadcast %cst_51 : f32 to vector<32x64xf32>
    %134 = arith.addf %132, %133 : vector<32x64xf32>
    %135 = arith.mulf %134, %124 : vector<32x64xf32>
    %cst_52 = arith.constant 0.254829586 : f32
    %136 = vector.broadcast %cst_52 : f32 to vector<32x64xf32>
    %137 = arith.addf %135, %136 : vector<32x64xf32>
    %138 = arith.mulf %137, %124 : vector<32x64xf32>
    %cst_53 = arith.constant 0.000000e+00 : f32
    %139 = vector.broadcast %cst_53 : f32 to vector<32x64xf32>
    %140 = arith.subf %139, %119 : vector<32x64xf32>
    %141 = arith.mulf %140, %119 : vector<32x64xf32>
    %142 = math.exp %141 : vector<32x64xf32>
    %143 = arith.mulf %138, %142 : vector<32x64xf32>
    %cst_54 = arith.constant 1.000000e+00 : f32
    %144 = vector.broadcast %cst_54 : f32 to vector<32x64xf32>
    %145 = arith.subf %144, %143 : vector<32x64xf32>
    %cst_55 = arith.constant 0.000000e+00 : f32
    %146 = vector.broadcast %cst_55 : f32 to vector<32x64xf32>
    %147 = arith.cmpf oge, %118, %146 : vector<32x64xf32>
    %cst_56 = arith.constant 0.000000e+00 : f32
    %148 = vector.broadcast %cst_56 : f32 to vector<32x64xf32>
    %149 = arith.subf %148, %145 : vector<32x64xf32>
    %150 = arith.select %147, %145, %149 : vector<32x64xi1>, vector<32x64xf32>
    %cst_57 = arith.constant 1.000000e+00 : f32
    %151 = vector.broadcast %cst_57 : f32 to vector<32x64xf32>
    %152 = arith.addf %151, %150 : vector<32x64xf32>
    %153 = arith.mulf %116, %152 : vector<32x64xf32>
    %c0_58 = arith.constant 0 : index
    %c0_59 = arith.constant 0 : index
    %154 = vector.load %arg9[%c0_58, %c0_59] : memref<16x32xf32, #tpu.memory_space<vmem>>, vector<16x32xf32>
    %cst_60 = arith.constant dense<0.000000e+00> : vector<16x64xf32>
    %155 = tpu.matmul %154, %153, %cst_60 {dimension_numbers = #tpu.dot_dimension_numbers<[1], [0], [0], [1], [0, 0, 1, 1], [], []>} : vector<16x32xf32>, vector<32x64xf32>, vector<16x64xf32> -> vector<16x64xf32>
    %c0_61 = arith.constant 0 : index
    %c0_62 = arith.constant 0 : index
    %156 = vector.load %arg10[%c0_61, %c0_62] : memref<16x1xf32, #tpu.memory_space<vmem>>, vector<16x1xf32>
    %157 = vector.broadcast %156 : vector<16x1xf32> to vector<16x64xf32>
    %158 = arith.addf %155, %157 : vector<16x64xf32>
    %c119_i32_63 = arith.constant 119 : i32
    %159 = tpu.dynamic_rotate %1 by %c119_i32_63 dim 1 : vector<16x128xf32>, i32 -> vector<16x128xf32>
    %160 = vector.extract_strided_slice %159 {offsets = [0, 0], sizes = [16, 64], strides = [1, 1]} : vector<16x128xf32> to vector<16x64xf32>
    %161 = arith.addf %158, %160 : vector<16x64xf32>
    %c0_64 = arith.constant 0 : index
    %c0_65 = arith.constant 0 : index
    %c0_66 = arith.constant 0 : index
    %162 = vector.load %arg11[%c0_64, %c0_65, %c0_66] : memref<1x16x64xf32, #tpu.memory_space<vmem>>, vector<1x16x64xf32>
    %163 = vector.shape_cast %162 : vector<1x16x64xf32> to vector<16x64xf32>
    %164 = vector.shape_cast %161 : vector<16x64xf32> to vector<1x16x64xf32>
    tpu.vector_store %arg11[%c0_64, %c0_65, %c0_66], %164 {strides = array<i32>} : memref<1x16x64xf32, #tpu.memory_space<vmem>>, vector<1x16x64xf32>,
    return
  }
  func.func @transform_0(%arg0: i32) -> (i32, i32, i32) {
    %c0_i32 = arith.constant 0 : i32
    %c0_i32_0 = arith.constant 0 : i32
    %c0_i32_1 = arith.constant 0 : i32
    return %arg0, %c0_i32, %c0_i32_0 : i32, i32, i32
  }
  func.func @transform_1(%arg0: i32) -> (i32, i32, i32) {
    %c0_i32 = arith.constant 0 : i32
    %c0_i32_0 = arith.constant 0 : i32
    %c0_i32_1 = arith.constant 0 : i32
    %c0_i32_2 = arith.constant 0 : i32
    return %c0_i32, %c0_i32_0, %c0_i32_1 : i32, i32, i32
  }
  func.func @transform_2(%arg0: i32) -> (i32, i32, i32) {
    %c0_i32 = arith.constant 0 : i32
    %c0_i32_0 = arith.constant 0 : i32
    %c0_i32_1 = arith.constant 0 : i32
    %c0_i32_2 = arith.constant 0 : i32
    return %c0_i32, %c0_i32_0, %c0_i32_1 : i32, i32, i32
  }
  func.func @transform_3(%arg0: i32) -> (i32, i32) {
    %c0_i32 = arith.constant 0 : i32
    %c0_i32_0 = arith.constant 0 : i32
    %c0_i32_1 = arith.constant 0 : i32
    return %c0_i32, %c0_i32_0 : i32, i32
  }
  func.func @transform_4(%arg0: i32) -> (i32, i32) {
    %c0_i32 = arith.constant 0 : i32
    %c0_i32_0 = arith.constant 0 : i32
    %c0_i32_1 = arith.constant 0 : i32
    return %c0_i32, %c0_i32_0 : i32, i32
  }
  func.func @transform_5(%arg0: i32) -> (i32, i32) {
    %c0_i32 = arith.constant 0 : i32
    %c0_i32_0 = arith.constant 0 : i32
    %c0_i32_1 = arith.constant 0 : i32
    return %c0_i32, %c0_i32_0 : i32, i32
  }
  func.func @transform_6(%arg0: i32) -> (i32, i32) {
    %c0_i32 = arith.constant 0 : i32
    %c0_i32_0 = arith.constant 0 : i32
    %c0_i32_1 = arith.constant 0 : i32
    return %c0_i32, %c0_i32_0 : i32, i32
  }
  func.func @transform_7(%arg0: i32) -> (i32, i32) {
    %c0_i32 = arith.constant 0 : i32
    %c0_i32_0 = arith.constant 0 : i32
    %c0_i32_1 = arith.constant 0 : i32
    return %c0_i32, %c0_i32_0 : i32, i32
  }
  func.func @transform_8(%arg0: i32) -> (i32, i32) {
    %c0_i32 = arith.constant 0 : i32
    %c0_i32_0 = arith.constant 0 : i32
    %c0_i32_1 = arith.constant 0 : i32
    return %c0_i32, %c0_i32_0 : i32, i32
  }
  func.func @transform_9(%arg0: i32) -> (i32, i32) {
    %c0_i32 = arith.constant 0 : i32
    %c0_i32_0 = arith.constant 0 : i32
    %c0_i32_1 = arith.constant 0 : i32
    return %c0_i32, %c0_i32_0 : i32, i32
  }
  func.func @transform_10(%arg0: i32) -> (i32, i32, i32) {
    %c0_i32 = arith.constant 0 : i32
    %c0_i32_0 = arith.constant 0 : i32
    %c0_i32_1 = arith.constant 0 : i32
    return %arg0, %c0_i32, %c0_i32_0 : i32, i32, i32
  }
}

module attributes {stable_mosaic.version = 11 : i64} {
  func.func @up_block_kernel(%arg0: i32, %arg1: memref<1x16x225xf32, #tpu.memory_space<vmem>>, %arg2: memref<1x8x225xf32, #tpu.memory_space<vmem>>, %arg3: memref<16x1xf32, #tpu.memory_space<vmem>>, %arg4: memref<16x1xf32, #tpu.memory_space<vmem>>, %arg5: memref<32x16xf32, #tpu.memory_space<vmem>>, %arg6: memref<32x1xf32, #tpu.memory_space<vmem>>, %arg7: memref<8x32xf32, #tpu.memory_space<vmem>>, %arg8: memref<8x1xf32, #tpu.memory_space<vmem>>, %arg9: memref<1x8x225xf32, #tpu.memory_space<vmem>>) attributes {dimension_semantics = [#tpu.dimension_semantics<parallel>], iteration_bounds = array<i64: 2>, scalar_prefetch = 0 : i64, scratch_operands = 0 : i64, tpu.core_type = #tpu.core_type<tc>, window_params = [{transform_indices = @transform_0, window_bounds = array<i64: 1, 16, 225>}, {transform_indices = @transform_1, window_bounds = array<i64: 1, 8, 225>}, {pipeline_mode = #tpu.pipeline_mode<synchronous>, transform_indices = @transform_2, window_bounds = array<i64: 16, 1>}, {pipeline_mode = #tpu.pipeline_mode<synchronous>, transform_indices = @transform_3, window_bounds = array<i64: 16, 1>}, {pipeline_mode = #tpu.pipeline_mode<synchronous>, transform_indices = @transform_4, window_bounds = array<i64: 32, 16>}, {pipeline_mode = #tpu.pipeline_mode<synchronous>, transform_indices = @transform_5, window_bounds = array<i64: 32, 1>}, {pipeline_mode = #tpu.pipeline_mode<synchronous>, transform_indices = @transform_6, window_bounds = array<i64: 8, 32>}, {pipeline_mode = #tpu.pipeline_mode<synchronous>, transform_indices = @transform_7, window_bounds = array<i64: 8, 1>}, {transform_indices = @transform_8, window_bounds = array<i64: 1, 8, 225>}]} {
    %c0 = arith.constant 0 : index
    %c0_0 = arith.constant 0 : index
    %c0_1 = arith.constant 0 : index
    %0 = vector.load %arg1[%c0, %c0_0, %c0_1] : memref<1x16x225xf32, #tpu.memory_space<vmem>>, vector<1x16x225xf32>
    %1 = vector.shape_cast %0 : vector<1x16x225xf32> to vector<16x225xf32>
    %cst = arith.constant dense<0.000000e+00> : vector<16xf32>
    %2 = vector.multi_reduction <add>, %1, %cst [1] : vector<16x225xf32> to vector<16xf32>
    %3 = vector.shape_cast %2 : vector<16xf32> to vector<16x1xf32>
    %4 = arith.mulf %1, %1 : vector<16x225xf32>
    %cst_2 = arith.constant dense<0.000000e+00> : vector<16xf32>
    %5 = vector.multi_reduction <add>, %4, %cst_2 [1] : vector<16x225xf32> to vector<16xf32>
    %6 = vector.shape_cast %5 : vector<16xf32> to vector<16x1xf32>
    %cst_3 = arith.constant 0.00444444455 : f32
    %7 = vector.broadcast %cst_3 : f32 to vector<16x1xf32>
    %8 = arith.mulf %3, %7 : vector<16x1xf32>
    %cst_4 = arith.constant 0.00444444455 : f32
    %9 = vector.broadcast %cst_4 : f32 to vector<16x1xf32>
    %10 = arith.mulf %6, %9 : vector<16x1xf32>
    %11 = arith.mulf %8, %8 : vector<16x1xf32>
    %12 = arith.subf %10, %11 : vector<16x1xf32>
    %cst_5 = arith.constant 0.000000e+00 : f32
    %13 = vector.broadcast %cst_5 : f32 to vector<16x1xf32>
    %14 = arith.maximumf %12, %13 : vector<16x1xf32>
    %15 = vector.broadcast %8 : vector<16x1xf32> to vector<16x225xf32>
    %16 = arith.subf %1, %15 : vector<16x225xf32>
    %cst_6 = arith.constant 9.99999974E-6 : f32
    %17 = vector.broadcast %cst_6 : f32 to vector<16x1xf32>
    %18 = arith.addf %14, %17 : vector<16x1xf32>
    %19 = math.rsqrt %18 : vector<16x1xf32>
    %20 = vector.broadcast %19 : vector<16x1xf32> to vector<16x225xf32>
    %21 = arith.mulf %16, %20 : vector<16x225xf32>
    %c0_7 = arith.constant 0 : index
    %c0_8 = arith.constant 0 : index
    %22 = vector.load %arg3[%c0_7, %c0_8] : memref<16x1xf32, #tpu.memory_space<vmem>>, vector<16x1xf32>
    %23 = vector.broadcast %22 : vector<16x1xf32> to vector<16x225xf32>
    %24 = arith.mulf %21, %23 : vector<16x225xf32>
    %c0_9 = arith.constant 0 : index
    %c0_10 = arith.constant 0 : index
    %25 = vector.load %arg4[%c0_9, %c0_10] : memref<16x1xf32, #tpu.memory_space<vmem>>, vector<16x1xf32>
    %26 = vector.broadcast %25 : vector<16x1xf32> to vector<16x225xf32>
    %27 = arith.addf %24, %26 : vector<16x225xf32>
    %c0_11 = arith.constant 0 : index
    %c0_12 = arith.constant 0 : index
    %28 = vector.load %arg5[%c0_11, %c0_12] : memref<32x16xf32, #tpu.memory_space<vmem>>, vector<32x16xf32>
    %cst_13 = arith.constant dense<0.000000e+00> : vector<32x225xf32>
    %29 = tpu.matmul %28, %27, %cst_13 {dimension_numbers = #tpu.dot_dimension_numbers<[1], [0], [0], [1], [0, 0, 1, 1], [], []>} : vector<32x16xf32>, vector<16x225xf32>, vector<32x225xf32> -> vector<32x225xf32>
    %c0_14 = arith.constant 0 : index
    %c0_15 = arith.constant 0 : index
    %30 = vector.load %arg6[%c0_14, %c0_15] : memref<32x1xf32, #tpu.memory_space<vmem>>, vector<32x1xf32>
    %31 = vector.broadcast %30 : vector<32x1xf32> to vector<32x225xf32>
    %32 = arith.addf %29, %31 : vector<32x225xf32>
    %cst_16 = arith.constant 5.000000e-01 : f32
    %33 = vector.broadcast %cst_16 : f32 to vector<32x225xf32>
    %34 = arith.mulf %33, %32 : vector<32x225xf32>
    %cst_17 = arith.constant 0.707106769 : f32
    %35 = vector.broadcast %cst_17 : f32 to vector<32x225xf32>
    %36 = arith.mulf %32, %35 : vector<32x225xf32>
    %37 = math.absf %36 : vector<32x225xf32>
    %cst_18 = arith.constant 0.327591091 : f32
    %38 = vector.broadcast %cst_18 : f32 to vector<32x225xf32>
    %39 = arith.mulf %38, %37 : vector<32x225xf32>
    %cst_19 = arith.constant 1.000000e+00 : f32
    %40 = vector.broadcast %cst_19 : f32 to vector<32x225xf32>
    %41 = arith.addf %40, %39 : vector<32x225xf32>
    %42 = tpu.reciprocal %41 {approx = true} : vector<32x225xf32> -> vector<32x225xf32>
    %cst_20 = arith.constant 1.06140542 : f32
    %43 = vector.broadcast %cst_20 : f32 to vector<32x225xf32>
    %44 = arith.mulf %43, %42 : vector<32x225xf32>
    %cst_21 = arith.constant -1.45315206 : f32
    %45 = vector.broadcast %cst_21 : f32 to vector<32x225xf32>
    %46 = arith.addf %44, %45 : vector<32x225xf32>
    %47 = arith.mulf %46, %42 : vector<32x225xf32>
    %cst_22 = arith.constant 1.42141378 : f32
    %48 = vector.broadcast %cst_22 : f32 to vector<32x225xf32>
    %49 = arith.addf %47, %48 : vector<32x225xf32>
    %50 = arith.mulf %49, %42 : vector<32x225xf32>
    %cst_23 = arith.constant -0.284496725 : f32
    %51 = vector.broadcast %cst_23 : f32 to vector<32x225xf32>
    %52 = arith.addf %50, %51 : vector<32x225xf32>
    %53 = arith.mulf %52, %42 : vector<32x225xf32>
    %cst_24 = arith.constant 0.254829586 : f32
    %54 = vector.broadcast %cst_24 : f32 to vector<32x225xf32>
    %55 = arith.addf %53, %54 : vector<32x225xf32>
    %56 = arith.mulf %55, %42 : vector<32x225xf32>
    %cst_25 = arith.constant 0.000000e+00 : f32
    %57 = vector.broadcast %cst_25 : f32 to vector<32x225xf32>
    %58 = arith.subf %57, %37 : vector<32x225xf32>
    %59 = arith.mulf %58, %37 : vector<32x225xf32>
    %60 = math.exp %59 : vector<32x225xf32>
    %61 = arith.mulf %56, %60 : vector<32x225xf32>
    %cst_26 = arith.constant 1.000000e+00 : f32
    %62 = vector.broadcast %cst_26 : f32 to vector<32x225xf32>
    %63 = arith.subf %62, %61 : vector<32x225xf32>
    %cst_27 = arith.constant 0.000000e+00 : f32
    %64 = vector.broadcast %cst_27 : f32 to vector<32x225xf32>
    %65 = arith.cmpf oge, %36, %64 : vector<32x225xf32>
    %cst_28 = arith.constant 0.000000e+00 : f32
    %66 = vector.broadcast %cst_28 : f32 to vector<32x225xf32>
    %67 = arith.subf %66, %63 : vector<32x225xf32>
    %68 = arith.select %65, %63, %67 : vector<32x225xi1>, vector<32x225xf32>
    %cst_29 = arith.constant 1.000000e+00 : f32
    %69 = vector.broadcast %cst_29 : f32 to vector<32x225xf32>
    %70 = arith.addf %69, %68 : vector<32x225xf32>
    %71 = arith.mulf %34, %70 : vector<32x225xf32>
    %c0_30 = arith.constant 0 : index
    %c0_31 = arith.constant 0 : index
    %72 = vector.load %arg7[%c0_30, %c0_31] : memref<8x32xf32, #tpu.memory_space<vmem>>, vector<8x32xf32>
    %cst_32 = arith.constant dense<0.000000e+00> : vector<8x225xf32>
    %73 = tpu.matmul %72, %71, %cst_32 {dimension_numbers = #tpu.dot_dimension_numbers<[1], [0], [0], [1], [0, 0, 1, 1], [], []>} : vector<8x32xf32>, vector<32x225xf32>, vector<8x225xf32> -> vector<8x225xf32>
    %c0_33 = arith.constant 0 : index
    %c0_34 = arith.constant 0 : index
    %74 = vector.load %arg8[%c0_33, %c0_34] : memref<8x1xf32, #tpu.memory_space<vmem>>, vector<8x1xf32>
    %75 = vector.broadcast %74 : vector<8x1xf32> to vector<8x225xf32>
    %76 = arith.addf %73, %75 : vector<8x225xf32>
    %c0_35 = arith.constant 0 : index
    %c0_36 = arith.constant 0 : index
    %c0_37 = arith.constant 0 : index
    %77 = vector.load %arg2[%c0_35, %c0_36, %c0_37] : memref<1x8x225xf32, #tpu.memory_space<vmem>>, vector<1x8x225xf32>
    %78 = vector.shape_cast %77 : vector<1x8x225xf32> to vector<8x225xf32>
    %79 = arith.addf %76, %78 : vector<8x225xf32>
    %c0_38 = arith.constant 0 : index
    %c0_39 = arith.constant 0 : index
    %c0_40 = arith.constant 0 : index
    %80 = vector.load %arg9[%c0_38, %c0_39, %c0_40] : memref<1x8x225xf32, #tpu.memory_space<vmem>>, vector<1x8x225xf32>
    %81 = vector.shape_cast %80 : vector<1x8x225xf32> to vector<8x225xf32>
    %82 = vector.shape_cast %79 : vector<8x225xf32> to vector<1x8x225xf32>
    tpu.vector_store %arg9[%c0_38, %c0_39, %c0_40], %82 {strides = array<i32>} : memref<1x8x225xf32, #tpu.memory_space<vmem>>, vector<1x8x225xf32>,
    return
  }
  func.func @transform_0(%arg0: i32) -> (i32, i32, i32) {
    %c0_i32 = arith.constant 0 : i32
    %c0_i32_0 = arith.constant 0 : i32
    %c0_i32_1 = arith.constant 0 : i32
    return %arg0, %c0_i32, %c0_i32_0 : i32, i32, i32
  }
  func.func @transform_1(%arg0: i32) -> (i32, i32, i32) {
    %c0_i32 = arith.constant 0 : i32
    %c0_i32_0 = arith.constant 0 : i32
    %c0_i32_1 = arith.constant 0 : i32
    return %arg0, %c0_i32, %c0_i32_0 : i32, i32, i32
  }
  func.func @transform_2(%arg0: i32) -> (i32, i32) {
    %c0_i32 = arith.constant 0 : i32
    %c0_i32_0 = arith.constant 0 : i32
    %c0_i32_1 = arith.constant 0 : i32
    return %c0_i32, %c0_i32_0 : i32, i32
  }
  func.func @transform_3(%arg0: i32) -> (i32, i32) {
    %c0_i32 = arith.constant 0 : i32
    %c0_i32_0 = arith.constant 0 : i32
    %c0_i32_1 = arith.constant 0 : i32
    return %c0_i32, %c0_i32_0 : i32, i32
  }
  func.func @transform_4(%arg0: i32) -> (i32, i32) {
    %c0_i32 = arith.constant 0 : i32
    %c0_i32_0 = arith.constant 0 : i32
    %c0_i32_1 = arith.constant 0 : i32
    return %c0_i32, %c0_i32_0 : i32, i32
  }
  func.func @transform_5(%arg0: i32) -> (i32, i32) {
    %c0_i32 = arith.constant 0 : i32
    %c0_i32_0 = arith.constant 0 : i32
    %c0_i32_1 = arith.constant 0 : i32
    return %c0_i32, %c0_i32_0 : i32, i32
  }
  func.func @transform_6(%arg0: i32) -> (i32, i32) {
    %c0_i32 = arith.constant 0 : i32
    %c0_i32_0 = arith.constant 0 : i32
    %c0_i32_1 = arith.constant 0 : i32
    return %c0_i32, %c0_i32_0 : i32, i32
  }
  func.func @transform_7(%arg0: i32) -> (i32, i32) {
    %c0_i32 = arith.constant 0 : i32
    %c0_i32_0 = arith.constant 0 : i32
    %c0_i32_1 = arith.constant 0 : i32
    return %c0_i32, %c0_i32_0 : i32, i32
  }
  func.func @transform_8(%arg0: i32) -> (i32, i32, i32) {
    %c0_i32 = arith.constant 0 : i32
    %c0_i32_0 = arith.constant 0 : i32
    %c0_i32_1 = arith.constant 0 : i32
    return %arg0, %c0_i32, %c0_i32_0 : i32, i32, i32
  }
}

</mosaic_0001>

<bundles_post_ra>
// kernel: mednext_forward.5
= control target key start
LH: loop header
LB: loop body
LE: loop exit
PB: predicated region body
PF: predicated region fallthrough
CT: control target
= control target key end

     0   :  { %s1030_s13 = smov 0   ;;  %s1195_s0 = inlined_call_operand.vmem [shape: f32[2,8,384], index: 0, kind: input, shape index: {}]   ;;  %s1196_s1 = inlined_call_operand.vmem [shape: f32[3,1,256], index: 1, kind: input, shape index: {}]   ;;  %s1197_s2 = inlined_call_operand.vmem [shape: f32[9,8,1], index: 2, kind: input, shape index: {}]   ;;  %s1198_s3 = inlined_call_operand.vmem [shape: f32[8,1], index: 3, kind: input, shape index: {}]   ;;  %s1199_s4 = inlined_call_operand.vmem [shape: f32[8,1], index: 4, kind: input, shape index: {}]   ;;  %s1200_s5 = inlined_call_operand.vmem [shape: f32[8,1], index: 5, kind: input, shape index: {}]   ;;  %s1201_s6 = inlined_call_operand.vmem [shape: f32[16,8], index: 6, kind: input, shape index: {}]   ;;  %s1202_s7 = inlined_call_operand.vmem [shape: f32[16,1], index: 7, kind: input, shape index: {}]   ;;  %s1203_s8 = inlined_call_operand.vmem [shape: f32[8,16], index: 8, kind: input, shape index: {}]   ;;  %s1204_s9 = inlined_call_operand.vmem [shape: f32[8,1], index: 9, kind: input, shape index: {}]   ;;  %s1205_s10 = inlined_call_operand.vmem [shape: f32[2,8,256], index: 10, kind: output, shape index: {}]  }
   0x1 LB: > { %s893_s14 = sadd.s32 4294967295, %s964_s13   ;;  %p897_p0 = scmp.ge.s32.totalorder %s964_s13, 1  ;;  %s964_s13 = sphi %s1030_s13, %s20_s13  }
   0x2   : > { %p312_p1 = scmp.lt.s32.totalorder %s964_s13, 3 }
   0x4   : > { %p313_p2 = pnand %p897_p0, %p312_p1 }
   0x5   : > { %p350_p3 = scmp.lt.s32.totalorder (!%p313_p2), %s893_s14, 1  ;;  %s967_s19 = smov (!%p313_p2), 112  }
   0x6   : > { %316 = sbr.rel (%p313_p2) target bundleno = 695 (0x2b7), region = 60  ;;  %s968_s20 = smov (!%p313_p2), 96  }
   0x7   : > { %s969_s27 = smov (!%p313_p2), 127   ;;  %s970_s30 = smov (!%p313_p2), 111  }
   0x8   : > { %s972_s16 = smov (!%p313_p2), 126   ;;  %s974_s22 = smov (!%p313_p2), 94  }
   0xb   : > { %v966_v0 = vmov 0   ;;  %s1207_s14 = smov (!%p350_p3, %s893_s14), 1  ;;  %v902_v4 = vld [vmem:[%s1197_s2 + $0x30] sm:$0xff]  ;;  %v901_v5 = vld [vmem:[%s1197_s2 + $0x18] sm:$0xff]  ;;  %v371_v6 = vld [vmem:[%s1197_s2] sm:$0xff]  ;;  %v387_v22 = vlaneseq  ;;  %vm626_vm11 = vcmask 64512  }
   0xc   : > { %939 = vset.pattern.permute.xlu2 %v966_v0  ;;  %938 = vset.pattern.permute.xlu1 %v966_v0  ;;  %s919_s15 = smul.u32 24, %s1207_s14  ;;  %v903_v7 = vld [vmem:[%s1197_s2 + $0x8] sm:$0xff]  ;;  %v904_v8 = vld [vmem:[%s1197_s2 + $0x20] sm:$0xff]  ;;  %v905_v9 = vld [vmem:[%s1197_s2 + $0x38] sm:$0xff]  ;;  %s918_s11 = sshll.u32 %s1207_s14, 4 }
   0xd   : > { %937 = vset.pattern.permute.xlu0 %v966_v0  ;;  %v907_v10 = vld [vmem:[%s1197_s2 + $0x10] sm:$0xff]  ;;  %v908_v11 = vld [vmem:[%s1197_s2 + $0x28] sm:$0xff]  ;;  %v909_v12 = vld [vmem:[%s1197_s2 + $0x40] sm:$0xff]  ;;  %v1106_v24 = vand.u32 127, %v387_v22 }
   0xe   : > { %s354_s18 = scalar_lea.vmem %s1195_s0, %s919_s15  ;;  %s971_s15 = smov 95   ;;  %v560_v13 = vld [vmem:[%s1198_s3] sm:$0xff]  ;;  %v615_v18 = vld [vmem:[%s1202_s7 + $0x8] sm:$0xff] }
   0xf   : > { %v362_v1 = vld [vmem:[%s354_s18 + $0x10] sm:$0xff]  ;;  %v1044_v2 = vld [vmem:[%s354_s18 + $0x8] sm:$0xff]  ;;  %v1046_v3 = vld [vmem:[%s354_s18] sm:$0xff]  ;;  %vm389_vm0 = vcmp.lt.s32.totalorder %v1106_v24, 112  ;;  %vm411_vm1 = vcmp.lt.s32.totalorder %v1106_v24, 96  ;;  %vm433_vm2 = vcmp.lt.s32.totalorder %v1106_v24, 127 }
  0x10   : > { %385 = vrot.lane.b32.xlu1 %v362_v1, %s967_s19  ;;  %407 = vrot.lane.b32.xlu2 %v1044_v2, %s968_s20  ;;  %v596_v14 = vld [vmem:[%s1199_s4] sm:$0xff]  ;;  %vm453_vm3 = vcmp.lt.s32.totalorder %v1106_v24, 111  ;;  %vm495_vm4 = vcmp.lt.s32.totalorder %v1106_v24, 126  ;;  %vm473_vm5 = vcmp.lt.s32.totalorder %v1106_v24, 95  ;;  %vm522_vm6 = vcmp.lt.s32.totalorder %v1106_v24, 110 }
  0x11   : > { %381 = vrot.lane.b32.xlu0 %v1046_v3, %s967_s19  ;;  %v604_v16 = vld [vmem:[%s1200_s5] sm:$0xff]  ;;  %vm544_vm7 = vcmp.lt.s32.totalorder %v1106_v24, 94 }
  0x12   : > { %v614_v23 = vld [vmem:[%s1202_s7] sm:$0xff] }
  0x13   : > { %v363_v26 = vld [vmem:[%s1196_s1] sm:$0x3] }
  0x14   : > { %v784_v29 = vld [vmem:[%s1204_s9] sm:$0xff]  ;;  %v366_v30 = vperm.slane %v363_v26, 1  ;;  %v365_v56 = vperm.slane %v363_v26, 0 }
  0x16   : > { %v370_v33 = vmul.f32 %v366_v30, %v1044_v2  ;;  %v369_v59 = vmul.f32 %v365_v56, %v1046_v3 }
  0x18   : > { %409 = vrot.lane.b32.xlu2 %v362_v1, %s968_s20  ;;  %405 = vrot.lane.b32.xlu1 %v1046_v3, %s968_s20 }
  0x19   : > { %383 = vrot.lane.b32.xlu0 %v1044_v2, %s967_s19  ;;  %s973_s19 = smov 110  }
  0x20   : > { %420 = vperm.xlu2 %939, %v902_v4   ;;  %398 = vperm.xlu1 %938, %v901_v5  }
  0x21   : > { %374 = vperm.xlu0 %937, %v371_v6   ;;  %v906_v6 = vld [vmem:[%s1196_s1 + $0x4] sm:$0x3] }
  0x28   : > { %429 = vrot.lane.b32.xlu2 %v1044_v2, %s969_s27  ;;  %427 = vrot.lane.b32.xlu1 %v1046_v3, %s969_s27 }
  0x29   : > { %431 = vrot.lane.b32.xlu0 %v362_v1, %s969_s27 }
  0x30   : > { %447 = vrot.lane.b32.xlu2 %v1046_v3, %s970_s30  ;;  %440 = vperm.xlu1 %938, %v903_v7  }
  0x31   : > { %449 = vrot.lane.b32.xlu0 %v1044_v2, %s970_s30 }
  0x38   : > { %460 = vperm.xlu2 %939, %v904_v8   ;;  %451 = vrot.lane.b32.xlu1 %v362_v1, %s970_s30 }
  0x39   : > { %467 = vrot.lane.b32.xlu0 %v1046_v3, %s971_s15 }
  0x40   : > { %471 = vrot.lane.b32.xlu2 %v362_v1, %s971_s15  ;;  %469 = vrot.lane.b32.xlu1 %v1044_v2, %s971_s15 }
  0x41   : > { %489 = vrot.lane.b32.xlu0 %v1046_v3, %s972_s16 }
  0x48   : > { %493 = vrot.lane.b32.xlu2 %v362_v1, %s972_s16  ;;  %491 = vrot.lane.b32.xlu1 %v1044_v2, %s972_s16  ;;  %s359_s16 = scalar_lea.vmem %s1205_s10, %s918_s11 }
  0x49   : > { %480 = vperm.xlu0 %937, %v905_v9  }
  0x50   : > { %518 = vrot.lane.b32.xlu2 %v1044_v2, %s973_s19  ;;  %516 = vrot.lane.b32.xlu1 %v1046_v3, %s973_s19 }
  0x51   : > { %520 = vrot.lane.b32.xlu0 %v362_v1, %s973_s19 }
  0x58   : > { %538 = vrot.lane.b32.xlu2 %v1046_v3, %s974_s22  ;;  %509 = vperm.xlu1 %938, %v907_v10  }
  0x59   : > { %540 = vrot.lane.b32.xlu0 %v1044_v2, %s974_s22 }
  0x60   : > { %531 = vperm.xlu2 %939, %v908_v11   ;;  %542 = vrot.lane.b32.xlu1 %v362_v1, %s974_s22 }
  0x61   : > { %553 = vperm.xlu0 %937, %v909_v12  }
  0x68   : > { %563 = vperm.xlu1 %938, %v560_v13   ;;  %v500_v13 = vperm.slane %v906_v6, 1 }
  0x6a   : > { %v408_v15 = vpop.permute.xlu2 %407 }
  0x70   : > { %599 = vperm.xlu1 %938, %v596_v14  }
  0x72   : > { %v410_v17 = vpop.permute.xlu2 %409 }
  0x73   : > { %v412_v32 = vsel %vm411_vm1, %v408_v15, %v410_v17 }
  0x74   : > { %v415_v35 = vmul.f32 %v412_v32, %v366_v30 }
  0x78   : > { %607 = vperm.xlu1 %938, %v604_v16   ;;  %v499_v16 = vperm.slane %v906_v6, 0 }
  0x7a   : > { %v421_v20 = vpop.permute.xlu2 %420 }
  0x7b   : > { %v424_v40 = vmul.f32 %v421_v20, %v415_v35 }
  0x80   : > { %623 = vperm.xlu1 %938, %v615_v18  }
  0x82   : > { %v386_v19 = vpop.permute.xlu1 %385  ;;  %v430_v28 = vpop.permute.xlu2 %429 }
  0x83   : > { %v382_v21 = vpop.permute.xlu0 %381 }
  0x88   : > { %618 = vperm.xlu1 %938, %v614_v23  }
  0x8a   : > { %v406_v25 = vpop.permute.xlu1 %405  ;;  %v448_v42 = vpop.permute.xlu2 %447 }
  0x8b   : > { %v384_v27 = vpop.permute.xlu0 %383  ;;  %v413_v62 = vsel %vm411_vm1, %v406_v25, %v408_v15 }
  0x8c   : > { %v390_v31 = vsel %vm389_vm0, %v384_v27, %v386_v19  ;;  %v391_v58 = vsel %vm389_vm0, %v382_v21, %v384_v27  ;;  %v414_v2 = vmul.f32 %v413_v62, %v365_v56  ;;  %vm790_vm0 = vcmask 130048  }
  0x8d   : > { %v393_v34 = vmul.f32 %v390_v31, %v366_v30  ;;  %v392_v60 = vmul.f32 %v391_v58, %v365_v56 }
  0x8e   : > { %v423_v7 = vmul.f32 %v421_v20, %v414_v2 }
  0x90   : > { %787 = vperm.xlu1 %938, %v784_v29  }
  0x92   : > { %v399_v36 = vpop.permute.xlu1 %398  ;;  %v461_v46 = vpop.permute.xlu2 %460 }
  0x93   : > { %v402_v37 = vmul.f32 %v399_v36, %v393_v34  ;;  %v375_v38 = vpop.permute.xlu0 %374  ;;  %v401_v63 = vmul.f32 %v399_v36, %v392_v60 }
  0x94   : > { %v378_v39 = vmul.f32 %v375_v38, %v370_v33  ;;  %v377_v0 = vmul.f32 %v375_v38, %v369_v59 }
  0x96   : > { %v404_v41 = vadd.f32 %v402_v37, %v378_v39  ;;  %v403_v5 = vadd.f32 %v401_v63, %v377_v0 }
  0x98   : > { %v426_v43 = vadd.f32 %v424_v40, %v404_v41  ;;  %v425_v14 = vadd.f32 %v423_v7, %v403_v5 }
  0x9a   : > { %v428_v44 = vpop.permute.xlu1 %427  ;;  %v472_v50 = vpop.permute.xlu2 %471 }
  0x9b   : > { %v432_v45 = vpop.permute.xlu0 %431  ;;  %v435_v3 = vsel %vm433_vm2, %v428_v44, %v430_v28 }
  0x9c   : > { %v434_v8 = vsel %vm433_vm2, %v430_v28, %v432_v45 }
  0xa2   : > { %v441_v47 = vpop.permute.xlu1 %440  ;;  %v494_v54 = vpop.permute.xlu2 %493 }
  0xa3   : > { %v450_v48 = vpop.permute.xlu0 %449  ;;  %v443_v9 = vmul.f32 %v441_v47, %v435_v3  ;;  %v444_v11 = vmul.f32 %v441_v47, %v434_v8 }
  0xa4   : > { %v1134_v12 = vsel %vm453_vm3, %v448_v42, %v450_v48 }
  0xa5   : > { %v445_v21 = vadd.f32 %v443_v9, %v425_v14  ;;  %v463_v22 = vmul.f32 %v461_v46, %v1134_v12  ;;  %v446_v26 = vadd.f32 %v444_v11, %v426_v43 }
  0xa7   : > { %v465_v36 = vadd.f32 %v463_v22, %v445_v21 }
  0xaa   : > { %v452_v49 = vpop.permute.xlu1 %451  ;;  %v519_v61 = vpop.permute.xlu2 %518 }
  0xab   : > { %v468_v51 = vpop.permute.xlu0 %467  ;;  %v1132_v10 = vsel %vm453_vm3, %v450_v48, %v452_v49 }
  0xac   : > { %v464_v18 = vmul.f32 %v461_v46, %v1132_v10 }
  0xae   : > { %v466_v33 = vadd.f32 %v464_v18, %v446_v26 }
  0xb2   : > { %v470_v52 = vpop.permute.xlu1 %469  ;;  %v539_v15 = vpop.permute.xlu2 %538 }
  0xb3   : > { %v490_v53 = vpop.permute.xlu0 %489  ;;  %v474_v23 = vsel %vm473_vm5, %v470_v52, %v472_v50  ;;  %v475_v27 = vsel %vm473_vm5, %v468_v51, %v470_v52 }
  0xba   : > { %v492_v55 = vpop.permute.xlu1 %491  ;;  %v532_v45 = vpop.permute.xlu2 %531 }
  0xbb   : > { %v481_v57 = vpop.permute.xlu0 %480  ;;  %v496_v17 = vsel %vm495_vm4, %v492_v55, %v494_v54  ;;  %v497_v19 = vsel %vm495_vm4, %v490_v53, %v492_v55 }
  0xbc   : > { %v504_v28 = vmul.f32 %v500_v13, %v496_v17  ;;  %v484_v29 = vmul.f32 %v481_v57, %v474_v23  ;;  %v503_v30 = vmul.f32 %v499_v16, %v497_v19  ;;  %v483_v31 = vmul.f32 %v481_v57, %v475_v27 }
  0xbe   : > { %v486_v38 = vadd.f32 %v484_v29, %v466_v33  ;;  %v485_v41 = vadd.f32 %v483_v31, %v465_v36  ;;  %v612_v29 = vld [vmem:[%s1201_s6] sm:$0xff] }
  0xc2   : > { %v517_v1 = vpop.permute.xlu1 %516 }
  0xc3   : > { %v521_v4 = vpop.permute.xlu0 %520  ;;  %v524_v34 = vsel %vm522_vm6, %v517_v1, %v519_v61 }
  0xc4   : > { %v523_v32 = vsel %vm522_vm6, %v519_v61, %v521_v4  ;;  %v525_v42 = vmul.f32 %v524_v34, %v499_v16 }
  0xc5   : > { %v526_v39 = vmul.f32 %v523_v32, %v500_v13 }
  0xc6   : > { %v534_v52 = vmul.f32 %v532_v45, %v525_v42 }
  0xc7   : > { %v535_v50 = vmul.f32 %v532_v45, %v526_v39 }
  0xca   : > { %v510_v20 = vpop.permute.xlu1 %509 }
  0xcb   : > { %v541_v25 = vpop.permute.xlu0 %540  ;;  %v513_v35 = vmul.f32 %v510_v20, %v504_v28  ;;  %v512_v37 = vmul.f32 %v510_v20, %v503_v30  ;;  %v613_v30 = vld [vmem:[%s1201_s6 + $0x8] sm:$0xff] }
  0xcc   : > { %v546_v40 = vsel %vm544_vm7, %v539_v15, %v541_v25 }
  0xcd   : > { %v515_v43 = vadd.f32 %v513_v35, %v486_v38  ;;  %v514_v46 = vadd.f32 %v512_v37, %v485_v41  ;;  %v547_v47 = vmul.f32 %v546_v40, %v499_v16 }
  0xcf   : > { %v537_v55 = vadd.f32 %v535_v50, %v515_v43  ;;  %v536_v56 = vadd.f32 %v534_v52, %v514_v46 }
  0xd2   : > { %v543_v44 = vpop.permute.xlu1 %542 }
  0xd3   : > { %v545_v48 = vsel %vm544_vm7, %v541_v25, %v543_v44  ;;  %v554_v49 = vpop.permute.xlu0 %553 }
  0xd4   : > { %v548_v51 = vmul.f32 %v545_v48, %v500_v13  ;;  %v556_v53 = vmul.f32 %v554_v49, %v547_v47 }
  0xd6   : > { %v557_v54 = vmul.f32 %v554_v49, %v548_v51  ;;  %v558_v58 = vadd.f32 %v556_v53, %v536_v56 }
  0xd8   : > { %v559_v57 = vadd.f32 %v557_v54, %v537_v55 }
  0xda   : > { %v564_v59 = vpop.permute.xlu1 %563 }
  0xdb   : > { %v566_v60 = vadd.f32 %v564_v59, %v558_v58  ;;  %v567_v61 = vadd.f32 %v564_v59, %v559_v57 }
  0xdd   : > { %v568_v62 = vadd.f32 %v567_v61, %v566_v60  ;;  %v571_v63 = vmul.f32 %v566_v60, %v566_v60  ;;  %v572_v0 = vmul.f32 %v567_v61, %v567_v61 }
  0xdf   : > { %569 = vadd.xlane.f32.xlu2 %v568_v62  ;;  %v573_v1 = vadd.f32 %v572_v0, %v571_v63 }
  0xe1   : > { %574 = vadd.xlane.f32.xlu0 %v573_v1 }
  0xe2   : > { %v600_v14 = vpop.permute.xlu1 %599 }
  0xea   : > { %v608_v26 = vpop.permute.xlu1 %607 }
  0xf2   : > { %v624_v31 = vpop.permute.xlu1 %623 }
  0xfa   : > { %v619_v32 = vpop.permute.xlu1 %618 }
 0x152   : > { %v570_v24 = vpop.xlane.xlu2 %569 }
 0x153   : > { %v576_v2 = vmul.f32 0.00390625, %v570_v24 }
 0x154   : > { %v575_v4 = vpop.xlane.xlu0 %574 }
 0x155   : > { %v577_v5 = vmul.f32 0.00390625, %v575_v4  ;;  %v578_v6 = vmul.f32 %v576_v2, %v576_v2  ;;  %v581_v18 = vsub.f32 %v566_v60, %v576_v2  ;;  %v582_v19 = vsub.f32 %v567_v61, %v576_v2 }
 0x157   : > { %v579_v3 = vsub.f32 %v577_v5, %v578_v6 }
 0x159   : > { %v580_v7 = vmax.f32 %v579_v3, 0.0 }
 0x15b   : > { %v583_v8 = vadd.f32 1e-05, %v580_v7 }
 0x15d   : > { %940 = vrsqrt.f32 %v583_v8  ;;  %vm590_vm9 = vweird.f32 %v583_v8 }
 0x163   : > { %v941_v9 = vpop.eup %940 }
 0x164   : > { %v585_v11 = vmul.f32 %v941_v9, %v583_v8  ;;  %vm591_vm8 = vweird.f32 %v941_v9 }
 0x165   : > { %vm592_vm10 = vmor %vm590_vm9, %vm591_vm8 }
 0x166   : > { %v586_v13 = vmul.f32 %v941_v9, %v585_v11 }
 0x168   : > { %v587_v15 = vmul.f32 0.5, %v586_v13 }
 0x16a   : > { %v588_v16 = vsub.f32 1.5, %v587_v15 }
 0x16c   : > { %v589_v17 = vmul.f32 %v941_v9, %v588_v16 }
 0x16e   : > { %v593_v20 = vsel %vm592_vm10, %v941_v9, %v589_v17 }
 0x16f   : > { %v594_v21 = vmul.f32 %v593_v20, %v581_v18  ;;  %v595_v22 = vmul.f32 %v593_v20, %v582_v19 }
 0x171   : > { %v602_v23 = vmul.f32 %v600_v14, %v594_v21  ;;  %v603_v25 = vmul.f32 %v600_v14, %v595_v22 }
 0x173   : > { %v610_v27 = vadd.f32 %v608_v26, %v602_v23  ;;  %v611_v28 = vadd.f32 %v608_v26, %v603_v25 }
 0x175   : > { %648 = vmatpush.msra.mxu0 %v610_v27  ;;  %671 = vmatpush.msra.mxu1 %v611_v28 }
 0x176   : > { %910 = vmatmul.msk.f32.vlgmr.msra.gmra.mxu0 %vm626_vm11, %v612_v29  ;;  %912 = vmatmul.msk.f32.vlgmr.msra.gmra.mxu1 %vm626_vm11, %v612_v29 }
 0x17e   : > { %911 = vmatmul.msk.f32.gmra.mxu0 %vm626_vm11, %v613_v30  ;;  %913 = vmatmul.msk.f32.gmra.mxu1 %vm626_vm11, %v613_v30 }
 0x1f3   : > { %v650_v33 = vpop.f32.mrf.mxu0  ;;  %v673_v34 = vpop.f32.mrf.mxu1 }
 0x1f4   : > { %v1151_v35 = vadd.f32 %v650_v33, %v619_v32  ;;  %v1153_v36 = vadd.f32 %v673_v34, %v619_v32 }
 0x1f6   : > { %v1156_v37 = vmul.f32 0.70710677, %v1151_v35  ;;  %v1159_v38 = vmul.f32 0.70710677, %v1153_v36 }
 0x1f8   : > { %v687_v39 = vand.u32 2147483647, %v1156_v37  ;;  %v688_v40 = vand.u32 2147483647, %v1159_v38  ;;  %vm763_vm12 = vcmp.ge.f32.partialorder %v1156_v37, 0.0  ;;  %vm764_vm13 = vcmp.ge.f32.partialorder %v1159_v38, 0.0 }
 0x1f9   : > { %v679_v38 = vmul.f32 0.5, %v1151_v35 }
 0x1fa   : > { %v691_v41 = vmul.f32 0.3275911, %v687_v39  ;;  %v692_v42 = vmul.f32 0.3275911, %v688_v40  ;;  %v739_v56 = vsub.f32 0.0, %v687_v39  ;;  %v740_v58 = vsub.f32 0.0, %v688_v40 }
 0x1fb   : > { %v653_v43 = vpop.f32.mrf.mxu0  ;;  %v676_v44 = vpop.f32.mrf.mxu1 }
 0x1fc   : > { %v695_v45 = vadd.f32 1.0, %v691_v41  ;;  %v696_v46 = vadd.f32 1.0, %v692_v42  ;;  %v1163_v47 = vadd.f32 %v653_v43, %v624_v31  ;;  %v1165_v48 = vadd.f32 %v676_v44, %v624_v31 }
 0x1fd   : > { %v743_v63 = vmul.f32 %v739_v56, %v687_v39  ;;  %v744_v24 = vmul.f32 %v740_v58, %v688_v40 }
 0x1fe   : > { %942 = vrcp.f32 %v695_v45  ;;  %v1168_v49 = vmul.f32 0.70710677, %v1163_v47  ;;  %v1171_v50 = vmul.f32 0.70710677, %v1165_v48 }
 0x1ff   : > { %944 = vrcp.f32 %v696_v46  ;;  %v747_v5 = vmul.f32 1.442695, %v743_v63  ;;  %v749_v8 = vmul.f32 1.442695, %v744_v24 }
 0x200   : > { %v689_v51 = vand.u32 2147483647, %v1168_v49  ;;  %v690_v52 = vand.u32 2147483647, %v1171_v50  ;;  %vm765_vm14 = vcmp.ge.f32.partialorder %v1168_v49, 0.0  ;;  %vm766_vm15 = vcmp.ge.f32.partialorder %v1171_v50, 0.0 }
 0x201   : > { %v680_v49 = vmul.f32 0.5, %v1153_v36 }
 0x202   : > { %v693_v53 = vmul.f32 0.3275911, %v689_v51  ;;  %v694_v54 = vmul.f32 0.3275911, %v690_v52  ;;  %v741_v9 = vsub.f32 0.0, %v689_v51  ;;  %v742_v13 = vsub.f32 0.0, %v690_v52 }
 0x204   : > { %v943_v55 = vpop.eup %942  ;;  %v697_v59 = vadd.f32 1.0, %v693_v53  ;;  %v698_v60 = vadd.f32 1.0, %v694_v54  ;;  %v745_v21 = vmul.f32 %v741_v9, %v689_v51  ;;  %v746_v23 = vmul.f32 %v742_v13, %v690_v52 }
 0x205   : > { %v945_v57 = vpop.eup %944  ;;  %v703_v61 = vmul.f32 1.0614054, %v943_v55  ;;  %v681_v9 = vmul.f32 0.5, %v1163_v47  ;;  %v783_v47 = vld [vmem:[%s1203_s8] sm:$0xff] }
 0x206   : > { %v704_v62 = vmul.f32 1.0614054, %v945_v57  ;;  %946 = vrcp.f32 %v697_v59  ;;  %v751_v32 = vmul.f32 1.442695, %v745_v21  ;;  %v753_v39 = vmul.f32 1.442695, %v746_v23 }
 0x207   : > { %948 = vrcp.f32 %v698_v60  ;;  %v707_v0 = vadd.f32 -1.4531521, %v703_v61 }
 0x208   : > { %v708_v1 = vadd.f32 -1.4531521, %v704_v62  ;;  %950 = vpow2.f32 %v747_v5 }
 0x209   : > { %v711_v2 = vmul.f32 %v943_v55, %v707_v0  ;;  %952 = vpow2.f32 %v749_v8 }
 0x20a   : > { %v712_v4 = vmul.f32 %v945_v57, %v708_v1  ;;  %954 = vpow2.f32 %v751_v32 }
 0x20b   : > { %v715_v6 = vadd.f32 1.4214138, %v711_v2  ;;  %956 = vpow2.f32 %v753_v39 }
 0x20c   : > { %v716_v3 = vadd.f32 1.4214138, %v712_v4  ;;  %v947_v7 = vpop.eup %946 }
 0x20d   : > { %v949_v11 = vpop.eup %948  ;;  %v705_v14 = vmul.f32 1.0614054, %v947_v7  ;;  %v719_v15 = vmul.f32 %v943_v55, %v715_v6 }
 0x20e   : > { %v720_v16 = vmul.f32 %v945_v57, %v716_v3  ;;  %v706_v17 = vmul.f32 1.0614054, %v949_v11  ;;  %v951_v34 = vpop.eup %950 }
 0x20f   : > { %v709_v18 = vadd.f32 -1.4531521, %v705_v14  ;;  %v723_v19 = vadd.f32 -0.28449672, %v719_v15  ;;  %v953_v43 = vpop.eup %952  ;;  %v682_v15 = vmul.f32 0.5, %v1165_v48  ;;  %v788_v48 = vpop.permute.xlu1 %787 }
 0x210   : > { %v724_v20 = vadd.f32 -0.28449672, %v720_v16  ;;  %v710_v22 = vadd.f32 -1.4531521, %v706_v17  ;;  %v955_v62 = vpop.eup %954 }
 0x211   : > { %v713_v25 = vmul.f32 %v947_v7, %v709_v18  ;;  %v727_v26 = vmul.f32 %v943_v55, %v723_v19  ;;  %v957_v0 = vpop.eup %956 }
 0x212   : > { %v728_v27 = vmul.f32 %v945_v57, %v724_v20  ;;  %v714_v28 = vmul.f32 %v949_v11, %v710_v22 }
 0x213   : > { %v717_v29 = vadd.f32 1.4214138, %v713_v25  ;;  %v731_v30 = vadd.f32 0.2548296, %v727_v26 }
 0x214   : > { %v732_v31 = vadd.f32 0.2548296, %v728_v27  ;;  %v718_v33 = vadd.f32 1.4214138, %v714_v28 }
 0x215   : > { %v721_v40 = vmul.f32 %v947_v7, %v717_v29  ;;  %v735_v41 = vmul.f32 %v943_v55, %v731_v30 }
 0x216   : > { %v736_v42 = vmul.f32 %v945_v57, %v732_v31  ;;  %v722_v44 = vmul.f32 %v949_v11, %v718_v33 }
 0x217   : > { %v725_v45 = vadd.f32 -0.28449672, %v721_v40  ;;  %v755_v46 = vmul.f32 %v951_v34, %v735_v41 }
 0x218   : > { %v726_v51 = vadd.f32 -0.28449672, %v722_v44  ;;  %v756_v52 = vmul.f32 %v953_v43, %v736_v42 }
 0x219   : > { %v729_v53 = vmul.f32 %v947_v7, %v725_v45  ;;  %v759_v58 = vsub.f32 1.0, %v755_v46 }
 0x21a   : > { %v730_v54 = vmul.f32 %v949_v11, %v726_v51  ;;  %v760_v60 = vsub.f32 1.0, %v756_v52 }
 0x21b   : > { %v733_v56 = vadd.f32 0.2548296, %v729_v53  ;;  %v767_v57 = vsub.f32 0.0, %v759_v58 }
 0x21c   : > { %v734_v59 = vadd.f32 0.2548296, %v730_v54  ;;  %v768_v24 = vsub.f32 0.0, %v760_v60 }
 0x21d   : > { %v737_v61 = vmul.f32 %v947_v7, %v733_v56  ;;  %v771_v6 = vsel %vm763_vm12, %v759_v58, %v767_v57 }
 0x21e   : > { %v738_v63 = vmul.f32 %v949_v11, %v734_v59  ;;  %v772_v8 = vsel %vm764_vm13, %v760_v60, %v768_v24  ;;  %v775_v14 = vadd.f32 1.0, %v771_v6 }
 0x21f   : > { %v757_v55 = vmul.f32 %v955_v62, %v737_v61  ;;  %v776_v16 = vadd.f32 1.0, %v772_v8 }
 0x220   : > { %v758_v1 = vmul.f32 %v957_v0, %v738_v63  ;;  %v779_v19 = vmul.f32 %v775_v14, %v679_v38 }
 0x221   : > { %v761_v2 = vsub.f32 1.0, %v757_v55  ;;  %v780_v50 = vmul.f32 %v776_v16, %v680_v49 }
 0x222   : > { %v762_v4 = vsub.f32 1.0, %v758_v1 }
 0x223   : > { %v769_v5 = vsub.f32 0.0, %v761_v2 }
 0x224   : > { %v770_v3 = vsub.f32 0.0, %v762_v4 }
 0x225   : > { %v773_v7 = vsel %vm765_vm14, %v761_v2, %v769_v5 }
 0x226   : > { %v777_v11 = vadd.f32 1.0, %v773_v7  ;;  %v774_v13 = vsel %vm766_vm15, %v762_v4, %v770_v3 }
 0x227   : > { %v778_v37 = vadd.f32 1.0, %v774_v13 }
 0x228   : > { %v781_v17 = vmul.f32 %v777_v11, %v681_v9 }
 0x229   : > { %v782_v18 = vmul.f32 %v778_v37, %v682_v15 }
 0x22a   : > { %808 = vmatpush.msra.mxu2 %v781_v17 }
 0x22b   : > { %828 = vmatpush.msra.mxu3 %v782_v18 }
 0x22c   : > { %809 = vmatpush.msra.mxu2 %v779_v19 }
 0x22d   : > { %829 = vmatpush.msra.mxu3 %v780_v50  ;;  %914 = vmatmul.msk.f32.vlgmr.msra.gmra.mxu2 %vm790_vm0, %v783_v47 }
 0x22e   : > { %915 = vmatmul.msk.f32.vlgmr.msra.gmra.mxu3 %vm790_vm0, %v783_v47 }
 0x2b0   : > { %v811_v35 = vpop.f32.mrf.mxu2 }
 0x2b1   : > { %v812_v20 = vadd.f32 %v811_v35, %v788_v48  ;;  %v831_v21 = vpop.f32.mrf.mxu3 }
 0x2b2   : > { %v832_v36 = vadd.f32 %v831_v21, %v788_v48 }
 0x2b3   : > { %v834_v22 = vadd.f32 %v812_v20, %v1134_v12 }
 0x2b4   : > { %v835_v23 = vadd.f32 %v832_v36, %v1132_v10 }
 0x2b5   : > { %836 = vst [vmem:[%s359_s16] sm:$0xff] %v834_v22 }
 0x2b6   : > { %837 = vst [vmem:[%s359_s16 + $0x8] sm:$0xff] %v835_v23 }
 0x2b7 PF: > { %s20_s13 = sadd.s32 1, %s964_s13  }
 0x2b8   : > { %p17_p4 = scmp.ge.s32.totalorder %s20_s13, 4  }
 0x2ba   :  { %19 = sbr.rel (!%p17_p4) target bundleno = 1 (0x1), region = 99 }

// kernel: mednext_forward.6
= control target key start
LH: loop header
LB: loop body
LE: loop exit
PB: predicated region body
PF: predicated region fallthrough
CT: control target
= control target key end

     0   :  { %s776_s13 = smov 0   ;;  %s850_s0 = inlined_call_operand.vmem [shape: f32[2,8,64], index: 0, kind: input, shape index: {}]   ;;  %s851_s1 = inlined_call_operand.vmem [shape: f32[2,8,64], index: 1, kind: input, shape index: {}]   ;;  %s852_s2 = inlined_call_operand.vmem [shape: f32[8,1], index: 2, kind: input, shape index: {}]   ;;  %s853_s3 = inlined_call_operand.vmem [shape: f32[8,1], index: 3, kind: input, shape index: {}]   ;;  %s854_s4 = inlined_call_operand.vmem [shape: f32[16,8], index: 4, kind: input, shape index: {}]   ;;  %s855_s5 = inlined_call_operand.vmem [shape: f32[16,1], index: 5, kind: input, shape index: {}]   ;;  %s856_s6 = inlined_call_operand.vmem [shape: f32[16,16], index: 6, kind: input, shape index: {}]   ;;  %s857_s7 = inlined_call_operand.vmem [shape: f32[16,1], index: 7, kind: input, shape index: {}]   ;;  %s858_s8 = inlined_call_operand.vmem [shape: f32[16,8], index: 8, kind: input, shape index: {}]   ;;  %s859_s9 = inlined_call_operand.vmem [shape: f32[16,1], index: 9, kind: input, shape index: {}]   ;;  %s860_s10 = inlined_call_operand.vmem [shape: f32[2,16,64], index: 10, kind: output, shape index: {}]  }
   0x1 LB: > { %s670_s14 = sadd.s32 4294967295, %s718_s13   ;;  %p674_p0 = scmp.ge.s32.totalorder %s718_s13, 1  ;;  %s718_s13 = sphi %s776_s13, %s20_s13  }
   0x2   : > { %p320_p1 = scmp.lt.s32.totalorder %s718_s13, 3 }
   0x4   : > { %p321_p2 = pnand %p674_p0, %p320_p1 }
   0x5   : > { %p361_p3 = scmp.lt.s32.totalorder (!%p321_p2), %s670_s14, 1 }
   0x6   : > { %324 = sbr.rel (%p321_p2) target bundleno = 493 (0x1ed), region = 60 }
   0xb   : > { %v401_v0 = vld [vmem:[%s852_s2] sm:$0xff]  ;;  %v720_v1 = vmov 0   ;;  %s862_s14 = smov (!%p361_p3, %s670_s14), 1  ;;  %vm375_vm0 = vcmask 523264   ;;  %vm429_vm1 = vcmask 64512   ;;  %v556_v9 = vld [vmem:[%s858_s8 + $0x8] sm:$0xff] }
   0xc   : > { %699 = vset.pattern.permute.xlu1 %v720_v1  ;;  %700 = vset.pattern.permute.xlu2 %v720_v1  ;;  %s675_s17 = sshll.u32 %s862_s14, 3  ;;  %v555_v3 = vld [vmem:[%s858_s8] sm:$0xff]  ;;  %v514_v10 = vld [vmem:[%s857_s7 + $0x8] sm:$0xff]  ;;  %vm525_vm7 = vcmask 130048   ;;  %s687_s12 = sshll.u32 %s862_s14, 4 }
   0xd   : > { %404 = vperm.xlu1 %699, %v401_v0   ;;  %701 = vset.pattern.permute.xlu0 %v720_v1  ;;  %s364_s20 = scalar_lea.vmem %s850_s0, %s675_s17  ;;  %s368_s23 = scalar_lea.vmem %s851_s1, %s675_s17  ;;  %v408_v6 = vld [vmem:[%s853_s3] sm:$0xff]  ;;  %v559_v11 = vld [vmem:[%s859_s9 + $0x8] sm:$0xff] }
   0xe   : > { %v374_v2 = vld [vmem:[%s364_s20] sm:$0xff]  ;;  %v418_v20 = vld [vmem:[%s855_s5 + $0x8] sm:$0xff]  ;;  %s373_s17 = scalar_lea.vmem %s860_s10, %s687_s12 }
   0xf   : > { %v376_v4 = vsel %vm375_vm0, %v374_v2, 0.0  ;;  %v557_v5 = vld [vmem:[%s368_s23] sm:$0xff]  ;;  %v379_v7 = vmul.f32 %v374_v2, %v374_v2  ;;  %426 = vperm.xlu2 %700, %v418_v20   ;;  %v416_v37 = vld [vmem:[%s854_s4 + $0x8] sm:$0xff] }
  0x10   : > { %377 = vadd.xlane.f32.xlu0 %v376_v4  ;;  %591 = vmatpush.msra.mxu2 %v557_v5  ;;  %v417_v23 = vld [vmem:[%s855_s5] sm:$0xff] }
  0x11   : > { %683 = vmatmul.msk.f32.vlgmr.msra.gmra.mxu2 %vm429_vm1, %v555_v3  ;;  %v380_v8 = vsel %vm375_vm0, %v379_v7, 0.0  ;;  %v558_v29 = vld [vmem:[%s859_s9] sm:$0xff] }
  0x12   : > { %v415_v36 = vld [vmem:[%s854_s4] sm:$0xff] }
  0x13   : > { %v513_v0 = vld [vmem:[%s857_s7] sm:$0xff] }
  0x15   : > { %411 = vperm.xlu1 %699, %v408_v6  }
  0x17   : > { %421 = vperm.xlu2 %700, %v417_v23  }
  0x18   : > { %381 = vadd.xlane.f32.xlu0 %v380_v8 }
  0x19   : > { %684 = vmatmul.msk.f32.gmra.mxu2 %vm429_vm1, %v556_v9 }
  0x1d   : > { %522 = vperm.xlu1 %699, %v514_v10  }
  0x1f   : > { %562 = vperm.xlu2 %700, %v558_v29  }
  0x25   : > { %567 = vperm.xlu1 %699, %v559_v11  }
  0x2c   : > { %517 = vperm.xlu0 %701, %v513_v0  }
  0x69   : > { %v427_v38 = vpop.permute.xlu2 %426 }
  0x71   : > { %v422_v39 = vpop.permute.xlu2 %421 }
  0x7f   : > { %v405_v25 = vpop.permute.xlu1 %404 }
  0x83   : > { %v378_v12 = vpop.xlane.xlu0 %377 }
  0x84   : > { %v383_v13 = vmul.f32 0.015625, %v378_v12 }
  0x86   : > { %v385_v15 = vmul.f32 %v383_v13, %v383_v13  ;;  %v388_v30 = vsub.f32 %v374_v2, %v383_v13 }
  0x87   : > { %v412_v34 = vpop.permute.xlu1 %411 }
  0x8b   : > { %v382_v14 = vpop.xlane.xlu0 %381 }
  0x8c   : > { %v384_v16 = vmul.f32 0.015625, %v382_v14 }
  0x8e   : > { %v386_v17 = vsub.f32 %v384_v16, %v385_v15 }
  0x90   : > { %v387_v18 = vmax.f32 %v386_v17, 0.0 }
  0x92   : > { %v389_v19 = vadd.f32 1e-05, %v387_v18 }
  0x94   : > { %702 = vrsqrt.f32 %v389_v19  ;;  %vm396_vm3 = vweird.f32 %v389_v19 }
  0x9a   : > { %v703_v21 = vpop.eup %702 }
  0x9b   : > { %v391_v22 = vmul.f32 %v703_v21, %v389_v19  ;;  %vm397_vm2 = vweird.f32 %v703_v21 }
  0x9c   : > { %vm398_vm4 = vmor %vm396_vm3, %vm397_vm2 }
  0x9d   : > { %v392_v24 = vmul.f32 %v703_v21, %v391_v22 }
  0x9f   : > { %v393_v26 = vmul.f32 0.5, %v392_v24 }
  0xa1   : > { %v394_v27 = vsub.f32 1.5, %v393_v26 }
  0xa3   : > { %v395_v28 = vmul.f32 %v703_v21, %v394_v27 }
  0xa5   : > { %v399_v31 = vsel %vm398_vm4, %v703_v21, %v395_v28 }
  0xa6   : > { %v400_v32 = vmul.f32 %v399_v31, %v388_v30  ;;  %v511_v31 = vld [vmem:[%s856_s6] sm:$0xff] }
  0xa8   : > { %v407_v33 = vmul.f32 %v405_v25, %v400_v32  ;;  %v512_v32 = vld [vmem:[%s856_s6 + $0x8] sm:$0xff] }
  0xaa   : > { %v414_v35 = vadd.f32 %v412_v34, %v407_v33  ;;  %v523_v33 = vpop.permute.xlu1 %522  ;;  %v593_v34 = vpop.f32.mrf.mxu2 }
  0xac   : > { %451 = vmatpush.msra.mxu0 %v414_v35  ;;  %v563_v35 = vpop.permute.xlu2 %562 }
  0xad   : > { %679 = vmatmul.msk.f32.vlgmr.msra.gmra.mxu0 %vm429_vm1, %v415_v36  ;;  %v518_v36 = vpop.permute.xlu0 %517 }
  0xb5   : > { %680 = vmatmul.msk.f32.gmra.mxu0 %vm429_vm1, %v416_v37 }
 0x12a   : > { %v453_v40 = vpop.f32.mrf.mxu0 }
 0x12b   : > { %v454_v41 = vadd.f32 %v453_v40, %v422_v39 }
 0x12d   : > { %v461_v42 = vmul.f32 0.70710677, %v454_v41  ;;  %v459_v28 = vmul.f32 0.5, %v454_v41  ;;  %v568_v41 = vpop.permute.xlu1 %567 }
 0x12f   : > { %v463_v43 = vand.u32 2147483647, %v461_v42  ;;  %vm501_vm5 = vcmp.ge.f32.partialorder %v461_v42, 0.0  ;;  %v596_v42 = vpop.f32.mrf.mxu2 }
 0x131   : > { %v465_v44 = vmul.f32 0.3275911, %v463_v43  ;;  %v489_v52 = vsub.f32 0.0, %v463_v43 }
 0x132   : > { %v456_v45 = vpop.f32.mrf.mxu0 }
 0x133   : > { %v467_v46 = vadd.f32 1.0, %v465_v44  ;;  %v457_v47 = vadd.f32 %v456_v45, %v427_v38  ;;  %v491_v56 = vmul.f32 %v489_v52, %v463_v43  ;;  %v594_v38 = vadd.f32 %v593_v34, %v563_v35 }
 0x134   : > { %v597_v44 = vadd.f32 %v596_v42, %v568_v41 }
 0x135   : > { %704 = vrcp.f32 %v467_v46  ;;  %v462_v48 = vmul.f32 0.70710677, %v457_v47  ;;  %v493_v60 = vmul.f32 1.442695, %v491_v56  ;;  %v460_v25 = vmul.f32 0.5, %v457_v47 }
 0x137   : > { %v464_v49 = vand.u32 2147483647, %v462_v48  ;;  %vm502_vm6 = vcmp.ge.f32.partialorder %v462_v48, 0.0 }
 0x139   : > { %v466_v50 = vmul.f32 0.3275911, %v464_v49  ;;  %v490_v61 = vsub.f32 0.0, %v464_v49 }
 0x13b   : > { %v705_v51 = vpop.eup %704  ;;  %v468_v53 = vadd.f32 1.0, %v466_v50  ;;  %v492_v3 = vmul.f32 %v490_v61, %v464_v49 }
 0x13c   : > { %v471_v54 = vmul.f32 1.0614054, %v705_v51 }
 0x13d   : > { %706 = vrcp.f32 %v468_v53  ;;  %v495_v8 = vmul.f32 1.442695, %v492_v3 }
 0x13e   : > { %v473_v55 = vadd.f32 -1.4531521, %v471_v54  ;;  %708 = vpow2.f32 %v493_v60 }
 0x13f   : > { %710 = vpow2.f32 %v495_v8 }
 0x140   : > { %v475_v57 = vmul.f32 %v705_v51, %v473_v55 }
 0x142   : > { %v477_v58 = vadd.f32 1.4214138, %v475_v57 }
 0x143   : > { %v707_v59 = vpop.eup %706 }
 0x144   : > { %v472_v62 = vmul.f32 1.0614054, %v707_v59  ;;  %v479_v63 = vmul.f32 %v705_v51, %v477_v58  ;;  %v709_v11 = vpop.eup %708 }
 0x145   : > { %v711_v18 = vpop.eup %710 }
 0x146   : > { %v474_v1 = vadd.f32 -1.4531521, %v472_v62  ;;  %v481_v2 = vadd.f32 -0.28449672, %v479_v63 }
 0x148   : > { %v476_v4 = vmul.f32 %v707_v59, %v474_v1  ;;  %v483_v5 = vmul.f32 %v705_v51, %v481_v2 }
 0x14a   : > { %v478_v6 = vadd.f32 1.4214138, %v476_v4  ;;  %v485_v7 = vadd.f32 0.2548296, %v483_v5 }
 0x14c   : > { %v480_v9 = vmul.f32 %v707_v59, %v478_v6  ;;  %v487_v10 = vmul.f32 %v705_v51, %v485_v7 }
 0x14e   : > { %v482_v12 = vadd.f32 -0.28449672, %v480_v9  ;;  %v497_v13 = vmul.f32 %v709_v11, %v487_v10 }
 0x150   : > { %v484_v14 = vmul.f32 %v707_v59, %v482_v12  ;;  %v499_v16 = vsub.f32 1.0, %v497_v13 }
 0x152   : > { %v486_v15 = vadd.f32 0.2548296, %v484_v14  ;;  %v503_v20 = vsub.f32 0.0, %v499_v16 }
 0x154   : > { %v488_v17 = vmul.f32 %v707_v59, %v486_v15  ;;  %v505_v23 = vsel %vm501_vm5, %v499_v16, %v503_v20 }
 0x155   : > { %v507_v27 = vadd.f32 1.0, %v505_v23 }
 0x156   : > { %v498_v19 = vmul.f32 %v711_v18, %v488_v17 }
 0x157   : > { %v509_v30 = vmul.f32 %v507_v27, %v459_v28 }
 0x158   : > { %v500_v21 = vsub.f32 1.0, %v498_v19 }
 0x15a   : > { %v504_v22 = vsub.f32 0.0, %v500_v21 }
 0x15c   : > { %v506_v24 = vsel %vm502_vm6, %v500_v21, %v504_v22 }
 0x15d   : > { %v508_v26 = vadd.f32 1.0, %v506_v24 }
 0x15f   : > { %v510_v29 = vmul.f32 %v508_v26, %v460_v25 }
 0x161   : > { %546 = vmatpush.msra.mxu1 %v510_v29  ;;  %688 = vmatpush.msra.mxu3 %v510_v29 }
 0x163   : > { %547 = vmatpush.msra.mxu1 %v509_v30  ;;  %689 = vmatpush.msra.mxu3 %v509_v30 }
 0x164   : > { %681 = vmatmul.msk.f32.vlgmr.msra.gmra.mxu1 %vm525_vm7, %v511_v31  ;;  %682 = vmatmul.msk.f32.vlgmr.msra.gmra.mxu3 %vm525_vm7, %v512_v32 }
 0x1e1   : > { %v549_v37 = vpop.f32.mrf.mxu1 }
 0x1e2   : > { %v550_v39 = vadd.f32 %v549_v37, %v518_v36 }
 0x1e4   : > { %v599_v40 = vadd.f32 %v594_v38, %v550_v39 }
 0x1e6   : > { %601 = vst.msk [vmem:[%s373_s17] sm:$0xff] %vm375_vm0, %v599_v40 }
 0x1e7   : > { %v552_v43 = vpop.f32.mrf.mxu3 }
 0x1e8   : > { %v553_v45 = vadd.f32 %v552_v43, %v523_v33 }
 0x1ea   : > { %v600_v46 = vadd.f32 %v597_v44, %v553_v45 }
 0x1ec   : > { %602 = vst.msk [vmem:[%s373_s17 + $0x8] sm:$0xff] %vm375_vm0, %v600_v46 }
 0x1ed PF: > { %s20_s13 = sadd.s32 1, %s718_s13  }
 0x1ee   : > { %p17_p4 = scmp.ge.s32.totalorder %s20_s13, 4  }
 0x1f0   :  { %19 = sbr.rel (!%p17_p4) target bundleno = 1 (0x1), region = 93 }

// kernel: mednext_forward.7
= control target key start
LH: loop header
LB: loop body
LE: loop exit
PB: predicated region body
PF: predicated region fallthrough
CT: control target
= control target key end

     0   :  { %s1093_s13 = smov 0   ;;  %s1311_s0 = inlined_call_operand.vmem [shape: f32[2,16,128], index: 0, kind: input, shape index: {}]   ;;  %s1312_s1 = inlined_call_operand.vmem [shape: f32[3,1,64], index: 1, kind: input, shape index: {}]   ;;  %s1313_s2 = inlined_call_operand.vmem [shape: f32[9,16,1], index: 2, kind: input, shape index: {}]   ;;  %s1314_s3 = inlined_call_operand.vmem [shape: f32[16,1], index: 3, kind: input, shape index: {}]   ;;  %s1315_s4 = inlined_call_operand.vmem [shape: f32[16,1], index: 4, kind: input, shape index: {}]   ;;  %s1316_s5 = inlined_call_operand.vmem [shape: f32[16,1], index: 5, kind: input, shape index: {}]   ;;  %s1317_s6 = inlined_call_operand.vmem [shape: f32[32,16], index: 6, kind: input, shape index: {}]   ;;  %s1318_s7 = inlined_call_operand.vmem [shape: f32[32,1], index: 7, kind: input, shape index: {}]   ;;  %s1319_s8 = inlined_call_operand.vmem [shape: f32[16,32], index: 8, kind: input, shape index: {}]   ;;  %s1320_s9 = inlined_call_operand.vmem [shape: f32[16,1], index: 9, kind: input, shape index: {}]   ;;  %s1321_s10 = inlined_call_operand.vmem [shape: f32[2,16,64], index: 10, kind: output, shape index: {}]  }
   0x1 LB: > { %s937_s14 = sadd.s32 4294967295, %s1027_s13   ;;  %p941_p0 = scmp.ge.s32.totalorder %s1027_s13, 1  ;;  %s1027_s13 = sphi %s1093_s13, %s20_s13  }
   0x2   : > { %p312_p1 = scmp.lt.s32.totalorder %s1027_s13, 3 }
   0x4   : > { %p313_p2 = pnand %p941_p0, %p312_p1 }
   0x5   : > { %p350_p3 = scmp.lt.s32.totalorder (!%p313_p2), %s937_s14, 1  ;;  %s1030_s19 = smov (!%p313_p2), 112  }
   0x6   : > { %316 = sbr.rel (%p313_p2) target bundleno = 713 (0x2c9), region = 60  ;;  %s1031_s20 = smov (!%p313_p2), 120  }
   0x7   : > { %s1033_s22 = smov (!%p313_p2), 119   ;;  %s1034_s28 = smov (!%p313_p2), 126  }
   0x8   : > { %s1035_s29 = smov (!%p313_p2), 111  }
   0xb   : > { %v1029_v0 = vmov 0   ;;  %s1323_s14 = smov (!%p350_p3, %s937_s14), 1  ;;  %v368_v3 = vld [vmem:[%s1313_s2] sm:$0xff]  ;;  %v369_v4 = vld [vmem:[%s1313_s2 + $0x8] sm:$0xff]  ;;  %v947_v5 = vld [vmem:[%s1313_s2 + $0x38] sm:$0xff]  ;;  %vm581_vm0 = vcmask 523264  }
   0xc   : > { %998 = vset.pattern.permute.xlu2 %v1029_v0  ;;  %997 = vset.pattern.permute.xlu1 %v1029_v0  ;;  %s971_s15 = sshll.u32 %s1323_s14, 4  ;;  %v949_v6 = vld [vmem:[%s1313_s2 + $0x68] sm:$0xff]  ;;  %v946_v7 = vld [vmem:[%s1313_s2 + $0x30] sm:$0xff]  ;;  %v951_v8 = vld [vmem:[%s1313_s2 + $0x18] sm:$0xff]  ;;  %vm688_vm7 = vcmask 130048   ;;  %vm848_vm12 = vcmask 261120  }
   0xd   : > { %996 = vset.pattern.permute.xlu0 %v1029_v0  ;;  %s354_s18 = scalar_lea.vmem %s1311_s0, %s971_s15  ;;  %v948_v9 = vld [vmem:[%s1313_s2 + $0x60] sm:$0xff]  ;;  %v950_v10 = vld [vmem:[%s1313_s2 + $0x10] sm:$0xff]  ;;  %v953_v12 = vld [vmem:[%s1313_s2 + $0x48] sm:$0xff]  ;;  %s359_s21 = scalar_lea.vmem %s1321_s10, %s971_s15 }
   0xe   : > { %v1109_v1 = vld [vmem:[%s354_s18 + $0x8] sm:$0xff]  ;;  %v1111_v2 = vld [vmem:[%s354_s18] sm:$0xff]  ;;  %s1032_s18 = smov 127   ;;  %v955_v13 = vld [vmem:[%s1313_s2 + $0x78] sm:$0xff] }
   0xf   : > { %409 = vrot.lane.b32.xlu2 %v1109_v1, %s1030_s19  ;;  %386 = vrot.lane.b32.xlu0 %v1109_v1, %s1031_s20  ;;  %v952_v11 = vld [vmem:[%s1313_s2 + $0x40] sm:$0xff]  ;;  %v954_v14 = vld [vmem:[%s1313_s2 + $0x70] sm:$0xff] }
  0x10   : > { %384 = vrot.lane.b32.xlu1 %v1111_v2, %s1031_s20  ;;  %v957_v15 = vld [vmem:[%s1313_s2 + $0x20] sm:$0xff]  ;;  %v958_v16 = vld [vmem:[%s1313_s2 + $0x28] sm:$0xff]  ;;  %s1036_s20 = smov 118   ;;  %v960_v17 = vld [vmem:[%s1313_s2 + $0x58] sm:$0xff] }
  0x11   : > { %v962_v18 = vld [vmem:[%s1313_s2 + $0x88] sm:$0xff]  ;;  %v959_v19 = vld [vmem:[%s1313_s2 + $0x50] sm:$0xff]  ;;  %v567_v20 = vld [vmem:[%s1314_s3] sm:$0xff] }
  0x12   : > { %v568_v21 = vld [vmem:[%s1314_s3 + $0x8] sm:$0xff]  ;;  %v961_v22 = vld [vmem:[%s1313_s2 + $0x80] sm:$0xff] }
  0x13   : > { %v999_v29 = vld [vmem:[%s1312_s1] ss:$0 sm:$0xff] }
  0x14   : > { %v367_v31 = vmul.f32 %v999_v29, %v1109_v1  ;;  %v366_v36 = vmul.f32 %v999_v29, %v1111_v2 }
  0x17   : > { %372 = vperm.xlu2 %998, %v368_v3   ;;  %377 = vperm.xlu0 %996, %v369_v4  }
  0x18   : > { %400 = vperm.xlu1 %997, %v947_v5  }
  0x1f   : > { %423 = vperm.xlu0 %996, %v949_v6   ;;  %407 = vrot.lane.b32.xlu2 %v1111_v2, %s1030_s19  ;;  %s1037_s19 = smov 110  }
  0x20   : > { %395 = vperm.xlu1 %997, %v946_v7  }
  0x27   : > { %444 = vperm.xlu0 %996, %v951_v8   ;;  %432 = vrot.lane.b32.xlu2 %v1109_v1, %s1032_s18 }
  0x28   : > { %418 = vperm.xlu1 %997, %v948_v9  }
  0x2f   : > { %453 = vrot.lane.b32.xlu0 %v1109_v1, %s1033_s22  ;;  %439 = vperm.xlu2 %998, %v950_v10  }
  0x30   : > { %430 = vrot.lane.b32.xlu1 %v1111_v2, %s1032_s18 }
  0x37   : > { %460 = vperm.xlu0 %996, %v952_v11   ;;  %451 = vrot.lane.b32.xlu2 %v1111_v2, %s1033_s22 }
  0x38   : > { %465 = vperm.xlu1 %997, %v953_v12  }
  0x3f   : > { %497 = vrot.lane.b32.xlu0 %v1109_v1, %s1034_s28  ;;  %486 = vperm.xlu2 %998, %v955_v13  }
  0x40   : > { %474 = vrot.lane.b32.xlu1 %v1109_v1, %s1035_s29 }
  0x47   : > { %495 = vrot.lane.b32.xlu0 %v1111_v2, %s1034_s28  ;;  %481 = vperm.xlu2 %998, %v954_v14  }
  0x48   : > { %472 = vrot.lane.b32.xlu1 %v1111_v2, %s1035_s29 }
  0x4f   : > { %509 = vperm.xlu0 %996, %v957_v15   ;;  %523 = vrot.lane.b32.xlu2 %v1109_v1, %s1036_s20 }
  0x50   : > { %514 = vperm.xlu1 %997, %v958_v16  }
  0x57   : > { %546 = vrot.lane.b32.xlu0 %v1109_v1, %s1037_s19  ;;  %537 = vperm.xlu2 %998, %v960_v17  }
  0x58   : > { %521 = vrot.lane.b32.xlu1 %v1111_v2, %s1036_s20 }
  0x5f   : > { %560 = vperm.xlu0 %996, %v962_v18   ;;  %544 = vrot.lane.b32.xlu2 %v1111_v2, %s1037_s19  ;;  %v1000_v2 = vld [vmem:[%s1312_s1 + $0x2] ss:$0 sm:$0xff] }
  0x60   : > { %532 = vperm.xlu1 %997, %v959_v19  }
  0x67   : > { %571 = vperm.xlu0 %996, %v567_v20   ;;  %576 = vperm.xlu2 %998, %v568_v21  }
  0x68   : > { %555 = vperm.xlu1 %997, %v961_v22  }
  0x69   : > { %v410_v23 = vpop.permute.xlu2 %409 }
  0x6a   : > { %v412_v38 = vmul.f32 %v999_v29, %v410_v23 }
  0x71   : > { %v373_v24 = vpop.permute.xlu2 %372 }
  0x72   : > { %v380_v44 = vmul.f32 %v373_v24, %v366_v36 }
  0x79   : > { %v408_v25 = vpop.permute.xlu2 %407 }
  0x7a   : > { %v411_v7 = vmul.f32 %v999_v29, %v408_v25 }
  0x81   : > { %v387_v26 = vpop.permute.xlu0 %386  ;;  %v433_v28 = vpop.permute.xlu2 %432 }
  0x82   : > { %v385_v27 = vpop.permute.xlu1 %384  ;;  %v389_v33 = vmul.f32 %v999_v29, %v387_v26 }
  0x83   : > { %v388_v39 = vmul.f32 %v999_v29, %v385_v27 }
  0x89   : > { %v378_v30 = vpop.permute.xlu0 %377  ;;  %v440_v37 = vpop.permute.xlu2 %439 }
  0x8a   : > { %v401_v32 = vpop.permute.xlu1 %400  ;;  %v381_v34 = vmul.f32 %v378_v30, %v367_v31 }
  0x8b   : > { %v404_v35 = vmul.f32 %v401_v32, %v389_v33 }
  0x8d   : > { %v406_v41 = vadd.f32 %v404_v35, %v381_v34 }
  0x91   : > { %v424_v40 = vpop.permute.xlu0 %423  ;;  %v1194_v48 = vpop.permute.xlu2 %451 }
  0x92   : > { %v427_v42 = vmul.f32 %v424_v40, %v412_v38  ;;  %v396_v43 = vpop.permute.xlu1 %395 }
  0x93   : > { %v403_v45 = vmul.f32 %v396_v43, %v388_v39 }
  0x94   : > { %v429_v46 = vadd.f32 %v427_v42, %v406_v41 }
  0x95   : > { %v405_v47 = vadd.f32 %v403_v45, %v380_v44 }
  0x99   : > { %v445_v49 = vpop.permute.xlu0 %444  ;;  %v487_v53 = vpop.permute.xlu2 %486 }
  0x9a   : > { %v419_v50 = vpop.permute.xlu1 %418  ;;  %v448_v1 = vmul.f32 %v445_v49, %v433_v28 }
  0x9b   : > { %v426_v15 = vmul.f32 %v419_v50, %v411_v7 }
  0x9c   : > { %v450_v4 = vadd.f32 %v448_v1, %v429_v46 }
  0x9d   : > { %v428_v20 = vadd.f32 %v426_v15, %v405_v47 }
  0xa1   : > { %v1196_v51 = vpop.permute.xlu0 %453  ;;  %v482_v56 = vpop.permute.xlu2 %481 }
  0xa2   : > { %v431_v52 = vpop.permute.xlu1 %430 }
  0xa3   : > { %v447_v17 = vmul.f32 %v440_v37, %v431_v52 }
  0xa5   : > { %v449_v25 = vadd.f32 %v447_v17, %v428_v20 }
  0xa9   : > { %v461_v54 = vpop.permute.xlu0 %460  ;;  %v524_v59 = vpop.permute.xlu2 %523 }
  0xaa   : > { %v466_v55 = vpop.permute.xlu1 %465  ;;  %v526_v13 = vmul.f32 %v1000_v2, %v524_v59  ;;  %v468_v21 = vmul.f32 %v461_v54, %v1194_v48  ;;  %v633_v54 = vld [vmem:[%s1315_s4 + $0x8] sm:$0xff] }
  0xab   : > { %v469_v3 = vmul.f32 %v466_v55, %v1196_v51  ;;  %v667_v55 = vld [vmem:[%s1318_s7 + $0x18] sm:$0xff]  ;;  %v665_v59 = vld [vmem:[%s1318_s7 + $0x8] sm:$0xff] }
  0xac   : > { %v470_v30 = vadd.f32 %v468_v21, %v449_v25 }
  0xad   : > { %v471_v9 = vadd.f32 %v469_v3, %v450_v4 }
  0xb1   : > { %v498_v57 = vpop.permute.xlu0 %497  ;;  %v538_v62 = vpop.permute.xlu2 %537 }
  0xb2   : > { %v475_v58 = vpop.permute.xlu1 %474  ;;  %v503_v5 = vmul.f32 %v1000_v2, %v498_v57  ;;  %v541_v18 = vmul.f32 %v538_v62, %v526_v13  ;;  %v664_v57 = vld [vmem:[%s1318_s7] sm:$0xff] }
  0xb3   : > { %v490_v6 = vmul.f32 %v487_v53, %v475_v58  ;;  %v647_v53 = vld [vmem:[%s1316_s5 + $0x8] sm:$0xff]  ;;  %v632_v58 = vld [vmem:[%s1315_s4] sm:$0xff] }
  0xb4   : > { %v836_v62 = vld [vmem:[%s1320_s9] sm:$0xff] }
  0xb5   : > { %v492_v14 = vadd.f32 %v490_v6, %v471_v9 }
  0xb9   : > { %v496_v60 = vpop.permute.xlu0 %495  ;;  %v545_v12 = vpop.permute.xlu2 %544 }
  0xba   : > { %v473_v61 = vpop.permute.xlu1 %472  ;;  %v502_v27 = vmul.f32 %v1000_v2, %v496_v60  ;;  %v548_v35 = vmul.f32 %v1000_v2, %v545_v12  ;;  %v666_v60 = vld [vmem:[%s1318_s7 + $0x10] sm:$0xff] }
  0xbb   : > { %v489_v28 = vmul.f32 %v482_v56, %v473_v61  ;;  %v646_v56 = vld [vmem:[%s1316_s5] sm:$0xff]  ;;  %v837_v61 = vld [vmem:[%s1320_s9 + $0x8] sm:$0xff] }
  0xbd   : > { %v491_v36 = vadd.f32 %v489_v28, %v470_v30 }
  0xc1   : > { %v510_v63 = vpop.permute.xlu0 %509  ;;  %v577_v32 = vpop.permute.xlu2 %576 }
  0xc2   : > { %v515_v0 = vpop.permute.xlu1 %514  ;;  %v517_v31 = vmul.f32 %v510_v63, %v502_v27 }
  0xc3   : > { %v518_v10 = vmul.f32 %v515_v0, %v503_v5 }
  0xc4   : > { %v519_v40 = vadd.f32 %v517_v31, %v491_v36 }
  0xc5   : > { %v520_v16 = vadd.f32 %v518_v10, %v492_v14 }
  0xc7   : > { %v543_v23 = vadd.f32 %v541_v18, %v520_v16 }
  0xc9   : > { %v547_v8 = vpop.permute.xlu0 %546 }
  0xca   : > { %v522_v11 = vpop.permute.xlu1 %521  ;;  %v549_v19 = vmul.f32 %v1000_v2, %v547_v8 }
  0xcb   : > { %v525_v33 = vmul.f32 %v1000_v2, %v522_v11 }
  0xd1   : > { %v561_v22 = vpop.permute.xlu0 %560 }
  0xd2   : > { %v564_v24 = vmul.f32 %v561_v22, %v549_v19  ;;  %v533_v26 = vpop.permute.xlu1 %532 }
  0xd3   : > { %v540_v37 = vmul.f32 %v533_v26, %v525_v33 }
  0xd4   : > { %v566_v29 = vadd.f32 %v564_v24, %v543_v23 }
  0xd5   : > { %v542_v43 = vadd.f32 %v540_v37, %v519_v40 }
  0xd6   : > { %v1203_v34 = vadd.f32 %v577_v32, %v566_v29 }
  0xd8   : > { %v585_v38 = vsel %vm581_vm0, %v1203_v34, 0.0  ;;  %v589_v39 = vmul.f32 %v1203_v34, %v1203_v34 }
  0xd9   : > { %586 = vadd.xlane.f32.xlu1 %v585_v38  ;;  %v572_v46 = vpop.permute.xlu0 %571 }
  0xda   : > { %v556_v41 = vpop.permute.xlu1 %555  ;;  %v593_v42 = vsel %vm581_vm0, %v589_v39, 0.0 }
  0xdb   : > { %v563_v44 = vmul.f32 %v556_v41, %v548_v35  ;;  %594 = vadd.xlane.f32.xlu0 %v593_v42  ;;  %v660_v41 = vld [vmem:[%s1317_s6] sm:$0xff]  ;;  %v662_v42 = vld [vmem:[%s1317_s6 + $0x10] sm:$0xff] }
  0xdd   : > { %v565_v45 = vadd.f32 %v563_v44, %v542_v43  ;;  %v661_v43 = vld [vmem:[%s1317_s6 + $0x8] sm:$0xff]  ;;  %v663_v44 = vld [vmem:[%s1317_s6 + $0x18] sm:$0xff] }
  0xdf   : > { %v1210_v47 = vadd.f32 %v572_v46, %v565_v45 }
  0xe1   : > { %v582_v49 = vsel %vm581_vm0, %v1210_v47, 0.0  ;;  %v588_v50 = vmul.f32 %v1210_v47, %v1210_v47 }
  0xe2   : > { %583 = vadd.xlane.f32.xlu2 %v582_v49 }
  0xe3   : > { %v590_v52 = vsel %vm581_vm0, %v588_v50, 0.0 }
  0xea   : > { %591 = vadd.xlane.f32.xlu2 %v590_v52 }
  0xef   : > { %655 = vperm.xlu0 %996, %v647_v53  }
  0xf2   : > { %641 = vperm.xlu1 %997, %v633_v54  }
  0xf7   : > { %685 = vperm.xlu0 %996, %v667_v55  }
  0xfa   : > { %650 = vperm.xlu1 %997, %v646_v56  }
  0xff   : > { %670 = vperm.xlu0 %996, %v664_v57  }
 0x102   : > { %636 = vperm.xlu2 %998, %v632_v58   ;;  %675 = vperm.xlu1 %997, %v665_v59  }
 0x10a   : > { %680 = vperm.xlu2 %998, %v666_v60   ;;  %845 = vperm.xlu1 %997, %v837_v61  }
 0x112   : > { %840 = vperm.xlu2 %998, %v836_v62  }
 0x14c   : > { %v587_v63 = vpop.xlane.xlu1 %586 }
 0x14d   : > { %v597_v0 = vmul.f32 0.015625, %v587_v63 }
 0x14e   : > { %v595_v1 = vpop.xlane.xlu0 %594 }
 0x14f   : > { %v601_v2 = vmul.f32 %v597_v0, %v597_v0  ;;  %v599_v3 = vmul.f32 0.015625, %v595_v1  ;;  %v607_v21 = vsub.f32 %v1203_v34, %v597_v0 }
 0x151   : > { %v603_v4 = vsub.f32 %v599_v3, %v601_v2 }
 0x153   : > { %v605_v5 = vmax.f32 %v603_v4, 0.0 }
 0x155   : > { %v609_v6 = vadd.f32 1e-05, %v605_v5  ;;  %v584_v7 = vpop.xlane.xlu2 %583 }
 0x156   : > { %v596_v8 = vmul.f32 0.015625, %v584_v7 }
 0x157   : > { %1001 = vrsqrt.f32 %v609_v6  ;;  %vm626_vm2 = vweird.f32 %v609_v6 }
 0x158   : > { %v600_v12 = vmul.f32 %v596_v8, %v596_v8  ;;  %v606_v35 = vsub.f32 %v1210_v47, %v596_v8 }
 0x15d   : > { %v1002_v9 = vpop.eup %1001  ;;  %v592_v10 = vpop.xlane.xlu2 %591 }
 0x15e   : > { %v621_v11 = vmul.f32 %v1002_v9, %v609_v6  ;;  %v598_v13 = vmul.f32 0.015625, %v592_v10  ;;  %vm627_vm1 = vweird.f32 %v1002_v9 }
 0x15f   : > { %vm628_vm3 = vmor %vm626_vm2, %vm627_vm1 }
 0x160   : > { %v622_v14 = vmul.f32 %v1002_v9, %v621_v11  ;;  %v602_v15 = vsub.f32 %v598_v13, %v600_v12 }
 0x161   : > { %v656_v27 = vpop.permute.xlu0 %655 }
 0x162   : > { %v604_v16 = vmax.f32 %v602_v15, 0.0  ;;  %v623_v17 = vmul.f32 0.5, %v622_v14 }
 0x164   : > { %v608_v18 = vadd.f32 1e-05, %v604_v16  ;;  %v624_v19 = vsub.f32 1.5, %v623_v17  ;;  %v642_v24 = vpop.permute.xlu1 %641 }
 0x165   : > { %v637_v37 = vpop.permute.xlu2 %636 }
 0x166   : > { %1003 = vrsqrt.f32 %v608_v18  ;;  %v625_v20 = vmul.f32 %v1002_v9, %v624_v19  ;;  %vm616_vm5 = vweird.f32 %v608_v18 }
 0x168   : > { %v629_v22 = vsel %vm628_vm3, %v1002_v9, %v625_v20 }
 0x169   : > { %v631_v23 = vmul.f32 %v629_v22, %v607_v21  ;;  %v686_v45 = vpop.permute.xlu0 %685 }
 0x16b   : > { %v645_v26 = vmul.f32 %v642_v24, %v631_v23 }
 0x16c   : > { %v1004_v25 = vpop.eup %1003  ;;  %v651_v39 = vpop.permute.xlu1 %650 }
 0x16d   : > { %v611_v28 = vmul.f32 %v1004_v25, %v608_v18  ;;  %v659_v29 = vadd.f32 %v656_v27, %v645_v26  ;;  %vm617_vm4 = vweird.f32 %v1004_v25  ;;  %v681_v53 = vpop.permute.xlu2 %680 }
 0x16e   : > { %vm618_vm6 = vmor %vm616_vm5, %vm617_vm4 }
 0x16f   : > { %v612_v30 = vmul.f32 %v1004_v25, %v611_v28  ;;  %715 = vmatpush.msra.mxu0 %v659_v29  ;;  %973 = vmatpush.msra.mxu2 %v659_v29 }
 0x171   : > { %v613_v31 = vmul.f32 0.5, %v612_v30  ;;  %v671_v46 = vpop.permute.xlu0 %670 }
 0x173   : > { %v614_v32 = vsub.f32 1.5, %v613_v31 }
 0x174   : > { %v676_v58 = vpop.permute.xlu1 %675 }
 0x175   : > { %v615_v33 = vmul.f32 %v1004_v25, %v614_v32 }
 0x177   : > { %v619_v34 = vsel %vm618_vm6, %v1004_v25, %v615_v33 }
 0x178   : > { %v630_v36 = vmul.f32 %v619_v34, %v606_v35 }
 0x17a   : > { %v644_v38 = vmul.f32 %v637_v37, %v630_v36 }
 0x17c   : > { %v658_v40 = vadd.f32 %v651_v39, %v644_v38 }
 0x17e   : > { %716 = vmatpush.msra.mxu0 %v658_v40  ;;  %974 = vmatpush.msra.mxu2 %v658_v40 }
 0x17f   : > { %963 = vmatmul.msk.f32.vlgmr.msra.gmra.mxu0 %vm688_vm7, %v660_v41  ;;  %965 = vmatmul.msk.f32.vlgmr.msra.gmra.mxu2 %vm688_vm7, %v662_v42 }
 0x187   : > { %964 = vmatmul.msk.f32.gmra.mxu0 %vm688_vm7, %v661_v43  ;;  %966 = vmatmul.msk.f32.gmra.mxu2 %vm688_vm7, %v663_v44 }
 0x1fc   : > { %v718_v47 = vpop.f32.mrf.mxu0 }
 0x1fd   : > { %v1261_v49 = vadd.f32 %v718_v47, %v671_v46 }
 0x1ff   : > { %v1264_v50 = vmul.f32 0.70710677, %v1261_v49 }
 0x201   : > { %v738_v52 = vand.u32 2147483647, %v1264_v50  ;;  %vm814_vm11 = vcmp.ge.f32.partialorder %v1264_v50, 0.0 }
 0x202   : > { %v724_v54 = vpop.f32.mrf.mxu2 }
 0x203   : > { %v742_v55 = vmul.f32 0.3275911, %v738_v52  ;;  %v1267_v56 = vadd.f32 %v724_v54, %v681_v53  ;;  %v790_v23 = vsub.f32 0.0, %v738_v52 }
 0x204   : > { %v721_v57 = vpop.f32.mrf.mxu0 }
 0x205   : > { %v746_v59 = vadd.f32 1.0, %v742_v55  ;;  %v1270_v60 = vmul.f32 0.70710677, %v1267_v56  ;;  %v1272_v61 = vadd.f32 %v721_v57, %v676_v58  ;;  %v794_v32 = vmul.f32 %v790_v23, %v738_v52 }
 0x207   : > { %1005 = vrcp.f32 %v746_v59  ;;  %v740_v62 = vand.u32 2147483647, %v1270_v60  ;;  %v1276_v63 = vmul.f32 0.70710677, %v1272_v61  ;;  %v798_v43 = vmul.f32 1.442695, %v794_v32 }
 0x208   : > { %vm816_vm8 = vcmp.ge.f32.partialorder %v1270_v60, 0.0  ;;  %v732_v32 = vmul.f32 0.5, %v1267_v56  ;;  %v834_v56 = vld [vmem:[%s1319_s8] sm:$0xff] }
 0x209   : > { %v744_v0 = vmul.f32 0.3275911, %v740_v62  ;;  %v739_v1 = vand.u32 2147483647, %v1276_v63  ;;  %v792_v15 = vsub.f32 0.0, %v740_v62  ;;  %vm815_vm9 = vcmp.ge.f32.partialorder %v1276_v63, 0.0 }
 0x20a   : > { %v727_v2 = vpop.f32.mrf.mxu2 }
 0x20b   : > { %v748_v3 = vadd.f32 1.0, %v744_v0  ;;  %v1279_v4 = vadd.f32 %v727_v2, %v686_v45  ;;  %v743_v5 = vmul.f32 0.3275911, %v739_v1  ;;  %v791_v20 = vsub.f32 0.0, %v739_v1 }
 0x20c   : > { %v796_v24 = vmul.f32 %v792_v15, %v740_v62 }
 0x20d   : > { %v1006_v6 = vpop.eup %1005  ;;  %1007 = vrcp.f32 %v748_v3  ;;  %v1282_v7 = vmul.f32 0.70710677, %v1279_v4  ;;  %v747_v8 = vadd.f32 1.0, %v743_v5  ;;  %v795_v28 = vmul.f32 %v791_v20, %v739_v1 }
 0x20e   : > { %v754_v9 = vmul.f32 1.0614054, %v1006_v6  ;;  %v802_v33 = vmul.f32 1.442695, %v796_v24 }
 0x20f   : > { %v741_v10 = vand.u32 2147483647, %v1282_v7  ;;  %1009 = vrcp.f32 %v747_v8  ;;  %v800_v39 = vmul.f32 1.442695, %v795_v28  ;;  %vm817_vm10 = vcmp.ge.f32.partialorder %v1282_v7, 0.0 }
 0x210   : > { %v758_v11 = vadd.f32 -1.4531521, %v754_v9  ;;  %v733_v28 = vmul.f32 0.5, %v1279_v4  ;;  %v730_v7 = vmul.f32 0.5, %v1261_v49  ;;  %v841_v49 = vpop.permute.xlu2 %840 }
 0x211   : > { %v745_v12 = vmul.f32 0.3275911, %v741_v10  ;;  %v793_v35 = vsub.f32 0.0, %v741_v10 }
 0x212   : > { %v762_v13 = vmul.f32 %v1006_v6, %v758_v11 }
 0x213   : > { %v1008_v14 = vpop.eup %1007  ;;  %v749_v16 = vadd.f32 1.0, %v745_v12  ;;  %v797_v44 = vmul.f32 %v793_v35, %v741_v10  ;;  %v731_v35 = vmul.f32 0.5, %v1272_v61  ;;  %v835_v61 = vld [vmem:[%s1319_s8 + $0x8] sm:$0xff] }
 0x214   : > { %v756_v17 = vmul.f32 1.0614054, %v1008_v14  ;;  %v766_v18 = vadd.f32 1.4214138, %v762_v13 }
 0x215   : > { %1011 = vrcp.f32 %v749_v16  ;;  %v1010_v19 = vpop.eup %1009  ;;  %v804_v57 = vmul.f32 1.442695, %v797_v44 }
 0x216   : > { %v760_v21 = vadd.f32 -1.4531521, %v756_v17  ;;  %v770_v22 = vmul.f32 %v1006_v6, %v766_v18  ;;  %v755_v26 = vmul.f32 1.0614054, %v1010_v19  ;;  %1013 = vpow2.f32 %v802_v33 }
 0x217   : > { %1015 = vpow2.f32 %v800_v39  ;;  %v846_v39 = vpop.permute.xlu1 %845 }
 0x218   : > { %v764_v25 = vmul.f32 %v1008_v14, %v760_v21  ;;  %v759_v27 = vadd.f32 -1.4531521, %v755_v26  ;;  %v774_v30 = vadd.f32 -0.28449672, %v770_v22  ;;  %1017 = vpow2.f32 %v798_v43 }
 0x219   : > { %1019 = vpow2.f32 %v804_v57 }
 0x21a   : > { %v768_v29 = vadd.f32 1.4214138, %v764_v25  ;;  %v763_v34 = vmul.f32 %v1010_v19, %v759_v27  ;;  %v778_v42 = vmul.f32 %v1006_v6, %v774_v30 }
 0x21b   : > { %v1012_v31 = vpop.eup %1011 }
 0x21c   : > { %v757_v36 = vmul.f32 1.0614054, %v1012_v31  ;;  %v772_v37 = vmul.f32 %v1008_v14, %v768_v29  ;;  %v767_v38 = vadd.f32 1.4214138, %v763_v34  ;;  %v782_v55 = vadd.f32 0.2548296, %v778_v42  ;;  %v1014_v0 = vpop.eup %1013 }
 0x21d   : > { %v1016_v9 = vpop.eup %1015 }
 0x21e   : > { %v761_v40 = vadd.f32 -1.4531521, %v757_v36  ;;  %v776_v41 = vadd.f32 -0.28449672, %v772_v37  ;;  %v771_v45 = vmul.f32 %v1010_v19, %v767_v38  ;;  %v786_v5 = vmul.f32 %v1006_v6, %v782_v55  ;;  %v1018_v11 = vpop.eup %1017 }
 0x21f   : > { %v1020_v20 = vpop.eup %1019 }
 0x220   : > { %v765_v46 = vmul.f32 %v1012_v31, %v761_v40  ;;  %v780_v47 = vmul.f32 %v1008_v14, %v776_v41  ;;  %v775_v53 = vadd.f32 -0.28449672, %v771_v45  ;;  %v806_v16 = vmul.f32 %v1018_v11, %v786_v5 }
 0x222   : > { %v769_v54 = vadd.f32 1.4214138, %v765_v46  ;;  %v784_v52 = vadd.f32 0.2548296, %v780_v47  ;;  %v779_v58 = vmul.f32 %v1010_v19, %v775_v53 }
 0x224   : > { %v773_v59 = vmul.f32 %v1012_v31, %v769_v54  ;;  %v788_v62 = vmul.f32 %v1008_v14, %v784_v52  ;;  %v783_v1 = vadd.f32 0.2548296, %v779_v58  ;;  %v810_v14 = vsub.f32 1.0, %v806_v16 }
 0x226   : > { %v777_v2 = vadd.f32 -0.28449672, %v773_v59  ;;  %v808_v3 = vmul.f32 %v1014_v0, %v788_v62  ;;  %v787_v8 = vmul.f32 %v1010_v19, %v783_v1  ;;  %v818_v19 = vsub.f32 0.0, %v810_v14 }
 0x228   : > { %v781_v10 = vmul.f32 %v1012_v31, %v777_v2  ;;  %v807_v12 = vmul.f32 %v1016_v9, %v787_v8  ;;  %v812_v15 = vsub.f32 1.0, %v808_v3 }
 0x22a   : > { %v785_v13 = vadd.f32 0.2548296, %v781_v10  ;;  %v811_v18 = vsub.f32 1.0, %v807_v12  ;;  %v820_v22 = vsub.f32 0.0, %v812_v15 }
 0x22c   : > { %v789_v17 = vmul.f32 %v1012_v31, %v785_v13  ;;  %v819_v24 = vsub.f32 0.0, %v811_v18  ;;  %v824_v26 = vsel %vm816_vm8, %v812_v15, %v820_v22  ;;  %v822_v31 = vsel %vm814_vm11, %v810_v14, %v818_v19 }
 0x22d   : > { %v828_v30 = vadd.f32 1.0, %v824_v26  ;;  %v826_v34 = vadd.f32 1.0, %v822_v31 }
 0x22e   : > { %v809_v21 = vmul.f32 %v1020_v20, %v789_v17  ;;  %v823_v27 = vsel %vm815_vm9, %v811_v18, %v819_v24 }
 0x22f   : > { %v827_v60 = vadd.f32 1.0, %v823_v27  ;;  %v832_v63 = vmul.f32 %v828_v30, %v732_v32  ;;  %v830_v4 = vmul.f32 %v826_v34, %v730_v7 }
 0x230   : > { %v813_v23 = vsub.f32 1.0, %v809_v21 }
 0x231   : > { %v831_v50 = vmul.f32 %v827_v60, %v731_v35 }
 0x232   : > { %v821_v6 = vsub.f32 0.0, %v813_v23 }
 0x234   : > { %v825_v25 = vsel %vm817_vm10, %v813_v23, %v821_v6 }
 0x235   : > { %v829_v29 = vadd.f32 1.0, %v825_v25 }
 0x237   : > { %v833_v33 = vmul.f32 %v829_v29, %v733_v28 }
 0x239   : > { %867 = vmatpush.msra.mxu1 %v833_v33  ;;  %975 = vmatpush.msra.mxu3 %v833_v33 }
 0x23b   : > { %868 = vmatpush.msra.mxu1 %v832_v63  ;;  %976 = vmatpush.msra.mxu3 %v832_v63 }
 0x23d   : > { %869 = vmatpush.msra.mxu1 %v831_v50  ;;  %977 = vmatpush.msra.mxu3 %v831_v50 }
 0x23f   : > { %870 = vmatpush.msra.mxu1 %v830_v4  ;;  %978 = vmatpush.msra.mxu3 %v830_v4 }
 0x240   : > { %967 = vmatmul.msk.f32.vlgmr.msra.gmra.mxu1 %vm848_vm12, %v834_v56  ;;  %968 = vmatmul.msk.f32.vlgmr.msra.gmra.mxu3 %vm848_vm12, %v835_v61 }
 0x2bd   : > { %v872_v36 = vpop.f32.mrf.mxu1 }
 0x2be   : > { %v873_v37 = vadd.f32 %v872_v36, %v841_v49 }
 0x2c0   : > { %v878_v38 = vadd.f32 %v873_v37, %v1194_v48 }
 0x2c2   : > { %880 = vst.msk [vmem:[%s359_s21] sm:$0xff] %vm581_vm0, %v878_v38 }
 0x2c3   : > { %v875_v40 = vpop.f32.mrf.mxu3 }
 0x2c4   : > { %v876_v41 = vadd.f32 %v875_v40, %v846_v39 }
 0x2c6   : > { %v879_v42 = vadd.f32 %v876_v41, %v1196_v51 }
 0x2c8   : > { %881 = vst.msk [vmem:[%s359_s21 + $0x8] sm:$0xff] %vm581_vm0, %v879_v42 }
 0x2c9 PF: > { %s20_s13 = sadd.s32 1, %s1027_s13  }
 0x2ca   : > { %p17_p4 = scmp.ge.s32.totalorder %s20_s13, 4  }
 0x2cc   :  { %19 = sbr.rel (!%p17_p4) target bundleno = 1 (0x1), region = 99 }

// kernel: mednext_forward.8
= control target key start
LH: loop header
LB: loop body
LE: loop exit
PB: predicated region body
PF: predicated region fallthrough
CT: control target
= control target key end

     0   :  { %s986_s27 = smov 0   ;;  %s1210_s0 = inlined_call_operand.vmem [shape: f32[2,16,225], index: 0, kind: input, shape index: {}]   ;;  %s1211_s1 = inlined_call_operand.vmem [shape: f32[2,8,225], index: 1, kind: input, shape index: {}]   ;;  %s1212_s2 = inlined_call_operand.vmem [shape: f32[16,1], index: 2, kind: input, shape index: {}]   ;;  %s1213_s3 = inlined_call_operand.vmem [shape: f32[16,1], index: 3, kind: input, shape index: {}]   ;;  %s1214_s4 = inlined_call_operand.vmem [shape: f32[32,16], index: 4, kind: input, shape index: {}]   ;;  %s1215_s5 = inlined_call_operand.vmem [shape: f32[32,1], index: 5, kind: input, shape index: {}]   ;;  %s1216_s6 = inlined_call_operand.vmem [shape: f32[8,32], index: 6, kind: input, shape index: {}]   ;;  %s1217_s7 = inlined_call_operand.vmem [shape: f32[8,1], index: 7, kind: input, shape index: {}]   ;;  %s1218_s8 = inlined_call_operand.vmem [shape: f32[2,8,225], index: 8, kind: output, shape index: {}]  }
   0x1 LB: > { %s854_s28 = sadd.s32 4294967295, %s938_s27   ;;  %p858_p0 = scmp.ge.s32.totalorder %s938_s27, 1  ;;  %s938_s27 = sphi %s986_s27, %s18_s27  }
   0x2   : > { %p272_p1 = scmp.lt.s32.totalorder %s938_s27, 3 }
   0x4   : > { %p273_p2 = pnand %p858_p0, %p272_p1 }
   0x5   : > { %p311_p3 = scmp.lt.s32.totalorder (!%p273_p2), %s854_s28, 1 }
   0x6   : > { %276 = sbr.rel (%p273_p2) target bundleno = 509 (0x1fd), region = 52 }
   0xb   : > { %v392_v0 = vld [vmem:[%s1212_s2 + $0x8] sm:$0xff]  ;;  %v940_v1 = vmov 0   ;;  %s1220_s28 = smov (!%p311_p3, %s854_s28), 1  ;;  %vm330_vm0 = vcmask 793600   ;;  %v391_v8 = vld [vmem:[%s1212_s2] sm:$0xff]  ;;  %v430_v18 = vld [vmem:[%s1215_s5 + $0x18] sm:$0xff] }
   0xc   : > { %893 = vset.pattern.permute.xlu2 %v940_v1  ;;  %894 = vset.pattern.permute.xlu0 %v940_v1  ;;  %s877_s9 = sshll.u32 %s1220_s28, 5  ;;  %v429_v20 = vld [vmem:[%s1215_s5 + $0x10] sm:$0xff]  ;;  %v428_v21 = vld [vmem:[%s1215_s5 + $0x8] sm:$0xff]  ;;  %v427_v23 = vld [vmem:[%s1215_s5] sm:$0xff]  ;;  %vm451_vm7 = vcmask 130048   ;;  %s878_s19 = sshll.u32 %s1220_s28, 4 }
   0xd   : > { %400 = vperm.xlu2 %893, %v392_v0   ;;  %895 = vset.pattern.permute.xlu1 %v940_v1  ;;  %s315_s12 = scalar_lea.vmem %s1210_s0, %s877_s9  ;;  %v408_v22 = vld [vmem:[%s1213_s3 + $0x8] sm:$0xff]  ;;  %v407_v24 = vld [vmem:[%s1213_s3] sm:$0xff]  ;;  %s320_s22 = scalar_lea.vmem %s1211_s1, %s878_s19 }
   0xe   : > { %v1003_v2 = vld [vmem:[%s315_s12 + $0x10] sm:$0xff]  ;;  %v1005_v3 = vld [vmem:[%s315_s12 + $0x18] sm:$0xff]  ;;  %v1013_v7 = vld [vmem:[%s315_s12 + $0x8] sm:$0xff]  ;;  %s325_s25 = scalar_lea.vmem %s1218_s8, %s878_s19 }
   0xf   : > { %v335_v4 = vsel %vm330_vm0, %v1005_v3, 0.0  ;;  %v341_v5 = vmul.f32 %v1003_v2, %v1003_v2  ;;  %v342_v6 = vmul.f32 %v1005_v3, %v1005_v3  ;;  %v1020_v11 = vld [vmem:[%s315_s12] sm:$0xff]  ;;  %v340_v12 = vmul.f32 %v1013_v7, %v1013_v7 }
  0x10   : > { %v336_v9 = vadd.f32 %v335_v4, %v1003_v2  ;;  %v331_v14 = vsel %vm330_vm0, %v1013_v7, 0.0  ;;  %v339_v15 = vmul.f32 %v1020_v11, %v1020_v11  ;;  %v731_v25 = vld [vmem:[%s1217_s7] sm:$0xff] }
  0x11   : > { %v347_v10 = vsel %vm330_vm0, %v342_v6, 0.0  ;;  %v343_v16 = vsel %vm330_vm0, %v340_v12, 0.0  ;;  %v332_v17 = vadd.f32 %v331_v14, %v1020_v11  ;;  %v423_v14 = vld [vmem:[%s1214_s4] sm:$0xff] }
  0x12   : > { %337 = vadd.xlane.f32.xlu0 %v336_v9  ;;  %v348_v13 = vadd.f32 %v347_v10, %v341_v5  ;;  %v344_v19 = vadd.f32 %v343_v16, %v339_v15  ;;  %v425_v15 = vld [vmem:[%s1214_s4 + $0x10] sm:$0xff] }
  0x14   : > { %349 = vadd.xlane.f32.xlu1 %v348_v13 }
  0x15   : > { %395 = vperm.xlu2 %893, %v391_v8  }
  0x1a   : > { %333 = vadd.xlane.f32.xlu0 %v332_v17 }
  0x1c   : > { %345 = vadd.xlane.f32.xlu1 %v344_v19 }
  0x1d   : > { %448 = vperm.xlu2 %893, %v430_v18  }
  0x25   : > { %443 = vperm.xlu2 %893, %v429_v20  }
  0x2d   : > { %438 = vperm.xlu2 %893, %v428_v21  }
  0x2e   : > { %416 = vperm.xlu0 %894, %v408_v22  }
  0x35   : > { %433 = vperm.xlu2 %893, %v427_v23   ;;  %411 = vperm.xlu1 %895, %v407_v24  }
  0x3d   : > { %734 = vperm.xlu1 %895, %v731_v25  }
  0x67   : > { %v401_v53 = vpop.permute.xlu2 %400 }
  0x6f   : > { %v396_v6 = vpop.permute.xlu2 %395 }
  0x77   : > { %v449_v16 = vpop.permute.xlu2 %448 }
  0x7f   : > { %v444_v17 = vpop.permute.xlu2 %443 }
  0x85   : > { %v338_v26 = vpop.xlane.xlu0 %337 }
  0x86   : > { %v352_v27 = vmul.f32 0.0044444446, %v338_v26 }
  0x87   : > { %v350_v28 = vpop.xlane.xlu1 %349  ;;  %v439_v18 = vpop.permute.xlu2 %438 }
  0x88   : > { %v354_v29 = vmul.f32 0.0044444446, %v350_v28  ;;  %v356_v30 = vmul.f32 %v352_v27, %v352_v27  ;;  %v363_v49 = vsub.f32 %v1003_v2, %v352_v27  ;;  %v364_v50 = vsub.f32 %v1005_v3, %v352_v27 }
  0x8a   : > { %v358_v31 = vsub.f32 %v354_v29, %v356_v30 }
  0x8c   : > { %v360_v32 = vmax.f32 %v358_v31, 0.0 }
  0x8d   : > { %v334_v33 = vpop.xlane.xlu0 %333 }
  0x8e   : > { %v366_v34 = vadd.f32 1e-05, %v360_v32  ;;  %v351_v35 = vmul.f32 0.0044444446, %v334_v33 }
  0x8f   : > { %v346_v36 = vpop.xlane.xlu1 %345  ;;  %v434_v19 = vpop.permute.xlu2 %433 }
  0x90   : > { %896 = vrsqrt.f32 %v366_v34  ;;  %v353_v37 = vmul.f32 0.0044444446, %v346_v36  ;;  %v355_v38 = vmul.f32 %v351_v35, %v351_v35  ;;  %vm383_vm2 = vweird.f32 %v366_v34 }
  0x91   : > { %v361_v1 = vsub.f32 %v1020_v11, %v351_v35  ;;  %v362_v2 = vsub.f32 %v1013_v7, %v351_v35  ;;  %v426_v7 = vld [vmem:[%s1214_s4 + $0x18] sm:$0xff]  ;;  %v424_v11 = vld [vmem:[%s1214_s4 + $0x8] sm:$0xff] }
  0x92   : > { %v357_v39 = vsub.f32 %v353_v37, %v355_v38 }
  0x94   : > { %v359_v40 = vmax.f32 %v357_v39, 0.0 }
  0x96   : > { %v897_v41 = vpop.eup %896  ;;  %v365_v43 = vadd.f32 1e-05, %v359_v40 }
  0x97   : > { %v378_v42 = vmul.f32 %v897_v41, %v366_v34  ;;  %vm384_vm1 = vweird.f32 %v897_v41 }
  0x98   : > { %898 = vrsqrt.f32 %v365_v43  ;;  %vm385_vm3 = vmor %vm383_vm2, %vm384_vm1  ;;  %vm373_vm5 = vweird.f32 %v365_v43  ;;  %vm737_vm1 = vcmask 261120  }
  0x99   : > { %v379_v44 = vmul.f32 %v897_v41, %v378_v42 }
  0x9b   : > { %v380_v45 = vmul.f32 0.5, %v379_v44 }
  0x9d   : > { %v381_v46 = vsub.f32 1.5, %v380_v45 }
  0x9e   : > { %v899_v47 = vpop.eup %898 }
  0x9f   : > { %v382_v48 = vmul.f32 %v897_v41, %v381_v46  ;;  %v368_v51 = vmul.f32 %v899_v47, %v365_v43  ;;  %vm374_vm4 = vweird.f32 %v899_v47 }
  0xa0   : > { %v417_v57 = vpop.permute.xlu0 %416  ;;  %vm375_vm6 = vmor %vm373_vm5, %vm374_vm4 }
  0xa1   : > { %v386_v52 = vsel %vm385_vm3, %v897_v41, %v382_v48  ;;  %v369_v54 = vmul.f32 %v899_v47, %v368_v51 }
  0xa2   : > { %v389_v55 = vmul.f32 %v386_v52, %v363_v49  ;;  %v390_v56 = vmul.f32 %v386_v52, %v364_v50 }
  0xa3   : > { %v370_v58 = vmul.f32 0.5, %v369_v54 }
  0xa4   : > { %v405_v59 = vmul.f32 %v401_v53, %v389_v55  ;;  %v406_v60 = vmul.f32 %v401_v53, %v390_v56 }
  0xa5   : > { %v371_v61 = vsub.f32 1.5, %v370_v58 }
  0xa6   : > { %v421_v62 = vadd.f32 %v417_v57, %v405_v59  ;;  %v422_v63 = vadd.f32 %v417_v57, %v406_v60 }
  0xa7   : > { %v372_v0 = vmul.f32 %v899_v47, %v371_v61  ;;  %v412_v10 = vpop.permute.xlu1 %411 }
  0xa8   : > { %478 = vmatpush.msra.mxu0 %v421_v62  ;;  %880 = vmatpush.msra.mxu2 %v421_v62 }
  0xa9   : > { %507 = vmatpush.msra.mxu1 %v422_v63  ;;  %882 = vmatpush.msra.mxu3 %v422_v63  ;;  %v376_v3 = vsel %vm375_vm6, %v899_v47, %v372_v0 }
  0xaa   : > { %v387_v4 = vmul.f32 %v376_v3, %v361_v1  ;;  %v388_v5 = vmul.f32 %v376_v3, %v362_v2 }
  0xac   : > { %v403_v8 = vmul.f32 %v396_v6, %v387_v4  ;;  %v404_v9 = vmul.f32 %v396_v6, %v388_v5 }
  0xae   : > { %v419_v12 = vadd.f32 %v412_v10, %v403_v8  ;;  %v420_v13 = vadd.f32 %v412_v10, %v404_v9 }
  0xb0   : > { %479 = vmatpush.msra.mxu0 %v419_v12  ;;  %881 = vmatpush.msra.mxu2 %v419_v12 }
  0xb1   : > { %508 = vmatpush.msra.mxu1 %v420_v13  ;;  %883 = vmatpush.msra.mxu3 %v420_v13 }
  0xb2   : > { %865 = vmatmul.msk.f32.vlgmr.msra.gmra.mxu0 %vm451_vm7, %v423_v14  ;;  %868 = vmatmul.msk.f32.vlgmr.msra.gmra.mxu2 %vm451_vm7, %v426_v7 }
  0xb3   : > { %869 = vmatmul.msk.f32.vlgmr.msra.gmra.mxu1 %vm451_vm7, %v423_v14  ;;  %872 = vmatmul.msk.f32.vlgmr.msra.gmra.mxu3 %vm451_vm7, %v426_v7 }
  0xba   : > { %866 = vmatmul.msk.f32.gmra.mxu0 %vm451_vm7, %v424_v11 }
  0xbb   : > { %870 = vmatmul.msk.f32.gmra.mxu1 %vm451_vm7, %v424_v11 }
  0xc2   : > { %867 = vmatmul.msk.f32.gmra.mxu0 %vm451_vm7, %v425_v15 }
  0xc3   : > { %871 = vmatmul.msk.f32.gmra.mxu1 %vm451_vm7, %v425_v15 }
 0x12f   : > { %v481_v20 = vpop.f32.mrf.mxu0 }
 0x130   : > { %v1067_v21 = vadd.f32 %v481_v20, %v434_v19  ;;  %v510_v22 = vpop.f32.mrf.mxu1 }
 0x131   : > { %v1069_v23 = vadd.f32 %v510_v22, %v434_v19 }
 0x132   : > { %v1072_v24 = vmul.f32 0.70710677, %v1067_v21 }
 0x133   : > { %v1075_v25 = vmul.f32 0.70710677, %v1069_v23 }
 0x134   : > { %v538_v26 = vand.u32 2147483647, %v1072_v24  ;;  %vm690_vm11 = vcmp.ge.f32.partialorder %v1072_v24, 0.0 }
 0x135   : > { %v490_v27 = vpop.f32.mrf.mxu2  ;;  %v539_v29 = vand.u32 2147483647, %v1075_v25  ;;  %vm691_vm13 = vcmp.ge.f32.partialorder %v1075_v25, 0.0 }
 0x136   : > { %v546_v28 = vmul.f32 0.3275911, %v538_v26  ;;  %v491_v30 = vadd.f32 %v490_v27, %v449_v16  ;;  %v519_v31 = vpop.f32.mrf.mxu3  ;;  %v642_v36 = vsub.f32 0.0, %v538_v26 }
 0x137   : > { %v1079_v32 = vadd.f32 %v519_v31, %v449_v16  ;;  %v484_v33 = vpop.f32.mrf.mxu0  ;;  %v547_v39 = vmul.f32 0.3275911, %v539_v29  ;;  %v643_v45 = vsub.f32 0.0, %v539_v29 }
 0x138   : > { %v1081_v34 = vmul.f32 0.70710677, %v491_v30  ;;  %v513_v35 = vpop.f32.mrf.mxu1  ;;  %v554_v38 = vadd.f32 1.0, %v546_v28  ;;  %v1088_v43 = vadd.f32 %v484_v33, %v439_v18  ;;  %v650_v44 = vmul.f32 %v642_v36, %v538_v26 }
 0x139   : > { %v1084_v37 = vmul.f32 0.70710677, %v1079_v32  ;;  %v1090_v47 = vadd.f32 %v513_v35, %v439_v18  ;;  %v555_v48 = vadd.f32 1.0, %v547_v39  ;;  %v651_v59 = vmul.f32 %v643_v45, %v539_v29 }
 0x13a   : > { %v544_v40 = vand.u32 2147483647, %v1081_v34  ;;  %900 = vrcp.f32 %v554_v38  ;;  %v1093_v50 = vmul.f32 0.70710677, %v1088_v43  ;;  %v658_v58 = vmul.f32 1.442695, %v650_v44 }
 0x13b   : > { %v545_v41 = vand.u32 2147483647, %v1084_v37  ;;  %v1096_v54 = vmul.f32 0.70710677, %v1090_v47  ;;  %v660_v10 = vmul.f32 1.442695, %v651_v59 }
 0x13c   : > { %v552_v42 = vmul.f32 0.3275911, %v544_v40  ;;  %v648_v51 = vsub.f32 0.0, %v544_v40  ;;  %v540_v56 = vand.u32 2147483647, %v1093_v50  ;;  %v1114_v7 = vmul.f32 0.5, %v491_v30 }
 0x13d   : > { %v553_v46 = vmul.f32 0.3275911, %v545_v41  ;;  %v649_v53 = vsub.f32 0.0, %v545_v41  ;;  %v541_v60 = vand.u32 2147483647, %v1096_v54  ;;  %vm696_vm8 = vcmp.ge.f32.partialorder %v1081_v34, 0.0 }
 0x13e   : > { %v560_v49 = vadd.f32 1.0, %v552_v42  ;;  %v548_v61 = vmul.f32 0.3275911, %v540_v56  ;;  %v644_v62 = vsub.f32 0.0, %v540_v56  ;;  %v656_v0 = vmul.f32 %v648_v51, %v544_v40 }
 0x13f   : > { %v561_v52 = vadd.f32 1.0, %v553_v46  ;;  %v487_v55 = vpop.f32.mrf.mxu0  ;;  %v657_v1 = vmul.f32 %v649_v53, %v545_v41  ;;  %v549_v2 = vmul.f32 0.3275911, %v541_v60  ;;  %v645_v8 = vsub.f32 0.0, %v541_v60 }
 0x140   : > { %902 = vrcp.f32 %v560_v49  ;;  %v516_v57 = vpop.f32.mrf.mxu1  ;;  %v1100_v63 = vadd.f32 %v487_v55, %v444_v17  ;;  %v1104_v4 = vpop.eup %900  ;;  %v556_v5 = vadd.f32 1.0, %v548_v61  ;;  %v652_v6 = vmul.f32 %v644_v62, %v540_v56 }
 0x141   : > { %904 = vrcp.f32 %v561_v52  ;;  %v1102_v3 = vadd.f32 %v516_v57, %v444_v17  ;;  %v557_v12 = vadd.f32 1.0, %v549_v2  ;;  %v670_v16 = vmul.f32 1.442695, %v656_v0 }
 0x142   : > { %906 = vrcp.f32 %v555_v48  ;;  %v1107_v9 = vmul.f32 0.70710677, %v1100_v63  ;;  %v672_v17 = vmul.f32 1.442695, %v657_v1  ;;  %v662_v20 = vmul.f32 1.442695, %v652_v6 }
 0x143   : > { %908 = vpow2.f32 %v658_v58  ;;  %v1110_v13 = vmul.f32 0.70710677, %v1102_v3  ;;  %v653_v22 = vmul.f32 %v645_v8, %v541_v60  ;;  %v570_v36 = vmul.f32 1.0614054, %v1104_v4 }
 0x144   : > { %910 = vrcp.f32 %v556_v5  ;;  %v542_v11 = vand.u32 2147483647, %v1107_v9  ;;  %vm697_vm9 = vcmp.ge.f32.partialorder %v1084_v37, 0.0  ;;  %vm692_vm10 = vcmp.ge.f32.partialorder %v1093_v50, 0.0 }
 0x145   : > { %912 = vrcp.f32 %v557_v12  ;;  %v543_v18 = vand.u32 2147483647, %v1110_v13  ;;  %v664_v44 = vmul.f32 1.442695, %v653_v22  ;;  %v578_v46 = vadd.f32 -1.4531521, %v570_v36 }
 0x146   : > { %v1112_v14 = vpop.eup %902  ;;  %v550_v26 = vmul.f32 0.3275911, %v542_v11  ;;  %914 = vpow2.f32 %v660_v10  ;;  %v646_v28 = vsub.f32 0.0, %v542_v11  ;;  %vm693_vm12 = vcmp.ge.f32.partialorder %v1096_v54, 0.0 }
 0x147   : > { %v1117_v15 = vpop.eup %904  ;;  %v576_v27 = vmul.f32 1.0614054, %v1112_v14  ;;  %v551_v29 = vmul.f32 0.3275911, %v543_v18  ;;  %v647_v33 = vsub.f32 0.0, %v543_v18  ;;  %916 = vpow2.f32 %v670_v16 }
 0x148   : > { %v1120_v19 = vpop.eup %906  ;;  %v577_v30 = vmul.f32 1.0614054, %v1117_v15  ;;  %v558_v31 = vadd.f32 1.0, %v550_v26  ;;  %v654_v49 = vmul.f32 %v646_v28, %v542_v11  ;;  %v586_v57 = vmul.f32 %v1104_v4, %v578_v46 }
 0x149   : > { %v584_v35 = vadd.f32 -1.4531521, %v576_v27  ;;  %v1125_v38 = vpop.eup %908  ;;  %v559_v39 = vadd.f32 1.0, %v551_v29  ;;  %v571_v41 = vmul.f32 1.0614054, %v1120_v19  ;;  %v655_v53 = vmul.f32 %v647_v33, %v543_v18 }
 0x14a   : > { %v585_v40 = vadd.f32 -1.4531521, %v577_v30  ;;  %v1128_v42 = vpop.eup %910  ;;  %918 = vrcp.f32 %v558_v31  ;;  %v594_v1 = vadd.f32 1.4214138, %v586_v57  ;;  %v666_v5 = vmul.f32 1.442695, %v654_v49 }
 0x14b   : > { %v592_v45 = vmul.f32 %v1112_v14, %v584_v35  ;;  %v1131_v48 = vpop.eup %912  ;;  %920 = vrcp.f32 %v559_v39  ;;  %v572_v52 = vmul.f32 1.0614054, %v1128_v42  ;;  %v579_v61 = vadd.f32 -1.4531521, %v571_v41 }
 0x14c   : > { %v593_v51 = vmul.f32 %v1117_v15, %v585_v40  ;;  %v573_v56 = vmul.f32 1.0614054, %v1131_v48  ;;  %v1137_v58 = vpop.eup %914  ;;  %922 = vpow2.f32 %v672_v17  ;;  %v668_v11 = vmul.f32 1.442695, %v655_v53 }
 0x14d   : > { %v600_v55 = vadd.f32 1.4214138, %v592_v45  ;;  %v580_v60 = vadd.f32 -1.4531521, %v572_v52  ;;  %924 = vpow2.f32 %v662_v20  ;;  %v917_v2 = vpop.eup %916  ;;  %v587_v10 = vmul.f32 %v1120_v19, %v579_v61 }
 0x14e   : > { %v601_v59 = vadd.f32 1.4214138, %v593_v51  ;;  %v581_v0 = vadd.f32 -1.4531521, %v573_v56  ;;  %v602_v18 = vmul.f32 %v1104_v4, %v594_v1  ;;  %926 = vpow2.f32 %v664_v44 }
 0x14f   : > { %v608_v62 = vmul.f32 %v1112_v14, %v600_v55  ;;  %v588_v8 = vmul.f32 %v1128_v42, %v580_v60  ;;  %v595_v40 = vadd.f32 1.4214138, %v587_v10  ;;  %928 = vpow2.f32 %v666_v5 }
 0x150   : > { %v609_v6 = vmul.f32 %v1117_v15, %v601_v59  ;;  %v1143_v12 = vpop.eup %918  ;;  %v589_v17 = vmul.f32 %v1131_v48, %v581_v0  ;;  %v610_v31 = vadd.f32 -0.28449672, %v602_v18  ;;  %930 = vpow2.f32 %v668_v11 }
 0x151   : > { %v616_v16 = vadd.f32 -0.28449672, %v608_v62  ;;  %v1147_v20 = vpop.eup %920  ;;  %v574_v26 = vmul.f32 1.0614054, %v1143_v12  ;;  %v596_v27 = vadd.f32 1.4214138, %v588_v8  ;;  %v603_v55 = vmul.f32 %v1120_v19, %v595_v40 }
 0x152   : > { %v617_v22 = vadd.f32 -0.28449672, %v609_v6  ;;  %v575_v29 = vmul.f32 1.0614054, %v1147_v20  ;;  %v597_v30 = vadd.f32 1.4214138, %v589_v17  ;;  %v923_v33 = vpop.eup %922  ;;  %v618_v49 = vmul.f32 %v1104_v4, %v610_v31 }
 0x153   : > { %v624_v28 = vmul.f32 %v1112_v14, %v616_v16  ;;  %v582_v36 = vadd.f32 -1.4531521, %v574_v26  ;;  %v604_v39 = vmul.f32 %v1128_v42, %v596_v27  ;;  %v925_v41 = vpop.eup %924  ;;  %v611_v6 = vadd.f32 -0.28449672, %v603_v55 }
 0x154   : > { %v625_v35 = vmul.f32 %v1117_v15, %v617_v22  ;;  %v583_v44 = vadd.f32 -1.4531521, %v575_v29  ;;  %v605_v46 = vmul.f32 %v1131_v48, %v597_v30  ;;  %v626_v60 = vadd.f32 0.2548296, %v618_v49  ;;  %v927_v61 = vpop.eup %926 }
 0x155   : > { %v632_v45 = vadd.f32 0.2548296, %v624_v28  ;;  %v590_v52 = vmul.f32 %v1143_v12, %v582_v36  ;;  %v612_v53 = vadd.f32 -0.28449672, %v604_v39  ;;  %v619_v26 = vmul.f32 %v1120_v19, %v611_v6 }
 0x156   : > { %v633_v51 = vadd.f32 0.2548296, %v625_v35  ;;  %v591_v57 = vmul.f32 %v1147_v20, %v583_v44  ;;  %v613_v59 = vadd.f32 -0.28449672, %v605_v46  ;;  %v634_v17 = vmul.f32 %v1104_v4, %v626_v60 }
 0x157   : > { %v640_v56 = vmul.f32 %v1112_v14, %v632_v45  ;;  %v598_v0 = vadd.f32 1.4214138, %v590_v52  ;;  %v620_v1 = vmul.f32 %v1128_v42, %v612_v53  ;;  %v627_v31 = vadd.f32 0.2548296, %v619_v26  ;;  %v929_v52 = vpop.eup %928 }
 0x158   : > { %v641_v62 = vmul.f32 %v1117_v15, %v633_v51  ;;  %v599_v10 = vadd.f32 1.4214138, %v591_v57  ;;  %v621_v16 = vmul.f32 %v1131_v48, %v613_v59  ;;  %v674_v5 = vmul.f32 %v1125_v38, %v634_v17  ;;  %v931_v59 = vpop.eup %930 }
 0x159   : > { %v680_v8 = vmul.f32 %v917_v2, %v640_v56  ;;  %v606_v14 = vmul.f32 %v1143_v12, %v598_v0  ;;  %v628_v22 = vadd.f32 0.2548296, %v620_v1  ;;  %v529_v53 = vmul.f32 0.5, %v1079_v32 }
 0x15a   : > { %v681_v18 = vmul.f32 %v923_v33, %v641_v62  ;;  %v607_v15 = vmul.f32 %v1147_v20, %v599_v10  ;;  %v629_v28 = vadd.f32 0.2548296, %v621_v16  ;;  %v682_v57 = vsub.f32 1.0, %v674_v5 }
 0x15b   : > { %v688_v27 = vsub.f32 1.0, %v680_v8  ;;  %v614_v30 = vadd.f32 -0.28449672, %v606_v14  ;;  %v636_v2 = vmul.f32 %v1128_v42, %v628_v22  ;;  %v635_v42 = vmul.f32 %v1120_v19, %v627_v31 }
 0x15c   : > { %v689_v29 = vsub.f32 1.0, %v681_v18  ;;  %v615_v36 = vadd.f32 -0.28449672, %v607_v15  ;;  %v637_v4 = vmul.f32 %v1131_v48, %v629_v28  ;;  %v698_v8 = vsub.f32 0.0, %v682_v57 }
 0x15d   : > { %v704_v35 = vsub.f32 0.0, %v688_v27  ;;  %v622_v39 = vmul.f32 %v1143_v12, %v614_v30  ;;  %v676_v40 = vmul.f32 %v925_v41, %v636_v2  ;;  %v675_v37 = vmul.f32 %v1137_v58, %v635_v42 }
 0x15e   : > { %v705_v33 = vsub.f32 0.0, %v689_v29  ;;  %v623_v44 = vmul.f32 %v1147_v20, %v615_v36  ;;  %v677_v46 = vmul.f32 %v927_v61, %v637_v4  ;;  %vm694_vm14 = vcmp.ge.f32.partialorder %v1107_v9, 0.0  ;;  %v781_v36 = vld [vmem:[%s320_s22] sm:$0xff] }
 0x15f   : > { %v712_v45 = vsel %vm696_vm8, %v688_v27, %v704_v35  ;;  %v630_v51 = vadd.f32 0.2548296, %v622_v39  ;;  %v684_v48 = vsub.f32 1.0, %v676_v40  ;;  %v683_v1 = vsub.f32 1.0, %v675_v37  ;;  %v782_v39 = vld [vmem:[%s320_s22 + $0x8] sm:$0xff] }
 0x160   : > { %v720_v49 = vadd.f32 1.0, %v712_v45  ;;  %v713_v11 = vsel %vm697_vm9, %v689_v29, %v705_v33  ;;  %v631_v55 = vadd.f32 0.2548296, %v623_v44  ;;  %v685_v38 = vsub.f32 1.0, %v677_v46 }
 0x161   : > { %v721_v41 = vadd.f32 1.0, %v713_v11  ;;  %v638_v56 = vmul.f32 %v1143_v12, %v630_v51  ;;  %v700_v62 = vsub.f32 0.0, %v684_v48  ;;  %v699_v12 = vsub.f32 0.0, %v683_v1 }
 0x162   : > { %v728_v34 = vmul.f32 %v720_v49, %v1114_v7  ;;  %v639_v19 = vmul.f32 %v1147_v20, %v631_v55  ;;  %v701_v32 = vsub.f32 0.0, %v685_v38  ;;  %v526_v17 = vmul.f32 0.5, %v1100_v63 }
 0x163   : > { %v729_v60 = vmul.f32 %v721_v41, %v529_v53  ;;  %v678_v61 = vmul.f32 %v929_v52, %v638_v56  ;;  %v708_v10 = vsel %vm692_vm10, %v684_v48, %v700_v62  ;;  %vm695_vm15 = vcmp.ge.f32.partialorder %v1110_v13, 0.0 }
 0x164   : > { %753 = vmatpush.msrb.mxu2 %v728_v34  ;;  %v679_v0 = vmul.f32 %v931_v59, %v639_v19  ;;  %v709_v16 = vsel %vm693_vm12, %v685_v38, %v701_v32  ;;  %v706_v50 = vsel %vm690_vm11, %v682_v57, %v698_v8  ;;  %v716_v26 = vadd.f32 1.0, %v708_v10 }
 0x165   : > { %773 = vmatpush.msrb.mxu3 %v729_v60  ;;  %v686_v6 = vsub.f32 1.0, %v678_v61  ;;  %v707_v24 = vsel %vm691_vm13, %v683_v1, %v699_v12  ;;  %v527_v54 = vmul.f32 0.5, %v1102_v3  ;;  %v717_v15 = vadd.f32 1.0, %v709_v16 }
 0x166   : > { %v687_v7 = vsub.f32 1.0, %v679_v0  ;;  %v524_v25 = vmul.f32 0.5, %v1088_v43  ;;  %v714_v9 = vadd.f32 1.0, %v706_v50  ;;  %v525_v29 = vmul.f32 0.5, %v1090_v47  ;;  %v730_v43 = vld [vmem:[%s1216_s6] sm:$0xff] }
 0x167   : > { %v702_v20 = vsub.f32 0.0, %v686_v6  ;;  %v715_v63 = vadd.f32 1.0, %v707_v24  ;;  %v522_v13 = vmul.f32 0.5, %v1067_v21  ;;  %v523_v31 = vmul.f32 0.5, %v1069_v23  ;;  %v735_v21 = vpop.permute.xlu1 %734 }
 0x168   : > { %v703_v58 = vsub.f32 0.0, %v687_v7  ;;  %v724_v2 = vmul.f32 %v716_v26, %v524_v25  ;;  %v725_v35 = vmul.f32 %v717_v15, %v525_v29 }
 0x169   : > { %v710_v18 = vsel %vm694_vm14, %v686_v6, %v702_v20  ;;  %v722_v3 = vmul.f32 %v714_v9, %v522_v13  ;;  %v723_v47 = vmul.f32 %v715_v63, %v523_v31 }
 0x16a   : > { %v718_v14 = vadd.f32 1.0, %v710_v18  ;;  %v711_v22 = vsel %vm695_vm15, %v687_v7, %v703_v58 }
 0x16b   : > { %v719_v27 = vadd.f32 1.0, %v711_v22 }
 0x16c   : > { %v726_v28 = vmul.f32 %v718_v14, %v526_v17 }
 0x16d   : > { %v727_v30 = vmul.f32 %v719_v27, %v527_v54 }
 0x16e   : > { %754 = vmatpush.msrb.mxu2 %v726_v28 }
 0x16f   : > { %774 = vmatpush.msrb.mxu3 %v727_v30 }
 0x170   : > { %755 = vmatpush.msrb.mxu2 %v724_v2 }
 0x171   : > { %775 = vmatpush.msrb.mxu3 %v725_v35 }
 0x172   : > { %756 = vmatpush.msrb.mxu2 %v722_v3 }
 0x173   : > { %776 = vmatpush.msrb.mxu3 %v723_v47  ;;  %873 = vmatmul.msk.f32.vlgmr.msrb.gmra.mxu2 %vm737_vm1, %v730_v43 }
 0x174   : > { %874 = vmatmul.msk.f32.vlgmr.msrb.gmra.mxu3 %vm737_vm1, %v730_v43 }
 0x1f6   : > { %v758_v23 = vpop.f32.mrf.mxu2 }
 0x1f7   : > { %v759_v4 = vadd.f32 %v758_v23, %v735_v21  ;;  %v778_v33 = vpop.f32.mrf.mxu3 }
 0x1f8   : > { %v779_v40 = vadd.f32 %v778_v33, %v735_v21 }
 0x1f9   : > { %v783_v5 = vadd.f32 %v781_v36, %v759_v4 }
 0x1fa   : > { %v784_v45 = vadd.f32 %v782_v39, %v779_v40 }
 0x1fb   : > { %785 = vst [vmem:[%s325_s25] sm:$0xff] %v783_v5 }
 0x1fc   : > { %786 = vst.msk [vmem:[%s325_s25 + $0x8] sm:$0xff] %vm330_vm0, %v784_v45 }
 0x1fd PF: > { %s18_s27 = sadd.s32 1, %s938_s27  }
 0x1fe   : > { %p15_p4 = scmp.ge.s32.totalorder %s18_s27, 4  }
 0x200   :  { %17 = sbr.rel (!%p15_p4) target bundleno = 1 (0x1), region = 85 }

</bundles_post_ra>
